<compile_context>
chip_gen: v5e
topology: v5e:2x2
jax: 0.10.0
libtpu: 0.0.40
codegen_flags: <defaults>
</compile_context>

<pallas_src>
import math

import jax
import jax.numpy as jnp
from jax.experimental import pallas as pl
from jax.experimental.pallas import tpu as pltpu

# ---- module hyper-parameters -------------------------------------------------
IN_DIM = 4                               # in_dim
OUT_DIM = 16                             # out_dim
HIDDEN = 32                              # hidden_dim
PE = 2                                   # pe
NUM_LAYERS = 2
ENC_DIM = IN_DIM * (1 + 2 * PE)          # 20 = in_dim + 2*in_dim*pe
ENC_PAD = 24                             # ENC_DIM padded to a multiple of 8 sublanes
TN_MAX = 16384                           # samples (lanes) per grid step


def _round_up(a, m):
    return (a + m - 1) // m * m


def _cdiv(a, b):
    return (a + b - 1) // b


# ---- Pallas kernel -----------------------------------------------------------
def mlp_mixer_kernel(x_ref, w0t_ref, b0_ref, w1t_ref, o_ref):
    # x_ref:   (IN_DIM, TN)     f32   samples on the lane axis
    # w0t_ref: (HIDDEN, ENC_PAD) bf16 permuted + zero-padded W0, transposed
    # b0_ref:  (HIDDEN, 1)      f32
    # w1t_ref: (OUT_DIM, HIDDEN) bf16 W1 transposed (bias=False)
    # o_ref:   (OUT_DIM, TN)    f32
    x = x_ref[...]                                     # (4, TN) f32

    # Positional encoding, lane-dense; row order matches the W0 permutation done
    # in the wrapper: [sin f0, cos f0, sin f1, cos f1, x, zero-pad] (4 rows each).
    blocks = []
    for f in range(PE):                                # static unroll (PE = 2)
        arg = x if f == 0 else x * jnp.float32(2.0 ** f)
        blocks.append(jnp.sin(arg))                    # (4, TN)
        blocks.append(jnp.cos(arg))                    # (4, TN)
    blocks.append(x)                                   # raw x rows
    blocks.append(jnp.zeros_like(x))                   # pad rows 20..23 (W0 cols are zero)
    enc = jnp.concatenate(blocks, axis=0)              # (ENC_PAD=24, TN) f32

    # layer 0: single fused K=24 bf16 MXU matmul (f32 accumulate) + bias + ReLU
    h = jnp.dot(w0t_ref[...], enc.astype(jnp.bfloat16),
                preferred_element_type=jnp.float32)    # (32, TN) f32
    h = jnp.maximum(h + b0_ref[...], 0.0)

    # layer 1: Linear(hidden, out_dim, bias=False), no activation
    o_ref[...] = jnp.dot(w1t_ref[...], h.astype(jnp.bfloat16),
                         preferred_element_type=jnp.float32).astype(o_ref.dtype)


# ---- wrapper -----------------------------------------------------------------
def mlp_mixer_forward(x, w0, b0, w1):
    """x: (N, IN_DIM) f32; w0: (ENC_DIM, HIDDEN); b0: (HIDDEN,); w1: (HIDDEN, OUT_DIM).

    Returns (N, OUT_DIM) — same math as the PyTorch module (matmuls run with
    bf16 operands / f32 accumulation on the MXU).  Internally the kernel runs in
    a transposed, lane-padded layout.
    """
    N, D = x.shape
    assert D == IN_DIM

    # -- permute + zero-pad W0 rows to the kernel's enc row order ----------------
    # torch feature order: [x_d, sin(pts), cos(pts)], pts column index = d*PE + f
    # kernel enc order:    [sin f0 (d), cos f0 (d), sin f1 (d), cos f1 (d), x_d, 0]
    pe_sin = w0[D:D + D * PE]
    pe_cos = w0[D + D * PE:]
    rows = []
    for f in range(PE):
        rows.append(pe_sin[f::PE])                     # (D, H), dims d asc, freq f
        rows.append(pe_cos[f::PE])
    rows.append(w0[:D])                                # raw-x rows
    rows.append(jnp.zeros((ENC_PAD - ENC_DIM, HIDDEN), w0.dtype))   # pad columns
    w0t = jnp.concatenate(rows, axis=0).T.astype(jnp.bfloat16)      # (HIDDEN, ENC_PAD)
    w1t = w1.T.astype(jnp.bfloat16)                                 # (OUT_DIM, HIDDEN)
    b0c = b0.reshape(HIDDEN, 1).astype(jnp.float32)

    # -- balanced tiles; >= 2 grid steps when there's enough work (v7x 2 TCs) ----
    n128 = _round_up(N, 128)
    min_tiles = 2 if n128 >= 256 else 1
    num_tiles = max(_cdiv(n128, TN_MAX), min_tiles)
    tn = _round_up(_cdiv(n128, num_tiles), 128)        # multiple of 128 lanes
    n_pad = tn * num_tiles

    x_t = x.T                                          # (D, N)
    if n_pad != N:
        x_t = jnp.pad(x_t, ((0, 0), (0, n_pad - N)))   # zero-pad extra samples

    flops = 2 * n_pad * (ENC_PAD * HIDDEN + HIDDEN * OUT_DIM)
    transcendentals = 2 * IN_DIM * PE * n_pad          # sin + cos per sample
    bytes_accessed = (4 * n_pad * (IN_DIM + OUT_DIM)
                      + 2 * (HIDDEN * ENC_PAD + OUT_DIM * HIDDEN) + 4 * HIDDEN)

    out_t = pl.pallas_call(
        mlp_mixer_kernel,
        out_shape=jax.ShapeDtypeStruct((OUT_DIM, n_pad), jnp.float32),
        grid_spec=pltpu.PrefetchScalarGridSpec(
            num_scalar_prefetch=0,
            grid=(num_tiles,),
            in_specs=[
                pl.BlockSpec((IN_DIM, tn), lambda i: (0, i)),
                pl.BlockSpec((HIDDEN, ENC_PAD), lambda i: (0, 0)),
                pl.BlockSpec((HIDDEN, 1), lambda i: (0, 0)),
                pl.BlockSpec((OUT_DIM, HIDDEN), lambda i: (0, 0)),
            ],
            out_specs=pl.BlockSpec((OUT_DIM, tn), lambda i: (0, i)),
        ),
        compiler_params=pltpu.CompilerParams(
            dimension_semantics=("parallel",),          # shards steps across TCs on v7x
            vmem_limit_bytes=32 * 1024 * 1024),
        cost_estimate=pl.CostEstimate(flops=flops,
                                      transcendentals=transcendentals,
                                      bytes_accessed=bytes_accessed),
    )(x_t, w0t, b0c, w1t)

    return out_t[:, :N].T                               # back to (N, OUT_DIM)


# ---- pure-JAX reference (mirrors the PyTorch code exactly, full f32) ----------
def positional_encoding_ref(positions, freqs):
    freq_bands = 2.0 ** jnp.arange(freqs, dtype=jnp.float32)
    pts = (positions[..., None] * freq_bands).reshape(
        positions.shape[:-1] + (freqs * positions.shape[-1],))
    return jnp.concatenate([jnp.sin(pts), jnp.cos(pts)], axis=-1)


def mlp_mixer_reference(x, w0, b0, w1):
    h = jnp.concatenate([x, positional_encoding_ref(x, PE)], axis=-1)
    h = jnp.dot(h, w0, precision=jax.lax.Precision.HIGHEST) + b0   # layer 0
    h = jnp.maximum(h, 0.0)                                        # relu
    return jnp.dot(h, w1, precision=jax.lax.Precision.HIGHEST)     # layer 1


# ---- main ---------------------------------------------------------------------
if __name__ == "__main__":
    key = jax.random.PRNGKey(0)
    k_w0, k_b0, k_w1, k_x = jax.random.split(key, 4)

    in_dim_pe = ENC_DIM  # 20, matches the torch module's self.in_dim

    # Deterministic init (same scheme as torch.nn.Linear: U(-1/sqrt(fan_in), +))
    bound0 = 1.0 / math.sqrt(in_dim_pe)
    w0 = jax.random.uniform(k_w0, (in_dim_pe, HIDDEN), jnp.float32, -bound0, bound0)
    b0 = jax.random.uniform(k_b0, (HIDDEN,), jnp.float32, -bound0, bound0)
    bound1 = 1.0 / math.sqrt(HIDDEN)
    w1 = jax.random.uniform(k_w1, (HIDDEN, OUT_DIM), jnp.float32, -bound1, bound1)

    # N exercises both a multi-step grid (2 balanced tiles of 2304) and the
    # ragged-N padding path, while staying small.
    N = 4500
    x = jax.random.uniform(k_x, (N, IN_DIM), jnp.float32, -1.0, 1.0)

    out = jax.block_until_ready(mlp_mixer_forward(x, w0, b0, w1))
    ref = mlp_mixer_reference(x, w0, b0, w1)

    assert out.shape == (N, OUT_DIM)
    # bf16 MXU operands (f32 accumulation) => loosened tolerance vs the f32 ref.
    assert jnp.allclose(out, ref, atol=2e-2, rtol=2e-2), "mismatch vs reference"

    print("KERNEL_OK")
</pallas_src>

<mosaic_0001>
module attributes {stable_mosaic.version = 11 : i64} {
  func.func @mlp_mixer_kernel(%arg0: i32, %arg1: memref<4x2304xf32, #tpu.memory_space<vmem>>, %arg2: memref<32x24xbf16, #tpu.memory_space<vmem>>, %arg3: memref<32x1xf32, #tpu.memory_space<vmem>>, %arg4: memref<16x32xbf16, #tpu.memory_space<vmem>>, %arg5: memref<16x2304xf32, #tpu.memory_space<vmem>>) attributes {dimension_semantics = [#tpu.dimension_semantics<parallel>], iteration_bounds = array<i64: 2>, scalar_prefetch = 0 : i64, scratch_operands = 0 : i64, tpu.core_type = #tpu.core_type<tc>, window_params = [{transform_indices = @transform_0, window_bounds = array<i64: 4, 2304>}, {pipeline_mode = #tpu.pipeline_mode<synchronous>, transform_indices = @transform_1, window_bounds = array<i64: 32, 24>}, {pipeline_mode = #tpu.pipeline_mode<synchronous>, transform_indices = @transform_2, window_bounds = array<i64: 32, 1>}, {pipeline_mode = #tpu.pipeline_mode<synchronous>, transform_indices = @transform_3, window_bounds = array<i64: 16, 32>}, {transform_indices = @transform_4, window_bounds = array<i64: 16, 2304>}]} {
    %c0 = arith.constant 0 : index
    %c0_0 = arith.constant 0 : index
    %0 = vector.load %arg1[%c0, %c0_0] : memref<4x2304xf32, #tpu.memory_space<vmem>>, vector<4x2304xf32>
    %1 = math.sin %0 : vector<4x2304xf32>
    %2 = math.cos %0 : vector<4x2304xf32>
    %cst = arith.constant 2.000000e+00 : f32
    %3 = vector.broadcast %cst : f32 to vector<4x2304xf32>
    %4 = arith.mulf %0, %3 : vector<4x2304xf32>
    %5 = math.sin %4 : vector<4x2304xf32>
    %6 = math.cos %4 : vector<4x2304xf32>
    %cst_1 = arith.constant 0.000000e+00 : f32
    %7 = vector.broadcast %cst_1 : f32 to vector<4x2304xf32>
    %8 = tpu.concatenate %1, %2, %5, %6, %0, %7 in 0 : vector<4x2304xf32>, vector<4x2304xf32>, vector<4x2304xf32>, vector<4x2304xf32>, vector<4x2304xf32>, vector<4x2304xf32> -> vector<24x2304xf32>
    %c0_2 = arith.constant 0 : index
    %c0_3 = arith.constant 0 : index
    %9 = vector.load %arg2[%c0_2, %c0_3] : memref<32x24xbf16, #tpu.memory_space<vmem>>, vector<32x24xbf16>
    %10 = arith.truncf %8 : vector<24x2304xf32> to vector<24x2304xbf16>
    %cst_4 = arith.constant dense<0.000000e+00> : vector<32x2304xf32>
    %11 = tpu.matmul %9, %10, %cst_4 {dimension_numbers = #tpu.dot_dimension_numbers<[1], [0], [0], [1], [0, 0, 1, 1], [], []>} : vector<32x24xbf16>, vector<24x2304xbf16>, vector<32x2304xf32> -> vector<32x2304xf32>
    %c0_5 = arith.constant 0 : index
    %c0_6 = arith.constant 0 : index
    %12 = vector.load %arg3[%c0_5, %c0_6] : memref<32x1xf32, #tpu.memory_space<vmem>>, vector<32x1xf32>
    %13 = vector.broadcast %12 : vector<32x1xf32> to vector<32x2304xf32>
    %14 = arith.addf %11, %13 : vector<32x2304xf32>
    %cst_7 = arith.constant 0.000000e+00 : f32
    %15 = vector.broadcast %cst_7 : f32 to vector<32x2304xf32>
    %16 = arith.maximumf %14, %15 : vector<32x2304xf32>
    %c0_8 = arith.constant 0 : index
    %c0_9 = arith.constant 0 : index
    %17 = vector.load %arg4[%c0_8, %c0_9] : memref<16x32xbf16, #tpu.memory_space<vmem>>, vector<16x32xbf16>
    %18 = arith.truncf %16 : vector<32x2304xf32> to vector<32x2304xbf16>
    %cst_10 = arith.constant dense<0.000000e+00> : vector<16x2304xf32>
    %19 = tpu.matmul %17, %18, %cst_10 {dimension_numbers = #tpu.dot_dimension_numbers<[1], [0], [0], [1], [0, 0, 1, 1], [], []>} : vector<16x32xbf16>, vector<32x2304xbf16>, vector<16x2304xf32> -> vector<16x2304xf32>
    %c0_11 = arith.constant 0 : index
    %c0_12 = arith.constant 0 : index
    %20 = vector.load %arg5[%c0_11, %c0_12] : memref<16x2304xf32, #tpu.memory_space<vmem>>, vector<16x2304xf32>
    tpu.vector_store %arg5[%c0_11, %c0_12], %19 {strides = array<i32>} : memref<16x2304xf32, #tpu.memory_space<vmem>>, vector<16x2304xf32>,
    return
  }
  func.func @transform_0(%arg0: i32) -> (i32, i32) {
    %c0_i32 = arith.constant 0 : i32
    %c0_i32_0 = arith.constant 0 : i32
    return %c0_i32, %arg0 : i32, i32
  }
  func.func @transform_1(%arg0: i32) -> (i32, i32) {
    %c0_i32 = arith.constant 0 : i32
    %c0_i32_0 = arith.constant 0 : i32
    %c0_i32_1 = arith.constant 0 : i32
    return %c0_i32, %c0_i32_0 : i32, i32
  }
  func.func @transform_2(%arg0: i32) -> (i32, i32) {
    %c0_i32 = arith.constant 0 : i32
    %c0_i32_0 = arith.constant 0 : i32
    %c0_i32_1 = arith.constant 0 : i32
    return %c0_i32, %c0_i32_0 : i32, i32
  }
  func.func @transform_3(%arg0: i32) -> (i32, i32) {
    %c0_i32 = arith.constant 0 : i32
    %c0_i32_0 = arith.constant 0 : i32
    %c0_i32_1 = arith.constant 0 : i32
    return %c0_i32, %c0_i32_0 : i32, i32
  }
  func.func @transform_4(%arg0: i32) -> (i32, i32) {
    %c0_i32 = arith.constant 0 : i32
    %c0_i32_0 = arith.constant 0 : i32
    return %c0_i32, %arg0 : i32, i32
  }
}

</mosaic_0001>

<bundles_post_ra>
// kernel: tpu_custom_call.1
= control target key start
LH: loop header
LB: loop body
LE: loop exit
PB: predicated region body
PF: predicated region fallthrough
CT: control target
= control target key end

     0   :  { %9 = vsyncpa [#allocation3], 0  ;;  %s10963_s0 = inlined_call_operand.hbm [shape: f32[4,4608], index: 0, kind: input, shape index: {}]   ;;  %s10964_s1 = inlined_call_operand.vmem [shape: bf16[32,24], index: 1, kind: input, shape index: {}]   ;;  %s10965_s2 = inlined_call_operand.vmem [shape: f32[32,1], index: 2, kind: input, shape index: {}]   ;;  %s10966_s3 = inlined_call_operand.vmem [shape: bf16[16,32], index: 3, kind: input, shape index: {}]   ;;  %s10967_s4 = inlined_call_operand.hbm [shape: f32[16,4608], index: 4, kind: output, shape index: {}]  }
   0x1   :  { %11 = vsyncpa [#allocation3 + $0x1], 0 }
   0x2   :  { %12 = vsyncpa [#allocation4], 0 }
   0x3   :  { %14 = vsyncpa [#allocation4 + $0x1], 0  ;;  %s7503_s15 = smov 0   ;;  %s7505_s16 = smov 0  }
   0x4   :  { %s7507_s17 = smov 0   ;;  %s7509_s18 = smov 0  }
   0x5 LB: > { %s7524_s19 = sadd.s32 4294967295, %s7466_s18   ;;  %s7114_s20 = sadd.s32 4294967294, %s7466_s18   ;;  %s7466_s18 = sphi %s7509_s18, %s11113_s18   ;;  %s7462_s17 = sphi %s7507_s17, %s11112_s17   ;;  %s7458_s16 = sphi %s7505_s16, %s11111_s16   ;;  %s7454_s15 = sphi %s7503_s15, %s11110_s15  }
   0x6   : > { %s7528_s21 = sadd.s32 1, %s7466_s18   ;;  %s27_s22 = sadd.s32 1, %s7462_s17 }
   0x7   : > { %s24_s23 = ssub.s32 %s7466_s18, %s7528_s21  ;;  %p34_p0 = scmp.ne.s32.totalorder %s7462_s17, %s7458_s16 }
   0x8   : > { %p25_p1 = scmp.eq.s32.totalorder %s24_s23, 0  ;;  %p35_p2 = scmp.eq.s32.totalorder %s7466_s18, 0 }
   0x9   : > { %p40_p3 = scmp.ne.s32.totalorder %s7458_s16, %s7454_s15  ;;  %p41_p4 = scmp.eq.s32.totalorder %s7524_s19, 0 }
   0xa   : > { %s7540_s24 = scalar_select %p25_p1, %s7462_s17, %s27_s22  }
   0xb   : > { %p36_p5 = por %p35_p2, %p34_p0  ;;  %p7542_p6 = por %p41_p4, %p40_p3 }
   0xc   : > { %p127_p7 = scmp.eq.s32.totalorder %s7524_s19, 1  ;;  %p133_p8 = scmp.eq.s32.totalorder %s7114_s20, 1 }
   0xd   : > { %p7116_p9 = scmp.ge.s32.totalorder %s7466_s18, 2  ;;  %p7316_p10 = scmp.lt.s32.totalorder %s7466_s18, 2 }
   0xe   : > { %p7549_p11 = por %p127_p7, %p34_p0  ;;  %p7553_p12 = por %p133_p8, %p40_p3 }
   0xf   : > { %s162_s28 = sand.u32 1, %s7462_s17   ;;  %s7296_s29 = smul.u32 72, %s7466_s18 }
  0x10   : > { %s7301_s30 = smul.u32 72, %s162_s28  ;;  %p7562_p13 = pnand %p7316_p10, %p36_p5 }
  0x11   : > { %s171_s7 = scalar_lea.hbm %s10963_s0, %s7296_s29  ;;  %s163_s12 = scalar_lea.sflag [#allocation3], %s162_s28 }
  0x12   : > { %s173_s9 = sshll.u32 %s171_s7, 4  ;;  %s166_s10 = scalar_lea.vmem [#allocation2], %s7301_s30  ;;  %s174_s9 = int_to_ptr.hbm [resolvable:$true] %s173_s9 }
  0x13   : > { %s175_s11 = sshll.u32 %s166_s10, 4  ;;  %s7370_s13 = sshra.s32 %s174_s9, 4  ;;  %s176_s11 = int_to_ptr.vmem [resolvable:$true] %s175_s11  ;;  %s7371_s13 = int_to_ptr.hbm [resolvable:$true] %s7370_s13 }
  0x14   : > { %s7372_s14 = scalar_lea.hbm %s7371_s13, 72  ;;  %p7374_p1 = pneg %p7562_p13 }
  0x15   : > { %p7373_p0 = scmp.ne.s32.totalorder %s7371_s13, %s7372_s14  ;;  %s7377_s23 = scalar_lea.hbm %s10963_s0, 144 }
  0x16   : > { %p7378_p4 = scmp.lt.s32.totalorder %s7371_s13, %s10963_s0  ;;  %p7379_p5 = scmp.lt.s32.totalorder %s7377_s23, %s7372_s14 }
  0x17   : > { %p7375_p2 = pnand %p7374_p1, %p7373_p0 }
  0x18   : > { %p7380_p7 = por %p7379_p5, %p7378_p4 }
  0x19   : > { %p7376_p3 = pneg %p7375_p2 }
  0x1b   : > { %p7381_p8 = pnand %p7380_p7, %p7376_p3 }
  0x1d   : > { %7384 = shalt.err (!%p7381_p8)
}
  0x1e   : > { %7311 = dma.hbm_to_vmem [thread:$0]  (!%p7562_p13), %s174_s9, 1152, %s176_s11, %s163_s12  }
  0x1f   : > { %p7118_p10 = scmp.ge.s32.totalorder %s7466_s18, 1  ;;  %p180_p0 = scmp.lt.s32.totalorder %s7466_s18, 3 }
  0x21   : > { %p181_p1 = pnand %p7118_p10, %p180_p0 }
  0x23   : > { %184 = sbr.rel (%p181_p1) target bundleno = 1256 (0x4e8), region = 36 }
  0x28   : > { %s7579_s28 = sand.u32 1, %s7458_s16  }
  0x29   : > { %s7302_s30 = smul.u32 72, %s7579_s28  ;;  %s187_s6 = scalar_lea.sflag [#allocation3], %s7579_s28 }
  0x2b   : > { %s7583_s7 = scalar_lea.vmem [#allocation2], %s7302_s30 }
  0x2c   : > { %7445 = dma.done.wait (%p7542_p6), %s187_s6, 1152  }
  0x2d   : > { %7447 = vsyncadd (%p7542_p6), %s187_s6, 4294966144  ;;  %v10983_v0 = vmov 0   ;;  %v7592_v1 = vld [vmem:[%s7583_s7 + $0x8] sm:$0xff]  ;;  %v10969_v24 = vmov 683565275   ;;  %s7303_s13 = smul.u32 288, %s7579_s28 }
  0x2e   : > { %7361 = vset.pattern.permute.xlu1 %v10983_v0  ;;  %7360 = vset.pattern.permute.xlu0 %v10983_v0  ;;  %v7595_v2 = vld [vmem:[%s7583_s7 + $0x28] sm:$0xff]  ;;  %v383_v3 = vand.u32 2147483647, %v7592_v1  ;;  %v386_v4 = vand.u32 2139095040, %v7592_v1  ;;  %v10979_v26 = vmov 2475754826  }
  0x2f   : > { %v1003_v5 = vand.u32 2147483647, %v7595_v2  ;;  %v1006_v6 = vand.u32 2139095040, %v7595_v2  ;;  %v10977_v28 = vmov 2131351028   ;;  %s10887_s14 = scalar_lea.vmem [#allocation5], %s7303_s13 }
  0x30   : > { %v387_v7 = vshrl.u32 %v386_v4, 23  ;;  %v390_v8 = vand.u32 8388607, %v383_v3  ;;  %v10975_v30 = vmov 2102212464   ;;  %s7300_s20 = smul.u32 144, %s7524_s19 }
  0x31   : > { %v1007_v9 = vshrl.u32 %v1006_v6, 23  ;;  %v1010_v13 = vand.u32 8388607, %v1003_v5  ;;  %v10973_v32 = vmov 920167782   ;;  %s7038_s5 = sshll.u32 %s10887_s14, 4  ;;  %s7039_s5 = int_to_ptr.vmem [resolvable:$true] %s7038_s5 }
  0x32   : > { %v7122_v10 = vadd.s32 4294967169, %v387_v7  ;;  %v391_v11 = vor.u32 8388608, %v390_v8  ;;  %v10971_v41 = vmov 1326507024   ;;  %s7037_s29 = scalar_lea.hbm %s10967_s4, %s7300_s20  ;;  %s7026_s6 = scalar_lea.sflag [#allocation4], %s7579_s28 }
  0x33   : > { %v7134_v12 = vadd.s32 4294967169, %v1007_v9  ;;  %v1011_v18 = vor.u32 8388608, %v1010_v13  ;;  %s7040_s30 = sshll.u32 %s7037_s29, 4  ;;  %s7420_s9 = scalar_lea.hbm %s10967_s4, 576  ;;  %s7041_s30 = int_to_ptr.hbm [resolvable:$true] %s7040_s30 }
  0x34   : > { %v393_v14 = vadd.s32 1, %v7122_v10  ;;  %v7605_v17 = vshll.u32 %v391_v11, 8 }
  0x35   : > { %v1013_v15 = vadd.s32 1, %v7134_v12  ;;  %v7617_v35 = vshll.u32 %v1011_v18, 8 }
  0x36   : > { %vm394_vm0 = vcmp.gt.s32.totalorder %v393_v14, 0  ;;  %v432_v34 = vand.u32 65535, %v7605_v17  ;;  %v433_v39 = vshrl.u32 %v7605_v17, 16 }
  0x37   : > { %v395_v16 = vsel %vm394_vm0, %v393_v14, 0  ;;  %vm1014_vm1 = vcmp.gt.s32.totalorder %v1013_v15, 0 }
  0x38   : > { %v397_v19 = vand.u32 31, %v395_v16  ;;  %v1015_v20 = vsel %vm1014_vm1, %v1013_v15, 0  ;;  %v7607_v21 = vshrl.u32 %v395_v16, 5 }
  0x39   : > { %v7609_v22 = vand.u32 31, %v1015_v20  ;;  %v7637_v52 = vshrl.u32 %v1015_v20, 5 }
  0x3a   : > { %v398_v23 = vsub.s32 32, %v397_v19  ;;  %v400_v25 = vshll.u32 %v10969_v24, %v397_v19  ;;  %v403_v27 = vshll.u32 %v10979_v26, %v397_v19  ;;  %v406_v29 = vshll.u32 %v10977_v28, %v397_v19 }
  0x3b   : > { %v409_v31 = vshll.u32 %v10975_v30, %v397_v19  ;;  %v412_v33 = vshll.u32 %v10973_v32, %v397_v19  ;;  %vm415_vm2 = vcmp.lt.s32.totalorder %v7607_v21, 1  ;;  %vm418_vm3 = vcmp.lt.s32.totalorder %v7607_v21, 4 }
  0x3c   : > { %v401_v36 = vshrl.u32 %v10979_v26, %v398_v23  ;;  %v404_v37 = vshrl.u32 %v10977_v28, %v398_v23  ;;  %v407_v38 = vshrl.u32 %v10975_v30, %v398_v23  ;;  %v410_v40 = vshrl.u32 %v10973_v32, %v398_v23 }
  0x3d   : > { %v413_v42 = vshrl.u32 %v10971_v41, %v398_v23  ;;  %v7628_v46 = vsub.s32 32, %v7609_v22  ;;  %v399_v47 = vshrl.u32 %v10969_v24, %v398_v23  ;;  %vm417_vm4 = vcmp.lt.s32.totalorder %v7607_v21, 3 }
  0x3e   : > { %v402_v43 = vor.u32 %v401_v36, %v400_v25  ;;  %v405_v44 = vor.u32 %v404_v37, %v403_v27  ;;  %v408_v45 = vor.u32 %v407_v38, %v406_v29  ;;  %v411_v48 = vor.u32 %v410_v40, %v409_v31 }
  0x3f   : > { %v414_v49 = vor.u32 %v413_v42, %v412_v33  ;;  %vm416_vm5 = vcmp.lt.s32.totalorder %v7607_v21, 2  ;;  %v1020_v55 = vshll.u32 %v10969_v24, %v7609_v22  ;;  %v1023_v56 = vshll.u32 %v10979_v26, %v7609_v22 }
  0x40   : > { %v423_v50 = vsel %vm415_vm2, %v402_v43, %v405_v44  ;;  %v427_v51 = vsel %vm415_vm2, %v405_v44, %v408_v45  ;;  %v424_v53 = vsel %vm418_vm3, %v411_v48, 920167782  ;;  %v420_v57 = vsel %vm418_vm3, %v408_v45, 2102212464 }
  0x41   : > { %v428_v54 = vsel %vm418_vm3, %v414_v49, 1326507024  ;;  %v425_v58 = vsel %vm417_vm4, %v408_v45, %v424_v53  ;;  %v1021_v60 = vshrl.u32 %v10979_v26, %v7628_v46  ;;  %v419_v61 = vsel %vm415_vm2, %v399_v47, %v402_v43 }
  0x42   : > { %v429_v59 = vsel %vm417_vm4, %v411_v48, %v428_v54  ;;  %v426_v62 = vsel %vm416_vm5, %v423_v50, %v425_v58  ;;  %v1024_v4 = vshrl.u32 %v10977_v28, %v7628_v46  ;;  %v421_v10 = vsel %vm417_vm4, %v405_v44, %v420_v57 }
  0x43   : > { %v430_v63 = vsel %vm416_vm5, %v427_v51, %v429_v59  ;;  %v456_v8 = vand.u32 65535, %v426_v62  ;;  %v457_v9 = vshrl.u32 %v426_v62, 16  ;;  %v7665_v11 = vor.u32 %v1021_v60, %v1020_v55 }
  0x44   : > { %v434_v6 = vand.u32 65535, %v430_v63  ;;  %v435_v7 = vshrl.u32 %v430_v63, 16  ;;  %v7667_v12 = vor.u32 %v1024_v4, %v1023_v56  ;;  %v1026_v13 = vshll.u32 %v10977_v28, %v7609_v22 }
  0x45   : > { %v1027_v18 = vshrl.u32 %v10975_v30, %v7628_v46  ;;  %v458_v20 = vmul.u32 %v456_v8, %v432_v34  ;;  %v459_v23 = vmul.u32 %v457_v9, %v432_v34  ;;  %v460_v25 = vmul.u32 %v456_v8, %v433_v39 }
  0x46   : > { %v436_v14 = vmul.u32 %v434_v6, %v432_v34  ;;  %v437_v15 = vmul.u32 %v435_v7, %v432_v34  ;;  %v438_v16 = vmul.u32 %v434_v6, %v433_v39  ;;  %v439_v19 = vmul.u32 %v435_v7, %v433_v39 }
  0x47   : > { %v461_v33 = vmul.u32 %v457_v9, %v433_v39  ;;  %v462_v37 = vshll.u32 %v459_v23, 16  ;;  %v463_v38 = vshrl.u32 %v459_v23, 16  ;;  %v464_v40 = vshll.u32 %v460_v25, 16 }
  0x48   : > { %v440_v27 = vshll.u32 %v437_v15, 16  ;;  %v441_v29 = vshrl.u32 %v437_v15, 16  ;;  %v442_v31 = vshll.u32 %v438_v16, 16  ;;  %v443_v36 = vshrl.u32 %v438_v16, 16 }
  0x49   : > { %v465_v43 = vshrl.u32 %v460_v25, 16  ;;  %v1029_v44 = vshll.u32 %v10975_v30, %v7609_v22  ;;  %vm466_vm7 = vc.u32 %v458_v20, %v462_v37  ;;  %v468_v47 = vadd.s32 %v462_v37, %v458_v20 }
  0x4a   : > { %vm444_vm6 = vc.u32 %v436_v14, %v440_v27  ;;  %v446_v42 = vadd.s32 %v440_v27, %v436_v14  ;;  %v1030_v34 = vshrl.u32 %v10973_v32, %v7628_v46  ;;  %v467_v39 = vsel %vm466_vm7, 1, %v10983_v0 }
  0x4b   : > { %v445_v45 = vsel %vm444_vm6, 1, %v10983_v0  ;;  %v1032_v49 = vshll.u32 %v10973_v32, %v7609_v22  ;;  %v469_v51 = vadd.s32 %v467_v39, %v461_v33  ;;  %vm470_vm9 = vc.u32 %v468_v47, %v464_v40 }
  0x4c   : > { %v447_v48 = vadd.s32 %v445_v45, %v439_v19  ;;  %vm448_vm8 = vc.u32 %v446_v42, %v442_v31  ;;  %v1028_v53 = vor.u32 %v1027_v18, %v1026_v13  ;;  %v471_v55 = vsel %vm470_vm9, 1, %v10983_v0 }
  0x4d   : > { %v449_v50 = vsel %vm448_vm8, 1, %v10983_v0  ;;  %v1031_v56 = vor.u32 %v1030_v34, %v1029_v44  ;;  %v1033_v57 = vshrl.u32 %v10971_v41, %v7628_v46  ;;  %v7685_v58 = vadd.s32 %v468_v47, %v464_v40 }
  0x4e   : > { %v451_v54 = vadd.s32 %v449_v50, %v447_v48  ;;  %v473_v59 = vadd.s32 %v471_v55, %v469_v51  ;;  %vm1035_vm10 = vcmp.lt.s32.totalorder %v7637_v52, 1  ;;  %vm1037_vm11 = vcmp.lt.s32.totalorder %v7637_v52, 3 }
  0x4f   : > { %v1034_v60 = vor.u32 %v1033_v57, %v1032_v49  ;;  %vm1036_vm12 = vcmp.lt.s32.totalorder %v7637_v52, 2  ;;  %vm1038_vm13 = vcmp.lt.s32.totalorder %v7637_v52, 4  ;;  %v422_v62 = vsel %vm416_vm5, %v419_v61, %v421_v10 }
  0x50   : > { %v452_v22 = vadd.s32 %v451_v54, %v441_v29  ;;  %v474_v63 = vadd.s32 %v473_v59, %v463_v38  ;;  %v1043_v4 = vsel %vm1035_vm10, %v7665_v11, %v7667_v12  ;;  %v1044_v6 = vsel %vm1038_vm13, %v1031_v56, 920167782 }
  0x51   : > { %v1045_v8 = vsel %vm1037_vm11, %v1028_v53, %v1044_v6  ;;  %v1047_v9 = vsel %vm1035_vm10, %v7667_v12, %v1028_v53  ;;  %v1053_v21 = vshrl.u32 %v7617_v35, 16  ;;  %v1048_v13 = vsel %vm1038_vm13, %v1034_v60, 1326507024 }
  0x52   : > { %v7699_v7 = vadd.s32 %v452_v22, %v443_v36  ;;  %v475_v61 = vadd.s32 %v474_v63, %v465_v43  ;;  %v1046_v10 = vsel %vm1036_vm12, %v1043_v4, %v1045_v8  ;;  %v1052_v14 = vand.u32 65535, %v7617_v35 }
  0x53   : > { %v476_v15 = vmul.u32 %v7605_v17, %v422_v62  ;;  %v1049_v16 = vsel %vm1037_vm11, %v1031_v56, %v1048_v13  ;;  %v1076_v18 = vand.u32 65535, %v1046_v10  ;;  %v1077_v23 = vshrl.u32 %v1046_v10, 16 }
  0x54   : > { %vm478_vm14 = vc.u32 %v7699_v7, %v7685_v58  ;;  %v479_v19 = vadd.s32 1, %v475_v61  ;;  %v1050_v20 = vsel %vm1036_vm12, %v1047_v9, %v1049_v16  ;;  %v1019_v33 = vshrl.u32 %v10969_v24, %v7628_v46 }
  0x55   : > { %v1054_v25 = vand.u32 65535, %v1050_v20  ;;  %v1055_v27 = vshrl.u32 %v1050_v20, 16  ;;  %v1080_v29 = vmul.u32 %v1076_v18, %v1053_v21  ;;  %v1078_v17 = vmul.u32 %v1076_v18, %v1052_v14 }
  0x56   : > { %v480_v31 = vsel %vm478_vm14, %v479_v19, %v475_v61  ;;  %v1079_v36 = vmul.u32 %v1077_v23, %v1052_v14  ;;  %v1081_v43 = vmul.u32 %v1077_v23, %v1053_v21  ;;  %v1039_v49 = vsel %vm1035_vm10, %v1019_v33, %v7665_v11 }
  0x57   : > { %v481_v37 = vadd.s32 %v480_v31, %v476_v15  ;;  %v1056_v38 = vmul.u32 %v1054_v25, %v1052_v14  ;;  %v1057_v40 = vmul.u32 %v1055_v27, %v1052_v14  ;;  %v1058_v42 = vmul.u32 %v1054_v25, %v1053_v21 }
  0x58   : > { %v1082_v44 = vshll.u32 %v1079_v36, 16  ;;  %v1084_v45 = vshll.u32 %v1080_v29, 16  ;;  %v1059_v34 = vmul.u32 %v1055_v27, %v1053_v21  ;;  %v7725_v46 = vmul.f32 2.0, %v7592_v1 }
  0x59   : > { %v482_v47 = vadd.s32 536870912, %v481_v37  ;;  %v1060_v48 = vshll.u32 %v1057_v40, 16  ;;  %v1062_v39 = vshll.u32 %v1058_v42, 16  ;;  %v1040_v56 = vsel %vm1038_vm13, %v1028_v53, 2102212464 }
  0x5a   : > { %vm1086_vm15 = vc.u32 %v1078_v17, %v1082_v44  ;;  %v1088_v50 = vadd.s32 %v1082_v44, %v1078_v17  ;;  %v1061_v22 = vshrl.u32 %v1057_v40, 16  ;;  %v1083_v63 = vshrl.u32 %v1079_v36, 16 }
  0x5b   : > { %v7727_v51 = vshrl.u32 %v482_v47, 30  ;;  %vm1064_vm0 = vc.u32 %v1056_v38, %v1060_v48  ;;  %v1066_v54 = vadd.s32 %v1060_v48, %v1056_v38  ;;  %v1087_v55 = vsel %vm1086_vm15, 1, %v10983_v0 }
  0x5c   : > { %v1065_v57 = vsel %vm1064_vm0, 1, %v10983_v0  ;;  %v1089_v59 = vadd.s32 %v1087_v55, %v1081_v43  ;;  %vm1090_vm1 = vc.u32 %v1088_v50, %v1084_v45  ;;  %v3176_v6 = vand.u32 2139095040, %v7725_v46 }
  0x5d   : > { %v484_v11 = vshll.u32 %v7727_v51, 30  ;;  %v1067_v60 = vadd.s32 %v1065_v57, %v1059_v34  ;;  %vm1068_vm2 = vc.u32 %v1066_v54, %v1062_v39  ;;  %v1091_v4 = vsel %vm1090_vm1, 1, %v10983_v0 }
  0x5e   : > { %v1069_v62 = vsel %vm1068_vm2, 1, %v10983_v0  ;;  %v1041_v53 = vsel %vm1037_vm11, %v7667_v12, %v1040_v56  ;;  %v1063_v9 = vshrl.u32 %v1058_v42, 16  ;;  %v1085_v61 = vshrl.u32 %v1080_v29, 16 }
  0x5f   : > { %v485_v8 = vsub.s32 %v481_v37, %v484_v11  ;;  %v1071_v21 = vadd.s32 %v1069_v62, %v1067_v60  ;;  %v1093_v10 = vadd.s32 %v1091_v4, %v1089_v59  ;;  %v3177_v13 = vshrl.u32 %v3176_v6, 23 }
  0x60   : > { %v7740_v16 = vadd.s32 %v1088_v50, %v1084_v45  ;;  %v1042_v18 = vsel %vm1036_vm12, %v1039_v49, %v1041_v53  ;;  %v477_v52 = vadd.s32 %v7685_v58, %v7699_v7  ;;  %v3173_v42 = vand.u32 2147483647, %v7725_v46 }
  0x61   : > { %vm486_vm3 = vcmp.lt.s32.totalorder %v485_v8, 0  ;;  %v487_v14 = vsub.s32 0, %v485_v8  ;;  %v1072_v15 = vadd.s32 %v1071_v21, %v1061_v22  ;;  %v1094_v19 = vadd.s32 %v1093_v10, %v1083_v63 }
  0x62   : > { %v7176_v20 = vadd.s32 4294967169, %v3177_v13  ;;  %v1096_v29 = vmul.u32 %v7617_v35, %v1042_v18  ;;  %v507_v47 = vsub.s32 4, %v7727_v51  ;;  %vm7757_vm7 = vcmp.le.f32.partialorder %v383_v3, 0.7853982 }
  0x63   : > { %v488_v23 = vsel %vm486_vm3, %v487_v14, %v485_v8  ;;  %v7744_v25 = vadd.s32 %v1072_v15, %v1063_v9  ;;  %v1095_v12 = vadd.s32 %v1094_v19, %v1085_v61  ;;  %vm385_vm8 = vcmp.lt.s32.totalorder %v7592_v1, 0 }
  0x64   : > { %v489_v27 = vclz %v488_v23  ;;  %v3183_v31 = vadd.s32 1, %v7176_v20  ;;  %v3180_v50 = vand.u32 8388607, %v3173_v42  ;;  %v508_v56 = vsel %vm385_vm8, %v507_v47, %v7727_v51 }
  0x65   : > { %vm1098_vm4 = vc.u32 %v7744_v25, %v7740_v16  ;;  %v1099_v17 = vadd.s32 1, %v1095_v12  ;;  %v7777_v63 = vmul.f32 2.0, %v7595_v2  ;;  %v7783_v51 = vsel %vm7757_vm7, 0, %v508_v56 }
  0x66   : > { %v7123_v33 = vadd.s32 4294967294, %v489_v27  ;;  %vm3184_vm5 = vcmp.gt.s32.totalorder %v3183_v31, 0  ;;  %vm1005_vm15 = vcmp.lt.s32.totalorder %v7595_v2, 0  ;;  %vm7859_vm1 = vcmp.le.f32.partialorder %v1003_v5, 0.7853982 }
  0x67   : > { %v3185_v36 = vsel %vm3184_vm5, %v3183_v31, 0  ;;  %v1100_v37 = vsel %vm1098_vm4, %v1099_v17, %v1095_v12  ;;  %v7807_v12 = vld [vmem:[%s7583_s7] sm:$0xff]  ;;  %vm526_vm3 = vweird.f32 %v7592_v1 }
  0x68   : > { %vm7124_vm6 = vcmp.lt.s32.totalorder %v7123_v33, 0  ;;  %v1101_v40 = vadd.s32 %v1100_v37, %v1096_v29  ;;  %v3187_v43 = vand.u32 31, %v3185_v36  ;;  %v7779_v4 = vshrl.u32 %v3185_v36, 5 }
  0x69   : > { %v492_v38 = vsel %vm7124_vm6, 0, %v7123_v33  ;;  %v527_v36 = vadd.s32 3, %v7783_v51 }
  0x6a   : > { %v493_v44 = vsub.s32 32, %v492_v38  ;;  %v494_v45 = vshll.u32 %v485_v8, %v492_v38  ;;  %v497_v35 = vsub.s32 4294967266, %v492_v38  ;;  %v1102_v34 = vadd.s32 536870912, %v1101_v40 }
  0x6b   : > { %v7753_v49 = vsub.s32 32, %v3187_v43  ;;  %v3193_v57 = vshll.u32 %v10979_v26, %v3187_v43  ;;  %v3196_v11 = vshll.u32 %v10977_v28, %v3187_v43  ;;  %v3181_v8 = vor.u32 8388608, %v3180_v50 }
  0x6c   : > { %v495_v48 = vshrl.u32 %v477_v52, %v493_v44  ;;  %v498_v39 = vadd.s32 127, %v497_v35  ;;  %v7762_v7 = vshrl.u32 %v1102_v34, 30  ;;  %v3199_v53 = vshll.u32 %v10975_v30, %v3187_v43 }
  0x6d   : > { %v3194_v59 = vshrl.u32 %v10977_v28, %v7753_v49  ;;  %v3197_v22 = vshrl.u32 %v10975_v30, %v7753_v49  ;;  %v3200_v61 = vshrl.u32 %v10973_v32, %v7753_v49  ;;  %v3202_v10 = vshll.u32 %v10973_v32, %v3187_v43 }
  0x6e   : > { %v496_v54 = vor.u32 %v495_v48, %v494_v45  ;;  %v499_v55 = vshll.u32 %v498_v39, 23  ;;  %v1104_v3 = vshll.u32 %v7762_v7, 30  ;;  %v3203_v15 = vshrl.u32 %v10971_v41, %v7753_v49 }
  0x6f   : > { %v7788_v21 = vor.u32 %v3194_v59, %v3193_v57  ;;  %v7795_v14 = vor.u32 %v3197_v22, %v3196_v11  ;;  %v3190_v19 = vshll.u32 %v10969_v24, %v3187_v43  ;;  %vm3205_vm10 = vcmp.lt.s32.totalorder %v7779_v4, 1 }
  0x70   : > { %v500_v60 = vor.u32 4788187, %v499_v55  ;;  %v503_v62 = vcvt.s32.f32 %v496_v54  ;;  %v7785_v6 = vsub.s32 %v1101_v40, %v1104_v3  ;;  %vm3208_vm11 = vcmp.lt.s32.totalorder %v7779_v4, 4 }
  0x71   : > { %v3191_v23 = vshrl.u32 %v10979_v26, %v7753_v49  ;;  %v3204_v27 = vor.u32 %v3203_v15, %v3202_v10  ;;  %vm3207_vm12 = vcmp.lt.s32.totalorder %v7779_v4, 3  ;;  %v3201_v33 = vor.u32 %v3200_v61, %v3199_v53 }
  0x72   : > { %v501_v9 = vand.u32 2147483647, %v500_v60  ;;  %vm1106_vm9 = vcmp.lt.s32.totalorder %v7785_v6, 0  ;;  %v1107_v13 = vsub.s32 0, %v7785_v6  ;;  %v7809_v17 = vshll.u32 %v3181_v8, 8 }
  0x73   : > { %vm3206_vm13 = vcmp.lt.s32.totalorder %v7779_v4, 2  ;;  %v3217_v52 = vsel %vm3205_vm10, %v7788_v21, %v7795_v14  ;;  %v3218_v37 = vsel %vm3208_vm11, %v3204_v27, 1326507024  ;;  %v231_v44 = vand.u32 2139095040, %v7807_v12 }
  0x74   : > { %v504_v18 = vmul.f32 %v503_v62, %v501_v9  ;;  %v1108_v20 = vsel %vm1106_vm9, %v1107_v13, %v7785_v6  ;;  %v3219_v43 = vsel %vm3207_vm12, %v3201_v33, %v3218_v37  ;;  %v1097_v35 = vadd.s32 %v7740_v16, %v7744_v25 }
  0x75   : > { %v1109_v29 = vclz %v1108_v20  ;;  %v3192_v47 = vor.u32 %v3191_v23, %v3190_v19  ;;  %v3796_v34 = vand.u32 2139095040, %v7777_v63  ;;  %v3214_v39 = vsel %vm3208_vm11, %v3201_v33, 920167782 }
  0x76   : > { %v505_v31 = vxor.u32 2147483648, %v504_v18  ;;  %v3220_v50 = vsel %vm3206_vm13, %v3217_v52, %v3219_v43  ;;  %v7838_v54 = vand.u32 3, %v527_v36  ;;  %v3222_v16 = vand.u32 65535, %v7809_v17 }
  0x77   : > { %v7135_v40 = vadd.s32 4294967294, %v1109_v29  ;;  %v7843_v25 = vshrl.u32 %v7809_v17, 16  ;;  %v3213_v11 = vsel %vm3205_vm10, %v3192_v47, %v7788_v21  ;;  %v3215_v22 = vsel %vm3207_vm12, %v7795_v14, %v3214_v39 }
  0x78   : > { %v506_v38 = vsel %vm385_vm8, %v505_v31, %v504_v18  ;;  %v3225_v60 = vshrl.u32 %v3220_v50, 16  ;;  %v3224_v9 = vand.u32 65535, %v3220_v50  ;;  %v1127_v10 = vsub.s32 4, %v7762_v7 }
  0x79   : > { %v7827_v45 = vsel %vm7757_vm7, %v7592_v1, %v506_v38  ;;  %vm7136_vm14 = vcmp.lt.s32.totalorder %v7135_v40, 0  ;;  %v228_v13 = vand.u32 2147483647, %v7807_v12  ;;  %v3216_v20 = vsel %vm3206_vm13, %v3213_v11, %v3215_v22 }
  0x7a   : > { %v511_v48 = vmul.f32 %v7827_v45, %v7827_v45  ;;  %v1112_v58 = vsel %vm7136_vm14, 0, %v7135_v40  ;;  %vm530_vm0 = vcmp.eq.s32.totalorder %v7838_v54, 0  ;;  %v3227_v31 = vmul.u32 %v3225_v60, %v3222_v16 }
  0x7b   : > { %v1113_v57 = vsub.s32 32, %v1112_v58  ;;  %v1114_v3 = vshll.u32 %v7785_v6, %v1112_v58  ;;  %v1117_v59 = vsub.s32 4294967266, %v1112_v58  ;;  %v232_v6 = vshrl.u32 %v231_v44, 23 }
  0x7c   : > { %v512_v55 = vmul.f32 -0.001358992, %v511_v48  ;;  %v519_v56 = vmul.f32 -0.00019511016, %v511_v48  ;;  %v7863_v29 = vshrl.u32 %v3796_v34, 23  ;;  %vm529_vm2 = vcmp.lt.s32.totalorder %v7838_v54, 2 }
  0x7d   : > { %v1115_v53 = vshrl.u32 %v1097_v35, %v1113_v57  ;;  %v1118_v61 = vadd.s32 127, %v1117_v59  ;;  %v3189_v52 = vshrl.u32 %v10969_v24, %v7753_v49  ;;  %v7869_v37 = vmul.u32 %v3224_v9, %v7843_v25 }
  0x7e   : > { %v513_v62 = vadd.f32 0.041655596, %v512_v55  ;;  %v520_v8 = vadd.f32 0.008332121, %v519_v56  ;;  %v3226_v40 = vmul.u32 %v3224_v9, %v3222_v16  ;;  %v3247_v43 = vshrl.u32 %v3216_v20, 16 }
  0x7f   : > { %v1116_v19 = vor.u32 %v1115_v53, %v1114_v3  ;;  %v1119_v27 = vshll.u32 %v1118_v61, 23  ;;  %vm533_vm4 = vcmp.eq.s32.totalorder %v7838_v54, 2  ;;  %v1128_v34 = vsel %vm1005_vm15, %v1127_v10, %v7762_v7 }
  0x80   : > { %v514_v15 = vmul.f32 %v513_v62, %v511_v48  ;;  %v521_v18 = vmul.f32 %v520_v8, %v511_v48  ;;  %v3229_v49 = vmul.u32 %v3225_v60, %v7843_v25  ;;  %v3230_v50 = vshll.u32 %v3227_v31, 16 }
  0x81   : > { %v1120_v5 = vor.u32 4788187, %v1119_v27  ;;  %v1123_v38 = vcvt.s32.f32 %v1116_v19  ;;  %v3246_v58 = vand.u32 65535, %v3216_v20  ;;  %v3209_v57 = vsel %vm3205_vm10, %v3189_v52, %v3192_v47 }
  0x82   : > { %v515_v33 = vadd.f32 -0.4999988, %v514_v15  ;;  %v522_v36 = vadd.f32 -0.16666654, %v521_v18  ;;  %v3232_v3 = vshll.u32 %v7869_v37, 16  ;;  %vm3234_vm5 = vc.u32 %v3226_v40, %v3230_v50 }
  0x83   : > { %v1121_v39 = vand.u32 2147483647, %v1120_v5  ;;  %v3236_v59 = vadd.s32 %v3230_v50, %v3226_v40  ;;  %v3249_v11 = vmul.u32 %v3247_v43, %v3222_v16  ;;  %v3210_v60 = vsel %vm3208_vm11, %v7795_v14, 2102212464 }
  0x84   : > { %v516_v44 = vmul.f32 %v515_v33, %v511_v48  ;;  %v523_v35 = vmul.f32 %v522_v36, %v511_v48  ;;  %v3235_v62 = vsel %vm3234_vm5, 1, %v10983_v0  ;;  %v3248_v47 = vmul.u32 %v3246_v58, %v3222_v16 }
  0x85   : > { %v1124_v48 = vmul.f32 %v1123_v38, %v1121_v39  ;;  %v3237_v53 = vadd.s32 %v3235_v62, %v3229_v49  ;;  %vm3238_vm6 = vc.u32 %v3236_v59, %v3232_v3  ;;  %v3250_v10 = vmul.u32 %v3246_v58, %v7843_v25 }
  0x86   : > { %v7877_v55 = vadd.f32 1.0, %v516_v44  ;;  %v524_v56 = vadd.f32 1.0, %v523_v35  ;;  %v3239_v61 = vsel %vm3238_vm6, 1, %v10983_v0  ;;  %v3211_v15 = vsel %vm3207_vm12, %v7788_v21, %v3210_v60 }
  0x87   : > { %v1125_v8 = vxor.u32 2147483648, %v1124_v48  ;;  %v3231_v16 = vshrl.u32 %v3227_v31, 16  ;;  %v3252_v18 = vshll.u32 %v3249_v11, 16  ;;  %v3241_v27 = vadd.s32 %v3239_v61, %v3237_v53 }
  0x88   : > { %v7883_v22 = vmul.f32 %v524_v56, %v7827_v45  ;;  %v534_v7 = vxor.u32 2147483648, %v7877_v55  ;;  %v3251_v33 = vmul.u32 %v3247_v43, %v7843_v25  ;;  %v7914_v52 = vsel %vm7859_vm1, 0, %v1128_v34 }
  0x89   : > { %v1126_v14 = vsel %vm1005_vm15, %v1125_v8, %v1124_v48  ;;  %v7916_v31 = vadd.s32 4294967169, %v232_v6  ;;  %v7921_v38 = vand.u32 3, %v7783_v51  ;;  %v3254_v40 = vshll.u32 %v3250_v10, 16 }
  0x8a   : > { %v531_v9 = vxor.u32 2147483648, %v7883_v22  ;;  %v535_v45 = vsel %vm533_vm4, %v534_v7, %v7883_v22  ;;  %v1129_v20 = vsel %vm7859_vm1, %v7595_v2, %v1126_v14  ;;  %vm3256_vm7 = vc.u32 %v3248_v47, %v3252_v18 }
  0x8b   : > { %v1131_v21 = vmul.f32 %v1129_v20, %v1129_v20  ;;  %v3212_v54 = vsel %vm3206_vm13, %v3209_v57, %v3211_v15  ;;  %v3257_v23 = vsel %vm3256_vm7, 1, %v10983_v0  ;;  %v3233_v43 = vshrl.u32 %v7869_v37, 16 }
  0x8c   : > { %v532_v19 = vsel %vm530_vm0, %v7877_v55, %v531_v9  ;;  %v3242_v35 = vadd.s32 %v3241_v27, %v3231_v16  ;;  %v3258_v6 = vadd.s32 %v3252_v18, %v3248_v47  ;;  %v3259_v34 = vadd.s32 %v3257_v23, %v3251_v33 }
  0x8d   : > { %v536_v36 = vsel %vm529_vm2, %v532_v19, %v535_v45  ;;  %v1132_v44 = vmul.f32 -0.001358992, %v1131_v21  ;;  %v1139_v25 = vmul.f32 -0.00019511016, %v1131_v21  ;;  %v1147_v51 = vadd.s32 3, %v7914_v52 }
  0x8e   : > { %v537_v5 = vsel %vm526_vm3, nan, %v536_v36  ;;  %v7188_v50 = vadd.s32 4294967169, %v7863_v29  ;;  %vm1923_vm8 = vcmp.eq.s32.totalorder %v7921_v38, 0  ;;  %vm1926_vm9 = vcmp.eq.s32.totalorder %v7921_v38, 2 }
  0x8f   : > { %5810 = vst [vmem:[#allocation1 + $0x10] ss:$2 sm:$0xff] %v537_v5  ;;  %v1133_v39 = vadd.f32 0.041655596, %v1132_v44  ;;  %v1140_v49 = vadd.f32 0.008332121, %v1139_v25  ;;  %vm3260_vm10 = vc.u32 %v3258_v6, %v3254_v40  ;;  %v7932_v3 = vadd.s32 %v3242_v35, %v3233_v43 }
  0x90   : > { %v3253_v4 = vshrl.u32 %v3249_v11, 16  ;;  %v3261_v37 = vsel %vm3260_vm10, 1, %v10983_v0  ;;  %v3803_v57 = vadd.s32 1, %v7188_v50  ;;  %v3255_v48 = vshrl.u32 %v3250_v10, 16 }
  0x91   : > { %v1134_v58 = vmul.f32 %v1133_v39, %v1131_v21  ;;  %v1141_v56 = vmul.f32 %v1140_v49, %v1131_v21  ;;  %v3263_v59 = vadd.s32 %v3261_v37, %v3259_v34  ;;  %v3793_v60 = vand.u32 2147483647, %v7777_v63 }
  0x92   : > { %v7935_v29 = vadd.s32 %v3258_v6, %v3254_v40  ;;  %vm3804_vm11 = vcmp.gt.s32.totalorder %v3803_v57, 0  ;;  %v7937_v53 = vand.u32 3, %v1147_v51  ;;  %vm1922_vm12 = vcmp.lt.s32.totalorder %v7921_v38, 2 }
  0x93   : > { %v1135_v62 = vadd.f32 -0.4999988, %v1134_v58  ;;  %v1142_v8 = vadd.f32 -0.16666654, %v1141_v56  ;;  %v3264_v11 = vadd.s32 %v3263_v59, %v3253_v4  ;;  %v3805_v47 = vsel %vm3804_vm11, %v3803_v57, 0 }
  0x94   : > { %v1928_v10 = vsel %vm1926_vm9, %v534_v7, %v7883_v22  ;;  %v3807_v14 = vand.u32 31, %v3805_v47  ;;  %v1925_v15 = vsel %vm1923_vm8, %v7877_v55, %v531_v9  ;;  %v3266_v18 = vmul.u32 %v7809_v17, %v3212_v54 }
  0x95   : > { %v1136_v45 = vmul.f32 %v1135_v62, %v1131_v21  ;;  %v1143_v61 = vmul.f32 %v1142_v8, %v1131_v21  ;;  %v3265_v16 = vadd.s32 %v3264_v11, %v3255_v48  ;;  %v3800_v19 = vand.u32 8388607, %v3793_v60 }
  0x96   : > { %vm3268_vm13 = vc.u32 %v7932_v3, %v7935_v29  ;;  %v7953_v33 = vshrl.u32 %v3805_v47, 5  ;;  %v3808_v36 = vsub.s32 32, %v3807_v14  ;;  %v3810_v7 = vshll.u32 %v10969_v24, %v3807_v14 }
  0x97   : > { %v1144_v27 = vadd.f32 1.0, %v1143_v61  ;;  %v7955_v21 = vadd.f32 1.0, %v1136_v45  ;;  %v3269_v22 = vadd.s32 1, %v3265_v16  ;;  %v3813_v55 = vshll.u32 %v10979_v26, %v3807_v14 }
  0x98   : > { %v3811_v17 = vshrl.u32 %v10979_v26, %v3808_v36  ;;  %v3816_v5 = vshll.u32 %v10977_v28, %v3807_v14  ;;  %v3819_v40 = vshll.u32 %v10975_v30, %v3807_v14  ;;  %vm1149_vm14 = vcmp.lt.s32.totalorder %v7937_v53, 2 }
  0x99   : > { %v7959_v9 = vmul.f32 %v1144_v27, %v1129_v20  ;;  %v3270_v44 = vsel %vm3268_vm13, %v3269_v22, %v3265_v16  ;;  %v3814_v25 = vshrl.u32 %v10977_v28, %v3808_v36  ;;  %v3817_v54 = vshrl.u32 %v10975_v30, %v3808_v36 }
  0x9a   : > { %v3820_v23 = vshrl.u32 %v10973_v32, %v3808_v36  ;;  %vm1150_vm15 = vcmp.eq.s32.totalorder %v7937_v53, 0  ;;  %vm1153_vm0 = vcmp.eq.s32.totalorder %v7937_v53, 2  ;;  %v3271_v20 = vadd.s32 %v3270_v44, %v3266_v18 }
  0x9b   : > { %v3801_v43 = vor.u32 8388608, %v3800_v19  ;;  %v1151_v35 = vxor.u32 2147483648, %v7959_v9  ;;  %v1154_v6 = vxor.u32 2147483648, %v7955_v21  ;;  %v1929_v34 = vsel %vm1922_vm12, %v1925_v15, %v1928_v10 }
  0x9c   : > { %v7975_v39 = vand.u32 3, %v7914_v52  ;;  %v3272_v49 = vadd.s32 536870912, %v3271_v20  ;;  %v3812_v51 = vor.u32 %v3811_v17, %v3810_v7  ;;  %v3815_v50 = vor.u32 %v3814_v25, %v3813_v55 }
  0x9d   : > { %v3822_v4 = vshll.u32 %v10973_v32, %v3807_v14  ;;  %vm3175_vm1 = vcmp.lt.s32.totalorder %v7725_v46, 0  ;;  %v3818_v58 = vor.u32 %v3817_v54, %v3816_v5  ;;  %v3821_v56 = vor.u32 %v3820_v23, %v3819_v40 }
  0x9e   : > { %v3823_v37 = vshrl.u32 %v10971_v41, %v3808_v36  ;;  %vm3825_vm2 = vcmp.lt.s32.totalorder %v7953_v33, 1  ;;  %v3273_v57 = vshrl.u32 %v3272_v49, 30  ;;  %v7981_v48 = vshll.u32 %v3801_v43, 8 }
  0x9f   : > { %v7985_v52 = vand.u32 8388607, %v228_v13  ;;  %v7988_v38 = vadd.s32 1, %v7916_v31  ;;  %vm1146_vm4 = vweird.f32 %v7595_v2  ;;  %v3809_v59 = vshrl.u32 %v10969_v24, %v3808_v36 }
  0xa0   : > { %v3824_v62 = vor.u32 %v3823_v37, %v3822_v4  ;;  %vm3827_vm5 = vcmp.lt.s32.totalorder %v7953_v33, 3  ;;  %vm3828_vm6 = vcmp.lt.s32.totalorder %v7953_v33, 4  ;;  %v1155_v8 = vsel %vm1153_vm0, %v1154_v6, %v7959_v9 }
  0xa1   : > { %v3274_v11 = vshll.u32 %v3273_v57, 30  ;;  %vm3826_vm7 = vcmp.lt.s32.totalorder %v7953_v33, 2  ;;  %v3833_v31 = vsel %vm3825_vm2, %v3812_v51, %v3815_v50  ;;  %v1152_v47 = vsel %vm1150_vm15, %v7955_v21, %v1151_v35 }
  0xa2   : > { %vm8009_vm8 = vcmp.le.f32.partialorder %v3173_v42, 0.7853982  ;;  %v3834_v61 = vsel %vm3828_vm6, %v3821_v56, 920167782  ;;  %v3837_v10 = vsel %vm3825_vm2, %v3815_v50, %v3818_v58  ;;  %v3838_v14 = vsel %vm3828_vm6, %v3824_v62, 1326507024 }
  0xa3   : > { %v8015_v15 = vsub.s32 %v3271_v20, %v3274_v11  ;;  %v3297_v16 = vsub.s32 4, %v3273_v57  ;;  %v3835_v18 = vsel %vm3827_vm5, %v3818_v58, %v3834_v61  ;;  %v3842_v19 = vand.u32 65535, %v7981_v48 }
  0xa4   : > { %v3830_v27 = vsel %vm3828_vm6, %v3818_v58, 2102212464  ;;  %v3836_v42 = vsel %vm3826_vm7, %v3833_v31, %v3835_v18  ;;  %v3839_v36 = vsel %vm3827_vm5, %v3821_v56, %v3838_v14  ;;  %v3843_v22 = vshrl.u32 %v7981_v48, 16 }
  0xa5   : > { %v1156_v7 = vsel %vm1149_vm14, %v1152_v47, %v1155_v8  ;;  %vm3276_vm9 = vcmp.lt.s32.totalorder %v8015_v15, 0  ;;  %v3277_v55 = vsub.s32 0, %v8015_v15  ;;  %v3840_v17 = vsel %vm3826_vm7, %v3837_v10, %v3839_v36 }
  0xa6   : > { %v3829_v5 = vsel %vm3825_vm2, %v3809_v59, %v3812_v51  ;;  %v3844_v40 = vand.u32 65535, %v3840_v17  ;;  %v3845_v44 = vshrl.u32 %v3840_v17, 16  ;;  %v3867_v25 = vshrl.u32 %v3836_v42, 16 }
  0xa7   : > { %v3278_v54 = vsel %vm3276_vm9, %v3277_v55, %v8015_v15  ;;  %v3298_v23 = vsel %vm3175_vm1, %v3297_v16, %v3273_v57  ;;  %v3831_v53 = vsel %vm3827_vm5, %v3815_v50, %v3830_v27  ;;  %v3866_v20 = vand.u32 65535, %v3836_v42 }
  0xa8   : > { %v3279_v43 = vclz %v3278_v54  ;;  %v3846_v49 = vmul.u32 %v3844_v40, %v3842_v19  ;;  %v3847_v4 = vmul.u32 %v3845_v44, %v3842_v19  ;;  %v3848_v58 = vmul.u32 %v3844_v40, %v3843_v22 }
  0xa9   : > { %v8040_v56 = vsel %vm526_vm3, nan, %v1929_v34  ;;  %v3267_v51 = vadd.s32 %v7935_v29, %v7932_v3  ;;  %v3869_v37 = vmul.u32 %v3867_v25, %v3842_v19  ;;  %v236_v59 = vor.u32 8388608, %v7985_v52 }
  0xaa   : > { %vm2539_vm10 = vcmp.eq.s32.totalorder %v7975_v39, 0  ;;  %vm2542_vm11 = vcmp.eq.s32.totalorder %v7975_v39, 2  ;;  %v7177_v50 = vadd.s32 4294967294, %v3279_v43  ;;  %v3849_v57 = vmul.u32 %v3845_v44, %v3843_v22 }
  0xab   : > { %v3850_v62 = vshll.u32 %v3847_v4, 16  ;;  %vm239_vm12 = vcmp.gt.s32.totalorder %v7988_v38, 0  ;;  %v1157_v8 = vsel %vm1146_vm4, nan, %v1156_v7  ;;  %v8052_v34 = vsel %vm8009_vm8, 0, %v3298_v23 }
  0xac   : > { %v8056_v3 = vsel %vm3826_vm7, %v3829_v5, %v3831_v53  ;;  %v3852_v29 = vshll.u32 %v3848_v58, 16  ;;  %vm7178_vm3 = vcmp.lt.s32.totalorder %v7177_v50, 0  ;;  %v3870_v31 = vmul.u32 %v3866_v20, %v3843_v22 }
  0xad   : > { %vm3854_vm13 = vc.u32 %v3846_v49, %v3850_v62  ;;  %v3856_v11 = vadd.s32 %v3850_v62, %v3846_v49  ;;  %v3282_v47 = vsel %vm7178_vm3, 0, %v7177_v50  ;;  %v3868_v10 = vmul.u32 %v3866_v20, %v3842_v19  ;;  %v8079_v62 = vld.sshfl [vmem:[#allocation1 + $0x10] sm:$0xff pattern:$0x75316420] }
  0xae   : > { %v3855_v61 = vsel %vm3854_vm13, 1, %v10983_v0  ;;  %v3872_v14 = vshll.u32 %v3869_v37, 16  ;;  %v3283_v16 = vsub.s32 32, %v3282_v47  ;;  %v3284_v18 = vshll.u32 %v8015_v15, %v3282_v47 }
  0xaf   : > { %v3287_v27 = vsub.s32 4294967266, %v3282_v47  ;;  %v3857_v42 = vadd.s32 %v3855_v61, %v3849_v57  ;;  %v3851_v36 = vshrl.u32 %v3847_v4, 16  ;;  %vm3858_vm14 = vc.u32 %v3856_v11, %v3852_v29  ;;  %v8081_v29 = vld.sshfl [vmem:[#allocation1 + $0x18] sm:$0xff pattern:$0x75316420] }
  0xb0   : > { %v3871_v33 = vmul.u32 %v3867_v25, %v3843_v22  ;;  %v240_v7 = vsel %vm239_vm12, %v7988_v38, 0  ;;  %v3285_v55 = vshrl.u32 %v3267_v51, %v3283_v16  ;;  %v3859_v5 = vsel %vm3858_vm14, 1, %v10983_v0  ;;  %5824 = vst [vmem:[#allocation1 + $0x10] ss:$2 sm:$0xff] %v1157_v8 }
  0xb1   : > { %v3288_v17 = vadd.s32 127, %v3287_v27  ;;  %v3874_v40 = vshll.u32 %v3870_v31, 16  ;;  %v3853_v44 = vshrl.u32 %v3848_v58, 16  ;;  %v3861_v19 = vadd.s32 %v3859_v5, %v3857_v42 }
  0xb2   : > { %vm3876_vm15 = vc.u32 %v3868_v10, %v3872_v14  ;;  %v3878_v54 = vadd.s32 %v3872_v14, %v3868_v10  ;;  %vm2538_vm0 = vcmp.lt.s32.totalorder %v7975_v39, 2  ;;  %v3286_v15 = vor.u32 %v3285_v55, %v3284_v18 }
  0xb3   : > { %v3289_v23 = vshll.u32 %v3288_v17, 23  ;;  %v3873_v53 = vshrl.u32 %v3869_v37, 16  ;;  %v3877_v22 = vsel %vm3876_vm15, 1, %v10983_v0  ;;  %v3862_v25 = vadd.s32 %v3861_v19, %v3851_v36 }
  0xb4   : > { %v3875_v20 = vshrl.u32 %v3870_v31, 16  ;;  %v3879_v43 = vadd.s32 %v3877_v22, %v3871_v33  ;;  %vm3880_vm2 = vc.u32 %v3878_v54, %v3874_v40  ;;  %v3293_v49 = vcvt.s32.f32 %v3286_v15 }
  0xb5   : > { %v3290_v38 = vor.u32 4788187, %v3289_v23  ;;  %v3881_v4 = vsel %vm3880_vm2, 1, %v10983_v0  ;;  %v242_v51 = vand.u32 31, %v240_v7  ;;  %v2541_v58 = vsel %vm2539_vm10, %v7955_v21, %v1151_v35 }
  0xb6   : > { %v2544_v37 = vsel %vm2542_vm11, %v1154_v6, %v7959_v9  ;;  %v8077_v50 = vadd.s32 %v3878_v54, %v3874_v40  ;;  %v3883_v57 = vadd.s32 %v3881_v4, %v3879_v43  ;;  %v8083_v31 = vadd.s32 %v3862_v25, %v3853_v44 }
  0xb7   : > { %v3291_v11 = vand.u32 2147483647, %v3290_v38  ;;  %v8085_v47 = vsub.s32 32, %v242_v51  ;;  %v245_v35 = vshll.u32 %v10969_v24, %v242_v51  ;;  %v3886_v21 = vmul.u32 %v7981_v48, %v8056_v3  ;;  %v8125_v22 = vld.sshfl [vmem:[#allocation1 + $0x18] sm:$0xff pattern:$0x75316420] }
  0xb8   : > { %v3884_v61 = vadd.s32 %v3883_v57, %v3873_v53  ;;  %v8090_v9 = vshrl.u32 %v240_v7, 5  ;;  %v248_v6 = vshll.u32 %v10979_v26, %v242_v51  ;;  %v251_v8 = vshll.u32 %v10977_v28, %v242_v51  ;;  %v8123_v53 = vld.sshfl [vmem:[#allocation1 + $0x10] sm:$0xff pattern:$0x75316420]  ;;  %11008 = vst [vmem:[#allocation9_spill] sm:$0xff] %v8125_v22 }
  0xb9   : > { %v3294_v10 = vmul.f32 %v3293_v49, %v3291_v11  ;;  %v246_v14 = vshrl.u32 %v10979_v26, %v8085_v47  ;;  %v249_v16 = vshrl.u32 %v10977_v28, %v8085_v47  ;;  %v252_v27 = vshrl.u32 %v10975_v30, %v8085_v47  ;;  %11007 = vst [vmem:[#allocation8_spill] sm:$0xff] %v8123_v53 }
  0xba   : > { %v3885_v18 = vadd.s32 %v3884_v61, %v3875_v20  ;;  %v254_v42 = vshll.u32 %v10975_v30, %v242_v51  ;;  %v255_v48 = vshrl.u32 %v10973_v32, %v8085_v47  ;;  %vm3888_vm5 = vc.u32 %v8083_v31, %v8077_v50  ;;  %5868 = vst [vmem:[#allocation1 + $0x11] ss:$2 sm:$0xff] %v8040_v56 }
  0xbb   : > { %v3295_v3 = vxor.u32 2147483648, %v3294_v10  ;;  %v8105_v36 = vor.u32 %v246_v14, %v245_v35  ;;  %v257_v33 = vshll.u32 %v10973_v32, %v242_v51  ;;  %v8108_v55 = vor.u32 %v249_v16, %v248_v6 }
  0xbc   : > { %v3889_v7 = vadd.s32 1, %v3885_v18  ;;  %v256_v17 = vor.u32 %v255_v48, %v254_v42  ;;  %v258_v5 = vshrl.u32 %v10971_v41, %v8085_v47  ;;  %v3317_v44 = vadd.s32 3, %v8052_v34 }
  0xbd   : > { %v3296_v40 = vsel %vm3175_vm1, %v3295_v3, %v3294_v10  ;;  %v8115_v19 = vor.u32 %v252_v27, %v251_v8  ;;  %vm260_vm6 = vcmp.lt.s32.totalorder %v8090_v9, 1  ;;  %v2545_v54 = vsel %vm2538_vm0, %v2541_v58, %v2544_v37 }
  0xbe   : > { %v3299_v15 = vsel %vm8009_vm8, %v7725_v46, %v3296_v40  ;;  %v3890_v23 = vsel %vm3888_vm5, %v3889_v7, %v3885_v18  ;;  %v259_v25 = vor.u32 %v258_v5, %v257_v33  ;;  %vm262_vm1 = vcmp.lt.s32.totalorder %v8090_v9, 3 }
  0xbf   : > { %v3301_v20 = vmul.f32 %v3299_v15, %v3299_v15  ;;  %v3891_v43 = vadd.s32 %v3890_v23, %v3886_v21  ;;  %vm263_vm7 = vcmp.lt.s32.totalorder %v8090_v9, 4  ;;  %vm261_vm9 = vcmp.lt.s32.totalorder %v8090_v9, 2 }
  0xc0   : > { %v268_v39 = vsel %vm260_vm6, %v8105_v36, %v8108_v55  ;;  %v269_v45 = vsel %vm263_vm7, %v256_v17, 920167782  ;;  %v273_v38 = vsel %vm263_vm7, %v259_v25, 1326507024  ;;  %v272_v51 = vsel %vm260_vm6, %v8108_v55, %v8115_v19 }
  0xc1   : > { %v3302_v49 = vmul.f32 -0.001358992, %v3301_v20  ;;  %v3309_v4 = vmul.f32 -0.00019511016, %v3301_v20  ;;  %v3892_v56 = vadd.s32 536870912, %v3891_v43  ;;  %v270_v58 = vsel %vm262_vm1, %v8115_v19, %v269_v45 }
  0xc2   : > { %v274_v37 = vsel %vm262_vm1, %v256_v17, %v273_v38  ;;  %v8150_v57 = vshll.u32 %v236_v59, 8  ;;  %v2546_v11 = vsel %vm1146_vm4, nan, %v2545_v54  ;;  %v3318_v6 = vand.u32 3, %v3317_v44  ;;  %v8167_v27 = vld.sshfl [vmem:[#allocation1 + $0x10] sm:$0xff pattern:$0x75316420] }
  0xc3   : > { %v3303_v35 = vadd.f32 0.041655596, %v3302_v49  ;;  %v3310_v61 = vadd.f32 0.008332121, %v3309_v4  ;;  %v8154_v21 = vshrl.u32 %v3892_v56, 30  ;;  %v8158_v10 = vsel %vm261_vm9, %v268_v39, %v270_v58 }
  0xc4   : > { %v275_v14 = vsel %vm261_vm9, %v272_v51, %v274_v37  ;;  %v277_v16 = vand.u32 65535, %v8150_v57  ;;  %v8165_v18 = vshrl.u32 %v8150_v57, 16  ;;  %v8169_v42 = vld.sshfl [vmem:[#allocation1 + $0x18] sm:$0xff pattern:$0x75316420]  ;;  %vm3316_vm4 = vweird.f32 %v7725_v46 }
  0xc5   : > { %v3304_v52 = vmul.f32 %v3303_v35, %v3301_v20  ;;  %v3311_v59 = vmul.f32 %v3310_v61, %v3301_v20  ;;  %v3894_v8 = vshll.u32 %v8154_v21, 30  ;;  %5882 = vst [vmem:[#allocation1 + $0x11] ss:$2 sm:$0xff] %v2546_v11  ;;  %v279_v7 = vand.u32 65535, %v275_v14 }
  0xc6   : > { %v280_v17 = vshrl.u32 %v275_v14, 16  ;;  %v302_v5 = vshrl.u32 %v8158_v10, 16  ;;  %vm3319_vm10 = vcmp.lt.s32.totalorder %v3318_v6, 2  ;;  %vm3323_vm11 = vcmp.eq.s32.totalorder %v3318_v6, 2 }
  0xc7   : > { %v3305_v48 = vadd.f32 -0.4999988, %v3304_v52  ;;  %v3312_v3 = vadd.f32 -0.16666654, %v3311_v59  ;;  %v3895_v33 = vsub.s32 %v3891_v43, %v3894_v8  ;;  %v281_v23 = vmul.u32 %v279_v7, %v277_v16 }
  0xc8   : > { %v282_v25 = vmul.u32 %v280_v17, %v277_v16  ;;  %v8174_v39 = vmul.u32 %v279_v7, %v8165_v18  ;;  %v301_v51 = vand.u32 65535, %v8158_v10  ;;  %v284_v37 = vmul.u32 %v280_v17, %v8165_v18 }
  0xc9   : > { %v3306_v40 = vmul.f32 %v3305_v48, %v3301_v20  ;;  %v3313_v44 = vmul.f32 %v3312_v3, %v3301_v20  ;;  %vm3896_vm8 = vcmp.lt.s32.totalorder %v3895_v33, 0  ;;  %v3897_v54 = vsub.s32 0, %v3895_v33 }
  0xca   : > { %v285_v4 = vshll.u32 %v282_v25, 16  ;;  %v287_v56 = vshll.u32 %v8174_v39, 16  ;;  %v8184_v11 = vmul.u32 %v302_v5, %v277_v16  ;;  %vm3320_vm12 = vcmp.eq.s32.totalorder %v3318_v6, 0 }
  0xcb   : > { %v8176_v45 = vadd.f32 1.0, %v3306_v40  ;;  %v3314_v43 = vadd.f32 1.0, %v3313_v44  ;;  %v3898_v38 = vsel %vm3896_vm8, %v3897_v54, %v3895_v33  ;;  %v303_v8 = vmul.u32 %v301_v51, %v277_v16 }
  0xcc   : > { %v3899_v49 = vclz %v3898_v38  ;;  %vm289_vm3 = vc.u32 %v281_v23, %v285_v4  ;;  %v291_v61 = vadd.s32 %v285_v4, %v281_v23  ;;  %v8193_v59 = vld.sshfl [vmem:[#allocation1 + $0x10] sm:$0xff pattern:$0x75316420]  ;;  %v305_v48 = vmul.u32 %v301_v51, %v8165_v18  ;;  %v8199_v17 = vld.sshfl [vmem:[#allocation1 + $0x18] sm:$0xff pattern:$0x75316420] }
  0xcd   : > { %v8180_v20 = vmul.f32 %v3314_v43, %v3299_v15  ;;  %v3324_v58 = vxor.u32 2147483648, %v8176_v45  ;;  %v3887_v15 = vadd.s32 %v8077_v50, %v8083_v31  ;;  %v290_v10 = vsel %vm289_vm3, 1, %v10983_v0  ;;  %11009 = vst [vmem:[#allocation10_spill] sm:$0xff] %v8193_v59 }
  0xce   : > { %v7189_v35 = vadd.s32 4294967294, %v3899_v49  ;;  %vm293_vm14 = vc.u32 %v291_v61, %v287_v56  ;;  %11010 = vst [vmem:[#allocation11_spill] sm:$0xff] %v8199_v17  ;;  %v292_v40 = vadd.s32 %v290_v10, %v284_v37  ;;  %v307_v44 = vshll.u32 %v8184_v11, 16 }
  0xcf   : > { %v3321_v14 = vxor.u32 2147483648, %v8180_v20  ;;  %v3325_v52 = vsel %vm3323_vm11, %v3324_v58, %v8180_v20  ;;  %v294_v43 = vsel %vm293_vm14, 1, %v10983_v0  ;;  %v3917_v4 = vsub.s32 4, %v8154_v21 }
  0xd0   : > { %vm7190_vm13 = vcmp.lt.s32.totalorder %v7189_v35, 0  ;;  %v309_v56 = vshll.u32 %v305_v48, 16  ;;  %vm311_vm15 = vc.u32 %v303_v8, %v307_v44  ;;  %v313_v51 = vadd.s32 %v307_v44, %v303_v8 }
  0xd1   : > { %v3322_v3 = vsel %vm3320_vm12, %v8176_v45, %v3321_v14  ;;  %v3902_v7 = vsel %vm7190_vm13, 0, %v7189_v35  ;;  %v286_v35 = vshrl.u32 %v282_v25, 16  ;;  %v296_v61 = vadd.s32 %v294_v43, %v292_v40  ;;  %v8219_v40 = vld [vmem:[%s7583_s7 + $0x20] sm:$0xff] }
  0xd2   : > { %v3326_v50 = vsel %vm3319_vm10, %v3322_v3, %v3325_v52  ;;  %v3903_v31 = vsub.s32 32, %v3902_v7  ;;  %v3904_v54 = vshll.u32 %v3895_v33, %v3902_v7  ;;  %v3907_v23 = vsub.s32 4294967266, %v3902_v7 }
  0xd3   : > { %v3327_v16 = vsel %vm3316_vm4, nan, %v3326_v50  ;;  %v244_v33 = vshrl.u32 %v10969_v24, %v8085_v47  ;;  %v306_v52 = vmul.u32 %v302_v5, %v8165_v18  ;;  %vm3795_vm0 = vcmp.lt.s32.totalorder %v7777_v63, 0 }
  0xd4   : > { %v3905_v38 = vshrl.u32 %v3887_v15, %v3903_v31  ;;  %v3908_v49 = vadd.s32 127, %v3907_v23  ;;  %5925 = vst [vmem:[#allocation1 + $0x10] ss:$2 sm:$0xff] %v3327_v16  ;;  %v312_v3 = vsel %vm311_vm15, 1, %v10983_v0  ;;  %v3918_v7 = vsel %vm3795_vm0, %v3917_v4, %v8154_v21 }
  0xd5   : > { %v265_v25 = vsel %vm263_vm7, %v8115_v19, 2102212464  ;;  %vm315_vm2 = vc.u32 %v313_v51, %v309_v56  ;;  %v288_v47 = vshrl.u32 %v8174_v39, 16  ;;  %v297_v18 = vadd.s32 %v296_v61, %v286_v35 }
  0xd6   : > { %v3906_v37 = vor.u32 %v3905_v38, %v3904_v54  ;;  %v3909_v6 = vshll.u32 %v3908_v49, 23  ;;  %vm8224_vm5 = vcmp.le.f32.partialorder %v3793_v60, 0.7853982  ;;  %v264_v21 = vsel %vm260_vm6, %v244_v33, %v8105_v36 }
  0xd7   : > { %v308_v44 = vshrl.u32 %v8184_v11, 16  ;;  %v314_v19 = vadd.s32 %v312_v3, %v306_v52  ;;  %v3920_v31 = vsel %vm8224_vm5, 0, %v3918_v7  ;;  %v266_v39 = vsel %vm262_vm1, %v8108_v55, %v265_v25 }
  0xd8   : > { %v3910_v15 = vor.u32 4788187, %v3909_v6  ;;  %v3913_v10 = vcvt.s32.f32 %v3906_v37  ;;  %v316_v60 = vsel %vm315_vm2, 1, %v10983_v0  ;;  %v310_v54 = vshrl.u32 %v305_v48, 16 }
  0xd9   : > { %v318_v23 = vadd.s32 %v316_v60, %v314_v19  ;;  %v851_v16 = vand.u32 2139095040, %v8219_v40  ;;  %v8239_v38 = vadd.s32 %v297_v18, %v288_v47  ;;  %v8241_v36 = vadd.s32 %v313_v51, %v309_v56 }
  0xda   : > { %v3911_v8 = vand.u32 2147483647, %v3910_v15  ;;  %v3937_v11 = vadd.s32 3, %v3920_v31  ;;  %v267_v49 = vsel %vm261_vm9, %v264_v21, %v266_v39  ;;  %v8248_v6 = vand.u32 3, %v8052_v34 }
  0xdb   : > { %v319_v4 = vadd.s32 %v318_v23, %v308_v44  ;;  %v852_v37 = vshrl.u32 %v851_v16, 23  ;;  %v321_v51 = vmul.u32 %v8150_v57, %v267_v49  ;;  %vm323_vm6 = vc.u32 %v8239_v38, %v8241_v36  ;;  %v8283_v16 = vld [vmem:[%s7583_s7 + $0x40] sm:$0xff] }
  0xdc   : > { %v3914_v50 = vmul.f32 %v3913_v10, %v3911_v8  ;;  %v8256_v9 = vand.u32 3, %v3937_v11  ;;  %vm4713_vm1 = vcmp.eq.s32.totalorder %v8248_v6, 0  ;;  %vm4716_vm7 = vcmp.eq.s32.totalorder %v8248_v6, 2 }
  0xdd   : > { %v320_v35 = vadd.s32 %v319_v4, %v310_v54  ;;  %v7131_v61 = vadd.s32 4294967169, %v852_v37  ;;  %v848_v3 = vand.u32 2147483647, %v8219_v40  ;;  %v8265_v47 = vsel %vm4713_vm1, %v8176_v45, %v3321_v14 }
  0xde   : > { %v3915_v43 = vxor.u32 2147483648, %v3914_v50  ;;  %vm3943_vm8 = vcmp.eq.s32.totalorder %v8256_v9, 2  ;;  %v8267_v18 = vand.u32 3, %v3920_v31  ;;  %v8272_v19 = vsel %vm4716_vm7, %v3324_v58, %v8180_v20 }
  0xdf   : > { %v324_v33 = vadd.s32 1, %v320_v35  ;;  %v858_v52 = vadd.s32 1, %v7131_v61  ;;  %vm3940_vm10 = vcmp.eq.s32.totalorder %v8256_v9, 0  ;;  %v855_v39 = vand.u32 8388607, %v848_v3 }
  0xe0   : > { %v3916_v55 = vsel %vm3795_vm0, %v3915_v43, %v3914_v50  ;;  %vm3939_vm11 = vcmp.lt.s32.totalorder %v8256_v9, 2  ;;  %vm3936_vm12 = vweird.f32 %v7777_v63  ;;  %vm4712_vm3 = vcmp.lt.s32.totalorder %v8248_v6, 2 }
  0xe1   : > { %v3919_v48 = vsel %vm8224_vm5, %v7777_v63, %v3916_v55  ;;  %v325_v34 = vsel %vm323_vm6, %v324_v33, %v320_v35  ;;  %vm859_vm9 = vcmp.gt.s32.totalorder %v858_v52, 0  ;;  %v856_v61 = vor.u32 8388608, %v855_v39 }
  0xe2   : > { %v3921_v56 = vmul.f32 %v3919_v48, %v3919_v48  ;;  %v326_v57 = vadd.s32 %v325_v34, %v321_v51  ;;  %v860_v8 = vsel %vm859_vm9, %v858_v52, 0  ;;  %v1471_v52 = vand.u32 2139095040, %v8283_v16 }
  0xe3   : > { %v862_v5 = vand.u32 31, %v860_v8  ;;  %v8300_v51 = vshrl.u32 %v860_v8, 5  ;;  %vm5329_vm13 = vcmp.eq.s32.totalorder %v8267_v18, 0  ;;  %vm230_vm14 = vcmp.lt.s32.totalorder %v7807_v12, 0 }
  0xe4   : > { %v3922_v15 = vmul.f32 -0.001358992, %v3921_v56  ;;  %v3929_v10 = vmul.f32 -0.00019511016, %v3921_v56  ;;  %v327_v50 = vadd.s32 536870912, %v326_v57  ;;  %vm5328_vm6 = vcmp.lt.s32.totalorder %v8267_v18, 2 }
  0xe5   : > { %v8277_v60 = vsub.s32 32, %v862_v5  ;;  %v865_v14 = vshll.u32 %v10969_v24, %v862_v5  ;;  %v868_v31 = vshll.u32 %v10979_v26, %v862_v5  ;;  %v871_v20 = vshll.u32 %v10977_v28, %v862_v5 }
  0xe6   : > { %v3923_v7 = vadd.f32 0.041655596, %v3922_v15  ;;  %v3930_v25 = vadd.f32 0.008332121, %v3929_v10  ;;  %v8285_v45 = vshrl.u32 %v327_v50, 30  ;;  %v874_v49 = vshll.u32 %v10975_v30, %v862_v5 }
  0xe7   : > { %v866_v58 = vshrl.u32 %v10979_v26, %v8277_v60  ;;  %v869_v43 = vshrl.u32 %v10977_v28, %v8277_v60  ;;  %v872_v11 = vshrl.u32 %v10975_v30, %v8277_v60  ;;  %v875_v35 = vshrl.u32 %v10973_v32, %v8277_v60 }
  0xe8   : > { %v3924_v21 = vmul.f32 %v3923_v7, %v3921_v56  ;;  %v3931_v44 = vmul.f32 %v3930_v25, %v3921_v56  ;;  %v329_v55 = vshll.u32 %v8285_v45, 30  ;;  %vm880_vm0 = vcmp.lt.s32.totalorder %v8300_v51, 1 }
  0xe9   : > { %v8302_v33 = vor.u32 %v866_v58, %v865_v14  ;;  %v8307_v7 = vor.u32 %v869_v43, %v868_v31  ;;  %v873_v25 = vor.u32 %v872_v11, %v871_v20  ;;  %vm882_vm2 = vcmp.lt.s32.totalorder %v8300_v51, 3  ;;  %v8331_v43 = vld.sshfl [vmem:[#allocation1 + $0x10] sm:$0xff pattern:$0x75316420] }
  0xea   : > { %v3925_v54 = vadd.f32 -0.4999988, %v3924_v21  ;;  %v3932_v23 = vadd.f32 -0.16666654, %v3931_v44  ;;  %v8305_v34 = vsub.s32 %v326_v57, %v329_v55  ;;  %v877_v21 = vshll.u32 %v10973_v32, %v862_v5 }
  0xeb   : > { %v878_v44 = vshrl.u32 %v10971_v41, %v8277_v60  ;;  %vm883_vm5 = vcmp.lt.s32.totalorder %v8300_v51, 4  ;;  %v1472_v5 = vshrl.u32 %v1471_v52, 23  ;;  %v1468_v31 = vand.u32 2147483647, %v8283_v16 }
  0xec   : > { %v3926_v4 = vmul.f32 %v3925_v54, %v3921_v56  ;;  %v3933_v37 = vmul.f32 %v3932_v23, %v3921_v56  ;;  %v876_v56 = vor.u32 %v875_v35, %v874_v49  ;;  %vm331_vm15 = vcmp.lt.s32.totalorder %v8305_v34, 0  ;;  %v8333_v11 = vld.sshfl [vmem:[#allocation1 + $0x18] sm:$0xff pattern:$0x75316420] }
  0xed   : > { %v332_v57 = vsub.s32 0, %v8305_v34  ;;  %vm881_vm1 = vcmp.lt.s32.totalorder %v8300_v51, 2  ;;  %v8327_v20 = vshll.u32 %v856_v61, 8  ;;  %vm8337_vm7 = vcmp.le.f32.partialorder %v228_v13, 0.7853982 }
  0xee   : > { %v3927_v15 = vadd.f32 1.0, %v3926_v4  ;;  %v3934_v10 = vadd.f32 1.0, %v3933_v37  ;;  %v889_v23 = vsel %vm883_vm5, %v876_v56, 920167782  ;;  %v879_v4 = vor.u32 %v878_v44, %v877_v21 }
  0xef   : > { %v333_v14 = vsel %vm331_vm15, %v332_v57, %v8305_v34  ;;  %v888_v37 = vsel %vm880_vm0, %v8302_v33, %v8307_v7  ;;  %v890_v55 = vsel %vm882_vm2, %v873_v25, %v889_v23  ;;  %vm5332_vm9 = vcmp.eq.s32.totalorder %v8267_v18, 2 }
  0xf0   : > { %v3935_v50 = vmul.f32 %v3934_v10, %v3919_v48  ;;  %v3944_v8 = vxor.u32 2147483648, %v3927_v15  ;;  %v334_v54 = vclz %v333_v14  ;;  %v352_v13 = vsub.s32 4, %v8285_v45 }
  0xf1   : > { %v4719_v10 = vsel %vm4712_vm3, %v8265_v47, %v8272_v19  ;;  %v322_v21 = vadd.s32 %v8241_v36, %v8239_v38  ;;  %v7143_v44 = vadd.s32 4294967169, %v1472_v5  ;;  %v891_v9 = vsel %vm881_vm1, %v888_v37, %v890_v55 }
  0xf2   : > { %v3941_v39 = vxor.u32 2147483648, %v3935_v50  ;;  %v3945_v48 = vsel %vm3943_vm8, %v3944_v8, %v3935_v50  ;;  %v7120_v61 = vadd.s32 4294967294, %v334_v54  ;;  %v897_v57 = vand.u32 65535, %v8327_v20 }
  0xf3   : > { %v864_v6 = vshrl.u32 %v10969_v24, %v8277_v60  ;;  %v893_v47 = vsel %vm883_vm5, %v879_v4, 1326507024  ;;  %v898_v38 = vshrl.u32 %v8327_v20, 16  ;;  %v353_v54 = vsel %vm230_vm14, %v352_v13, %v8285_v45 }
  0xf4   : > { %v3942_v58 = vsel %vm3940_vm10, %v3927_v15, %v3941_v39  ;;  %vm7121_vm8 = vcmp.lt.s32.totalorder %v7120_v61, 0  ;;  %v892_v23 = vsel %vm880_vm0, %v8307_v7, %v873_v25  ;;  %v894_v60 = vsel %vm882_vm2, %v876_v56, %v893_v47 }
  0xf5   : > { %v3946_v35 = vsel %vm3939_vm11, %v3942_v58, %v3945_v48  ;;  %v8364_v48 = vand.u32 8388607, %v1468_v31  ;;  %v337_v14 = vsel %vm7121_vm8, 0, %v7120_v61  ;;  %v921_v58 = vand.u32 65535, %v891_v9 }
  0xf6   : > { %v3947_v52 = vsel %vm3936_vm12, nan, %v3946_v35  ;;  %v338_v36 = vsub.s32 32, %v337_v14  ;;  %v339_v19 = vshll.u32 %v8305_v34, %v337_v14  ;;  %v342_v5 = vsub.s32 4294967266, %v337_v14 }
  0xf7   : > { %5939 = vst [vmem:[#allocation1 + $0x10] ss:$2 sm:$0xff] %v3947_v52  ;;  %v922_v37 = vshrl.u32 %v891_v9, 16  ;;  %v5331_v4 = vsel %vm5329_vm13, %v3927_v15, %v3941_v39  ;;  %v5334_v34 = vsel %vm5332_vm9, %v3944_v8, %v3935_v50  ;;  %v4720_v45 = vsel %vm3316_vm4, nan, %v4719_v10 }
  0xf8   : > { %v340_v55 = vshrl.u32 %v322_v21, %v338_v36  ;;  %v343_v35 = vadd.s32 127, %v342_v5  ;;  %v885_v61 = vsel %vm883_vm5, %v873_v25, 2102212464  ;;  %v1476_v13 = vor.u32 8388608, %v8364_v48 }
  0xf9   : > { %v1478_v52 = vadd.s32 1, %v7143_v44  ;;  %v8391_v9 = vsel %vm8337_vm7, 0, %v353_v54  ;;  %v895_v15 = vsel %vm881_vm1, %v892_v23, %v894_v60  ;;  %v5335_v50 = vsel %vm5328_vm6, %v5331_v4, %v5334_v34 }
  0xfa   : > { %v341_v56 = vor.u32 %v340_v55, %v339_v19  ;;  %v344_v14 = vshll.u32 %v343_v35, 23  ;;  %v924_v25 = vmul.u32 %v922_v37, %v897_v57  ;;  %v8401_v39 = vmul.u32 %v921_v58, %v898_v38 }
  0xfb   : > { %v884_v44 = vsel %vm880_vm0, %v864_v6, %v8302_v33  ;;  %v923_v47 = vmul.u32 %v921_v58, %v897_v57  ;;  %v886_v18 = vsel %vm882_vm2, %v8307_v7, %v885_v61  ;;  %v899_v36 = vand.u32 65535, %v895_v15 }
  0xfc   : > { %v345_v10 = vor.u32 4788187, %v344_v14  ;;  %v348_v21 = vcvt.s32.f32 %v341_v56  ;;  %v900_v19 = vshrl.u32 %v895_v15, 16  ;;  %v927_v5 = vshll.u32 %v924_v25, 16 }
  0xfd   : > { %v5336_v54 = vsel %vm3936_vm12, nan, %v5335_v50  ;;  %v372_v60 = vadd.s32 3, %v8391_v9  ;;  %v926_v4 = vmul.u32 %v922_v37, %v898_v38  ;;  %v901_v34 = vmul.u32 %v899_v36, %v897_v57 }
  0xfe   : > { %v8397_v46 = vld.sshfl [vmem:[#allocation1 + $0x10] sm:$0xff pattern:$0x75316420]  ;;  %v8399_v8 = vld.sshfl [vmem:[#allocation1 + $0x18] sm:$0xff pattern:$0x75316420]  ;;  %v902_v55 = vmul.u32 %v900_v19, %v897_v57  ;;  %v903_v35 = vmul.u32 %v899_v36, %v898_v38  ;;  %vm931_vm10 = vc.u32 %v923_v47, %v927_v5  ;;  %v933_v58 = vadd.s32 %v927_v5, %v923_v47 }
  0xff   : > { %11015 = vst [vmem:[#allocation12_spill] sm:$0xff] %v8397_v46  ;;  %v346_v23 = vand.u32 2147483647, %v345_v10  ;;  %v929_v33 = vshll.u32 %v8401_v39, 16  ;;  %vm6086_vm4 = vcmask 1043456   ;;  %v8415_v7 = vsel %vm881_vm1, %v884_v44, %v886_v18  ;;  %v8434_v18 = vld [vmem:[%s7583_s7] sm:$0xff] }
 0x100   : > { %11016 = vst [vmem:[#allocation13_spill] sm:$0xff] %v8399_v8  ;;  %v905_v63 = vshll.u32 %v902_v55, 16  ;;  %vm1479_vm11 = vcmp.gt.s32.totalorder %v1478_v52, 0  ;;  %v8417_v56 = vand.u32 3, %v372_v60  ;;  %v907_v37 = vshll.u32 %v903_v35, 16 }
 0x101   : > { %5983 = vst [vmem:[#allocation1 + $0x11] ss:$2 sm:$0xff] %v4720_v45  ;;  %v349_v6 = vmul.f32 %v348_v21, %v346_v23  ;;  %v904_v45 = vmul.u32 %v900_v19, %v898_v38  ;;  %v932_v57 = vsel %vm931_vm10, 1, %v10983_v0  ;;  %vm935_vm3 = vc.u32 %v933_v58, %v929_v33 }
 0x102   : > { %vm909_vm12 = vc.u32 %v901_v34, %v905_v63  ;;  %v911_v50 = vadd.s32 %v905_v63, %v901_v34  ;;  %v934_v10 = vadd.s32 %v932_v57, %v926_v4  ;;  %v8423_v51 = vsel %vm6086_vm4, %v8079_v62, %v8167_v27 }
 0x103   : > { %v350_v61 = vxor.u32 2147483648, %v349_v6  ;;  %v910_v21 = vsel %vm909_vm12, 1, %v10983_v0  ;;  %v1480_v44 = vsel %vm1479_vm11, %v1478_v52, 0  ;;  %v8431_v47 = vsel %vm6086_vm4, %v8081_v29, %v8169_v42 }
 0x104   : > { %v912_v62 = vadd.s32 %v910_v21, %v904_v45  ;;  %v928_v27 = vshrl.u32 %v924_v25, 16  ;;  %v906_v19 = vshrl.u32 %v902_v55, 16  ;;  %vm913_vm13 = vc.u32 %v911_v50, %v907_v37 }
 0x105   : > { %v351_v38 = vsel %vm230_vm14, %v350_v61, %v349_v6  ;;  %v936_v52 = vsel %vm935_vm3, 1, %v10983_v0  ;;  %v914_v5 = vsel %vm913_vm13, 1, %v10983_v0  ;;  %v930_v29 = vshrl.u32 %v8401_v39, 16 }
 0x106   : > { %v8439_v36 = vsel %vm8337_vm7, %v8434_v18, %v351_v38  ;;  %v938_v42 = vadd.s32 %v936_v52, %v934_v10  ;;  %v908_v49 = vshrl.u32 %v903_v35, 16  ;;  %v916_v4 = vadd.s32 %v914_v5, %v912_v62 }
 0x107   : > { %v356_v12 = vmul.f32 %v8439_v36, %v8439_v36  ;;  %v8446_v34 = vadd.s32 %v933_v58, %v929_v33  ;;  %v941_v6 = vmul.u32 %v8327_v20, %v8415_v7  ;;  %v8452_v37 = vshrl.u32 %v1480_v44, 5 }
 0x108   : > { %v5990_v14 = vld.sshfl [vmem:[#allocation1 + $0x10] sm:$0xff pattern:$0x75316420]  ;;  %v5991_v15 = vld.sshfl [vmem:[#allocation1 + $0x18] sm:$0xff pattern:$0x75316420]  ;;  %v939_v25 = vadd.s32 %v938_v42, %v928_v27  ;;  %v917_v61 = vadd.s32 %v916_v4, %v906_v19  ;;  %vm371_vm5 = vweird.f32 %v8434_v18 }
 0x109   : > { %5997 = vst [vmem:[#allocation1 + $0x11] ss:$2 sm:$0xff] %v5336_v54  ;;  %v1482_v54 = vand.u32 31, %v1480_v44  ;;  %v357_v23 = vmul.f32 -0.001358992, %v356_v12  ;;  %v8460_v35 = vsel %vm6086_vm4, %v8331_v43, %v5990_v14  ;;  %v8464_v33 = vsel %vm6086_vm4, %v8333_v11, %v5991_v15 }
 0x10a   : > { %v364_v60 = vmul.f32 -0.00019511016, %v356_v12  ;;  %vm378_vm14 = vcmp.eq.s32.totalorder %v8417_v56, 2  ;;  %v940_v20 = vadd.s32 %v939_v25, %v930_v29  ;;  %v8469_v10 = vadd.s32 %v917_v61, %v908_v49 }
 0x10b   : > { %v8450_v55 = vsub.s32 32, %v1482_v54  ;;  %v358_v45 = vadd.f32 0.041655596, %v357_v23  ;;  %v1485_v58 = vshll.u32 %v10969_v24, %v1482_v54  ;;  %v1488_v38 = vshll.u32 %v10979_v26, %v1482_v54 }
 0x10c   : > { %v365_v63 = vadd.f32 0.008332121, %v364_v60  ;;  %vm375_vm15 = vcmp.eq.s32.totalorder %v8417_v56, 0  ;;  %v944_v43 = vadd.s32 1, %v940_v20  ;;  %v1491_v14 = vshll.u32 %v10977_v28, %v1482_v54 }
 0x10d   : > { %v359_v7 = vmul.f32 %v358_v45, %v356_v12  ;;  %v1486_v11 = vshrl.u32 %v10979_v26, %v8450_v55  ;;  %v1494_v15 = vshll.u32 %v10975_v30, %v1482_v54  ;;  %vm374_vm0 = vcmp.lt.s32.totalorder %v8417_v56, 2 }
 0x10e   : > { %v366_v50 = vmul.f32 %v365_v63, %v356_v12  ;;  %vm943_vm2 = vc.u32 %v8469_v10, %v8446_v34  ;;  %v1492_v27 = vshrl.u32 %v10975_v30, %v8450_v55  ;;  %v1495_v19 = vshrl.u32 %v10973_v32, %v8450_v55 }
 0x10f   : > { %v360_v21 = vadd.f32 -0.4999988, %v359_v7  ;;  %v945_v62 = vsel %vm943_vm2, %v944_v43, %v940_v20  ;;  %v1497_v52 = vshll.u32 %v10973_v32, %v1482_v54  ;;  %v1498_v23 = vshrl.u32 %v10971_v41, %v8450_v55 }
 0x110   : > { %v8454_v39 = vld.sshfl [vmem:[#allocation1 + $0x10] sm:$0xff pattern:$0x75316420]  ;;  %v8456_v57 = vld.sshfl [vmem:[#allocation1 + $0x18] sm:$0xff pattern:$0x75316420]  ;;  %v946_v42 = vadd.s32 %v945_v62, %v941_v6  ;;  %v6147_v60 = vpack.c.bf16 %v8460_v35, %v8423_v51  ;;  %v1496_v49 = vor.u32 %v1495_v19, %v1494_v15  ;;  %v1487_v63 = vor.u32 %v1486_v11, %v1485_v58 }
 0x111   : > { %11017 = vst [vmem:[#allocation14_spill] sm:$0xff] %v8454_v39  ;;  %v367_v44 = vadd.f32 -0.16666654, %v366_v50  ;;  %v361_v5 = vmul.f32 %v360_v21, %v356_v12  ;;  %vm1500_vm6 = vcmp.lt.s32.totalorder %v8452_v37, 1  ;;  %v8495_v4 = vshll.u32 %v1476_v13, 8 }
 0x112   : > { %11018 = vst [vmem:[#allocation15_spill] sm:$0xff] %v8456_v57  ;;  %v947_v54 = vadd.s32 536870912, %v946_v42  ;;  %vm1503_vm1 = vcmp.lt.s32.totalorder %v8452_v37, 4  ;;  %v1493_v20 = vor.u32 %v1492_v27, %v1491_v14  ;;  %v1499_v51 = vor.u32 %v1498_v23, %v1497_v52 }
 0x113   : > { %6040 = vst [vmem:[#allocation1 + $0x10] ss:$2 sm:$0xff] %v7592_v1  ;;  %v1489_v1 = vshrl.u32 %v10977_v28, %v8450_v55  ;;  %v368_v29 = vmul.f32 %v367_v44, %v356_v12  ;;  %v8497_v25 = vadd.f32 1.0, %v361_v5  ;;  %vm1502_vm7 = vcmp.lt.s32.totalorder %v8452_v37, 3 }
 0x114   : > { %v8509_v15 = vshrl.u32 %v947_v54, 30  ;;  %vm1501_vm9 = vcmp.lt.s32.totalorder %v8452_v37, 2  ;;  %v6148_v44 = vpack.c.bf16 %v8464_v33, %v8431_v47  ;;  %v1513_v27 = vsel %vm1503_vm1, %v1499_v51, 1326507024 }
 0x115   : > { %v369_v45 = vadd.f32 1.0, %v368_v29  ;;  %v8500_v61 = vor.u32 %v1489_v1, %v1488_v38  ;;  %v379_v13 = vxor.u32 2147483648, %v8497_v25  ;;  %v7297_v29 = vld [vmem:[%s10964_s1] sm:$0xff]  ;;  %v1514_v56 = vsel %vm1502_vm7, %v1496_v49, %v1513_v27 }
 0x116   : > { %v949_v14 = vshll.u32 %v8509_v15, 30  ;;  %vm6215_vm10 = vcmask 195584   ;;  %v1518_v54 = vshrl.u32 %v8495_v4, 16  ;;  %v1484_v51 = vshrl.u32 %v10969_v24, %v8450_v55 }
 0x117   : > { %v8506_v48 = vmul.f32 %v369_v45, %v8439_v36  ;;  %v1508_v21 = vsel %vm1500_vm6, %v1487_v63, %v8500_v61  ;;  %v1512_v47 = vsel %vm1500_vm6, %v8500_v61, %v1493_v20  ;;  %v1505_v55 = vsel %vm1503_vm1, %v1493_v20, 2102212464 }
 0x118   : > { %v950_v52 = vsub.s32 %v946_v42, %v949_v14  ;;  %v1517_v42 = vand.u32 65535, %v8495_v4  ;;  %v1515_v45 = vsel %vm1501_vm9, %v1512_v47, %v1514_v56  ;;  %v1504_v14 = vsel %vm1500_vm6, %v1484_v51, %v1487_v63 }
 0x119   : > { %v376_v58 = vxor.u32 2147483648, %v8506_v48  ;;  %v380_v38 = vsel %vm378_vm14, %v379_v13, %v8506_v48  ;;  %vm8594_vm2 = vcmp.le.f32.partialorder %v848_v3, 0.7853982  ;;  %v8607_v3 = vmul.f32 2.0, %v8219_v40 }
 0x11a   : > { %v6047_v12 = vld.sshfl [vmem:[#allocation1 + $0x10] sm:$0xff pattern:$0x75316420]  ;;  %v6048_v6 = vld.sshfl [vmem:[#allocation1 + $0x18] sm:$0xff pattern:$0x75316420] }
 0x11b   : > { %v6125_v35 = vsel %vm6086_vm4, %v6047_v12, 0.0  ;;  %v6126_v7 = vsel %vm6086_vm4, %v6048_v6, 0.0  ;;  %6054 = vst [vmem:[#allocation1 + $0x10] ss:$2 sm:$0xff] %v7595_v2  ;;  %v1509_v2 = vsel %vm1503_vm1, %v1496_v49, 920167782  ;;  %v377_v1 = vsel %vm375_vm15, %v8497_v25, %v376_v58 }
 0x11c   : > { %v6165_v50 = vpack.c.bf16 %v6125_v35, %v6125_v35  ;;  %v6166_v43 = vpack.c.bf16 %v6126_v7, %v6126_v7  ;;  %v1510_v62 = vsel %vm1502_vm7, %v1493_v20, %v1509_v2  ;;  %v381_v19 = vsel %vm374_vm0, %v377_v1, %v380_v38 }
 0x11d   : > { %v382_v33 = vsel %vm371_vm5, nan, %v381_v19  ;;  %v1511_v5 = vsel %vm1501_vm9, %v1508_v21, %v1510_v62  ;;  %vm951_vm8 = vcmp.lt.s32.totalorder %v950_v52, 0  ;;  %v952_v23 = vsub.s32 0, %v950_v52 }
 0x11e   : > { %v6229_v36 = vsel %vm6086_vm4, %v6165_v50, 0  ;;  %v6232_v11 = vsel %vm6086_vm4, %v6166_v43, 0  ;;  %5808 = vst [vmem:[#allocation1] ss:$2 sm:$0xff] %v382_v33  ;;  %v1542_v12 = vshrl.u32 %v1511_v5, 16  ;;  %v1519_v35 = vand.u32 65535, %v1515_v45 }
 0x11f   : > { %6320 = vmatpush.bf16.msra.mxu2 %v6229_v36  ;;  %6339 = vmatpush.bf16.msra.mxu3 %v6232_v11  ;;  %v953_v6 = vsel %vm951_vm8, %v952_v23, %v950_v52  ;;  %v1520_v7 = vshrl.u32 %v1515_v45, 16  ;;  %v1541_v49 = vand.u32 65535, %v1511_v5  ;;  %v942_v36 = vadd.s32 %v8446_v34, %v8469_v10 }
 0x120   : > { %v954_v50 = vclz %v953_v6  ;;  %v1544_v43 = vmul.u32 %v1542_v12, %v1517_v42  ;;  %v1523_v2 = vmul.u32 %v1519_v35, %v1518_v54  ;;  %v1546_v56 = vmul.u32 %v1542_v12, %v1518_v54 }
 0x121   : > { %v1522_v38 = vmul.u32 %v1520_v7, %v1517_v42  ;;  %v1524_v21 = vmul.u32 %v1520_v7, %v1518_v54  ;;  %v1543_v62 = vmul.u32 %v1541_v49, %v1517_v42  ;;  %v1545_v27 = vmul.u32 %v1541_v49, %v1518_v54 }
 0x122   : > { %v7132_v11 = vadd.s32 4294967294, %v954_v50  ;;  %v1527_v1 = vshll.u32 %v1523_v2, 16  ;;  %v1547_v33 = vshll.u32 %v1544_v43, 16  ;;  %v8568_v20 = vmul.f32 2.0, %v8434_v18 }
 0x123   : > { %6321 = vmatpush.bf16.msra.mxu2 %v6147_v60  ;;  %6340 = vmatpush.bf16.msra.mxu3 %v6148_v44  ;;  %v1521_v60 = vmul.u32 %v1519_v35, %v1517_v42  ;;  %v1525_v44 = vshll.u32 %v1522_v38, 16  ;;  %v1526_v23 = vshrl.u32 %v1522_v38, 16  ;;  %v1549_v42 = vshll.u32 %v1545_v27, 16 }
 0x124   : > { %vm7133_vm11 = vcmp.lt.s32.totalorder %v7132_v11, 0  ;;  %v1528_v51 = vshrl.u32 %v1523_v2, 16  ;;  %vm1551_vm13 = vc.u32 %v1543_v62, %v1547_v33  ;;  %v1553_v7 = vadd.s32 %v1547_v33, %v1543_v62 }
 0x125   : > { %v957_v19 = vsel %vm7133_vm11, 0, %v7132_v11  ;;  %vm1529_vm12 = vc.u32 %v1521_v60, %v1525_v44  ;;  %v1531_v47 = vadd.s32 %v1525_v44, %v1521_v60  ;;  %v1552_v60 = vsel %vm1551_vm13, 1, %v10983_v0  ;;  %v7298_v44 = vld [vmem:[%s10964_s1 + $0x8] sm:$0xff] }
 0x126   : > { %7239 = vmatmul.msk.bf16.vlgmr.msra.gmra.mxu2 %vm6215_vm10, %v7297_v29  ;;  %7241 = vmatmul.msk.bf16.vlgmr.msra.gmra.mxu3 %vm6215_vm10, %v7297_v29  ;;  %v958_v5 = vsub.s32 32, %v957_v19  ;;  %v959_v29 = vshll.u32 %v950_v52, %v957_v19  ;;  %v962_v34 = vsub.s32 4294967266, %v957_v19  ;;  %v1530_v10 = vsel %vm1529_vm12, 1, %v10983_v0 }
 0x127   : > { %v1532_v63 = vadd.s32 %v1530_v10, %v1524_v21  ;;  %vm1533_vm3 = vc.u32 %v1531_v47, %v1527_v1  ;;  %v1506_v54 = vsel %vm1502_vm7, %v8500_v61, %v1505_v55  ;;  %v1548_v12 = vshrl.u32 %v1544_v43, 16 }
 0x128   : > { %v960_v45 = vshrl.u32 %v942_v36, %v958_v5  ;;  %v963_v6 = vadd.s32 127, %v962_v34  ;;  %v1534_v35 = vsel %vm1533_vm3, 1, %v10983_v0  ;;  %v1554_v38 = vadd.s32 %v1552_v60, %v1546_v56 }
 0x129   : > { %v1536_v49 = vadd.s32 %v1534_v35, %v1532_v63  ;;  %vm1555_vm14 = vc.u32 %v1553_v7, %v1549_v42  ;;  %v1550_v1 = vshrl.u32 %v1545_v27, 16  ;;  %v3021_v19 = vand.u32 2139095040, %v8568_v20 }
 0x12a   : > { %v961_v50 = vor.u32 %v960_v45, %v959_v29  ;;  %v964_v52 = vshll.u32 %v963_v6, 23  ;;  %v1556_v2 = vsel %vm1555_vm14, 1, %v10983_v0  ;;  %v8582_v61 = vadd.s32 %v1553_v7, %v1549_v42 }
 0x12b   : > { %v1537_v21 = vadd.s32 %v1536_v49, %v1526_v23  ;;  %v1558_v62 = vadd.s32 %v1556_v2, %v1554_v38  ;;  %v1507_v43 = vsel %vm1501_vm9, %v1504_v14, %v1506_v54  ;;  %v3022_v5 = vshrl.u32 %v3021_v19, 23 }
 0x12c   : > { %v965_v36 = vor.u32 4788187, %v964_v52  ;;  %v968_v11 = vcvt.s32.f32 %v961_v50  ;;  %vm850_vm15 = vcmp.lt.s32.totalorder %v8219_v40, 0  ;;  %v1561_v23 = vmul.u32 %v8495_v4, %v1507_v43 }
 0x12d   : > { %v8580_v33 = vadd.s32 %v1537_v21, %v1528_v51  ;;  %v1559_v55 = vadd.s32 %v1558_v62, %v1548_v12  ;;  %v7173_v34 = vadd.s32 4294967169, %v3022_v5  ;;  %v972_v35 = vsub.s32 4, %v8509_v15 }
 0x12e   : > { %v966_v47 = vand.u32 2147483647, %v965_v36  ;;  %v3018_v50 = vand.u32 2147483647, %v8568_v20  ;;  %v3641_v21 = vand.u32 2139095040, %v8607_v3  ;;  %vm1470_vm3 = vcmp.lt.s32.totalorder %v8283_v16, 0 }
 0x12f   : > { %v1560_v27 = vadd.s32 %v1559_v55, %v1550_v1  ;;  %vm1563_vm0 = vc.u32 %v8580_v33, %v8582_v61  ;;  %v3028_v37 = vadd.s32 1, %v7173_v34  ;;  %v973_v54 = vsel %vm850_vm15, %v972_v35, %v8509_v15 }
 0x130   : > { %v969_v29 = vmul.f32 %v968_v11, %v966_v47  ;;  %v3025_v36 = vand.u32 8388607, %v3018_v50  ;;  %vm8688_vm13 = vcmp.le.f32.partialorder %v1468_v31, 0.7853982 }
 0x131   : > { %v1564_v63 = vadd.s32 1, %v1560_v27  ;;  %vm3029_vm6 = vcmp.gt.s32.totalorder %v3028_v37, 0 }
 0x132   : > { %v970_v10 = vxor.u32 2147483648, %v969_v29  ;;  %v3030_v42 = vsel %vm3029_vm6, %v3028_v37, 0  ;;  %v3642_v37 = vshrl.u32 %v3641_v21, 23  ;;  %v1562_v21 = vadd.s32 %v8582_v61, %v8580_v33 }
 0x133   : > { %v1565_v45 = vsel %vm1563_vm0, %v1564_v63, %v1560_v27  ;;  %v3032_v51 = vand.u32 31, %v3030_v42  ;;  %v8625_v11 = vshrl.u32 %v3030_v42, 5 }
 0x134   : > { %v971_v56 = vsel %vm850_vm15, %v970_v10, %v969_v29  ;;  %v1566_v6 = vadd.s32 %v1565_v45, %v1561_v23  ;;  %v8643_v29 = vsel %vm8594_vm2, 0, %v973_v54  ;;  %v3026_v45 = vor.u32 8388608, %v3025_v36 }
 0x135   : > { %v8603_v4 = vsel %vm8594_vm2, %v8219_v40, %v971_v56  ;;  %v8616_v60 = vsub.s32 32, %v3032_v51  ;;  %v3044_v1 = vshll.u32 %v10975_v30, %v3032_v51  ;;  %v3035_v15 = vshll.u32 %v10969_v24, %v3032_v51 }
 0x136   : > { %7240 = vmatmul.msk.bf16.gmra.mxu2 %vm6215_vm10, %v7298_v44  ;;  %7242 = vmatmul.msk.bf16.gmra.mxu3 %vm6215_vm10, %v7298_v44  ;;  %v1567_v7 = vadd.s32 536870912, %v1566_v6  ;;  %v8612_v52 = vmul.f32 %v8603_v4, %v8603_v4  ;;  %v3038_v62 = vshll.u32 %v10979_v26, %v3032_v51  ;;  %v3047_v19 = vshll.u32 %v10973_v32, %v3032_v51 }
 0x137   : > { %v3045_v40 = vshrl.u32 %v10973_v32, %v8616_v60  ;;  %v3048_v47 = vshrl.u32 %v10971_v41, %v8616_v60  ;;  %v3036_v55 = vshrl.u32 %v10979_v26, %v8616_v60  ;;  %v3039_v5 = vshrl.u32 %v10977_v28, %v8616_v60 }
 0x138   : > { %v8614_v49 = vshrl.u32 %v1567_v7, 30  ;;  %v977_v38 = vmul.f32 -0.001358992, %v8612_v52  ;;  %v984_v2 = vmul.f32 -0.00019511016, %v8612_v52  ;;  %v3041_v27 = vshll.u32 %v10977_v28, %v3032_v51 }
 0x139   : > { %v3042_v34 = vshrl.u32 %v10975_v30, %v8616_v60  ;;  %v3046_v63 = vor.u32 %v3045_v40, %v3044_v1  ;;  %vm3053_vm7 = vcmp.lt.s32.totalorder %v8625_v11, 4  ;;  %v8649_v35 = vor.u32 %v3036_v55, %v3035_v15 }
 0x13a   : > { %v1569_v12 = vshll.u32 %v8614_v49, 30  ;;  %v978_v10 = vadd.f32 0.041655596, %v977_v38  ;;  %v985_v42 = vadd.f32 0.008332121, %v984_v2  ;;  %v8651_v14 = vor.u32 %v3039_v5, %v3038_v62 }
 0x13b   : > { %v992_v7 = vadd.s32 3, %v8643_v29  ;;  %v3043_v54 = vor.u32 %v3042_v34, %v3041_v27  ;;  %vm3050_vm9 = vcmp.lt.s32.totalorder %v8625_v11, 1  ;;  %vm3052_vm8 = vcmp.lt.s32.totalorder %v8625_v11, 3 }
 0x13c   : > { %v1570_v44 = vsub.s32 %v1566_v6, %v1569_v12  ;;  %v3049_v6 = vor.u32 %v3048_v47, %v3047_v19  ;;  %v979_v12 = vmul.f32 %v978_v10, %v8612_v52  ;;  %v3059_v38 = vsel %vm3053_vm7, %v3046_v63, 920167782 }
 0x13d   : > { %v7185_v36 = vadd.s32 4294967169, %v3642_v37  ;;  %v8663_v1 = vshll.u32 %v3026_v45, 8  ;;  %v986_v40 = vmul.f32 %v985_v42, %v8612_v52  ;;  %vm3051_vm12 = vcmp.lt.s32.totalorder %v8625_v11, 2 }
 0x13e   : > { %vm1571_vm1 = vcmp.lt.s32.totalorder %v1570_v44, 0  ;;  %v1572_v43 = vsub.s32 0, %v1570_v44  ;;  %v3063_v2 = vsel %vm3053_vm7, %v3049_v6, 1326507024  ;;  %v3058_v62 = vsel %vm3050_vm9, %v8649_v35, %v8651_v14 }
 0x13f   : > { %v3060_v47 = vsel %vm3052_vm8, %v3043_v54, %v3059_v38  ;;  %v3062_v55 = vsel %vm3050_vm9, %v8651_v14, %v3043_v54  ;;  %v3064_v5 = vsel %vm3052_vm8, %v3046_v63, %v3063_v2  ;;  %v3648_v27 = vadd.s32 1, %v7185_v36 }
 0x140   : > { %v1573_v23 = vsel %vm1571_vm1, %v1572_v43, %v1570_v44  ;;  %v980_v43 = vadd.f32 -0.4999988, %v979_v12  ;;  %v8679_v34 = vand.u32 3, %v992_v7  ;;  %v3638_v37 = vand.u32 2147483647, %v8607_v3 }
 0x141   : > { %v1574_v56 = vclz %v1573_v23  ;;  %v3067_v45 = vand.u32 65535, %v8663_v1  ;;  %v3068_v6 = vshrl.u32 %v8663_v1, 16  ;;  %v3065_v12 = vsel %vm3051_vm12, %v3062_v55, %v3064_v5 }
 0x142   : > { %v981_v38 = vmul.f32 %v980_v43, %v8612_v52  ;;  %v1592_v36 = vsub.s32 4, %v8614_v49  ;;  %vm3649_vm14 = vcmp.gt.s32.totalorder %v3648_v27, 0  ;;  %v3034_v55 = vshrl.u32 %v10969_v24, %v8616_v60 }
 0x143   : > { %v7144_v51 = vadd.s32 4294967294, %v1574_v56  ;;  %v3061_v56 = vsel %vm3051_vm12, %v3058_v62, %v3060_v47  ;;  %vm998_vm1 = vcmp.eq.s32.totalorder %v8679_v34, 2 }
 0x144   : > { %v1593_v47 = vsel %vm1470_vm3, %v1592_v36, %v8614_v49  ;;  %v8710_v5 = vadd.f32 1.0, %v981_v38 }
 0x145   : > { %vm7145_vm11 = vcmp.lt.s32.totalorder %v7144_v51, 0 }
 0x146   : > { %v1577_v15 = vsel %vm7145_vm11, 0, %v7144_v51  ;;  %v1767_v51 = vand.u32 3, %v8391_v9  ;;  %v3070_v9 = vshrl.u32 %v3065_v12, 16  ;;  %vm994_vm11 = vcmp.lt.s32.totalorder %v8679_v34, 2 }
 0x147   : > { %v1578_v19 = vsub.s32 32, %v1577_v15  ;;  %v1579_v33 = vshll.u32 %v1570_v44, %v1577_v15  ;;  %v1582_v61 = vsub.s32 4294967266, %v1577_v15  ;;  %v987_v44 = vadd.f32 -0.16666654, %v986_v40 }
 0x148   : > { %vm1768_vm15 = vcmp.lt.s32.totalorder %v1767_v51, 2  ;;  %vm1769_vm0 = vcmp.eq.s32.totalorder %v1767_v51, 0  ;;  %vm1772_vm2 = vcmp.eq.s32.totalorder %v1767_v51, 2  ;;  %v3069_v15 = vand.u32 65535, %v3065_v12 }
 0x149   : > { %v1580_v10 = vshrl.u32 %v1562_v21, %v1578_v19  ;;  %v1583_v23 = vadd.s32 127, %v1582_v61  ;;  %v3091_v21 = vand.u32 65535, %v3061_v56  ;;  %v1771_v31 = vsel %vm1769_vm0, %v8497_v25, %v376_v58 }
 0x14a   : > { %v988_v62 = vmul.f32 %v987_v44, %v8612_v52  ;;  %v3092_v61 = vshrl.u32 %v3061_v56, 16  ;;  %v3650_v58 = vsel %vm3649_vm14, %v3648_v27, 0  ;;  %v3055_v25 = vsel %vm3053_vm7, %v3043_v54, 2102212464 }
 0x14b   : > { %v1581_v63 = vor.u32 %v1580_v10, %v1579_v33  ;;  %v1584_v7 = vshll.u32 %v1583_v23, 23  ;;  %v1774_v33 = vsel %vm1772_vm2, %v379_v13, %v8506_v48  ;;  %v3071_v48 = vmul.u32 %v3069_v15, %v3067_v45 }
 0x14c   : > { %v1775_v43 = vsel %vm1768_vm15, %v1771_v31, %v1774_v33  ;;  %v3072_v13 = vmul.u32 %v3070_v9, %v3067_v45  ;;  %v3073_v23 = vmul.u32 %v3069_v15, %v3068_v6  ;;  %v3095_v49 = vmul.u32 %v3091_v21, %v3068_v6 }
 0x14d   : > { %v1585_v2 = vor.u32 4788187, %v1584_v7  ;;  %v1588_v40 = vcvt.s32.f32 %v1581_v63  ;;  %v8714_v52 = vsel %vm371_vm5, nan, %v1775_v43  ;;  %v989_v44 = vadd.f32 1.0, %v988_v62 }
 0x14e   : > { %v3093_v63 = vmul.u32 %v3091_v21, %v3067_v45  ;;  %v3094_v60 = vmul.u32 %v3092_v61, %v3067_v45  ;;  %v3054_v27 = vsel %vm3050_vm9, %v3034_v55, %v8649_v35  ;;  %v3074_v7 = vmul.u32 %v3070_v9, %v3068_v6 }
 0x14f   : > { %v1586_v19 = vand.u32 2147483647, %v1585_v2  ;;  %v3075_v51 = vshll.u32 %v3072_v13, 16  ;;  %v3077_v12 = vshll.u32 %v3073_v23, 16  ;;  %v3056_v54 = vsel %vm3052_vm8, %v8651_v14, %v3055_v25 }
 0x150   : > { %v3096_v36 = vmul.u32 %v3092_v61, %v3068_v6  ;;  %v3097_v2 = vshll.u32 %v3094_v60, 16  ;;  %v3099_v35 = vshll.u32 %v3095_v49, 16  ;;  %v3076_v14 = vshrl.u32 %v3072_v13, 16 }
 0x151   : > { %v1589_v10 = vmul.f32 %v1588_v40, %v1586_v19  ;;  %vm3079_vm5 = vc.u32 %v3071_v48, %v3075_v51  ;;  %v3081_v21 = vadd.s32 %v3075_v51, %v3071_v48  ;;  %v8739_v62 = vmul.f32 %v989_v44, %v8603_v4 }
 0x152   : > { %v3080_v31 = vsel %vm3079_vm5, 1, %v10983_v0  ;;  %vm3101_vm6 = vc.u32 %v3093_v63, %v3097_v2  ;;  %v3103_v15 = vadd.s32 %v3097_v2, %v3093_v63  ;;  %v3078_v43 = vshrl.u32 %v3073_v23, 16 }
 0x153   : > { %v1590_v56 = vxor.u32 2147483648, %v1589_v10  ;;  %v3082_v6 = vadd.s32 %v3080_v31, %v3074_v7  ;;  %vm3083_vm7 = vc.u32 %v3081_v21, %v3077_v12  ;;  %v3102_v9 = vsel %vm3101_vm6, 1, %v10983_v0 }
 0x154   : > { %v3084_v33 = vsel %vm3083_vm7, 1, %v10983_v0  ;;  %v3104_v61 = vadd.s32 %v3102_v9, %v3096_v36  ;;  %vm3105_vm9 = vc.u32 %v3103_v15, %v3099_v35  ;;  %v3057_v48 = vsel %vm3051_vm12, %v3054_v27, %v3056_v54 }
 0x155   : > { %v1591_v38 = vsel %vm1470_vm3, %v1590_v56, %v1589_v10  ;;  %v3086_v55 = vadd.s32 %v3084_v33, %v3082_v6  ;;  %v3098_v10 = vshrl.u32 %v3094_v60, 16  ;;  %v3106_v13 = vsel %vm3105_vm9, 1, %v10983_v0 }
 0x156   : > { %v8729_v45 = vsel %vm8688_vm13, %v8283_v16, %v1591_v38  ;;  %v3652_v56 = vand.u32 31, %v3650_v58  ;;  %v3100_v44 = vshrl.u32 %v3095_v49, 16  ;;  %v3108_v7 = vadd.s32 %v3106_v13, %v3104_v61 }
 0x157   : > { %v8733_v40 = vmul.f32 %v8729_v45, %v8729_v45  ;;  %v3087_v4 = vadd.s32 %v3086_v55, %v3076_v14  ;;  %vm995_vm8 = vcmp.eq.s32.totalorder %v8679_v34, 0  ;;  %v8749_v51 = vmul.f32 2.0, %v8283_v16 }
 0x158   : > { %v8751_v23 = vadd.s32 %v3103_v15, %v3099_v35  ;;  %v8755_v60 = vand.u32 8388607, %v3638_v37  ;;  %v8757_v11 = vsub.s32 32, %v3652_v56  ;;  %v999_v27 = vxor.u32 2147483648, %v8710_v5 }
 0x159   : > { %v1604_v19 = vmul.f32 -0.00019511016, %v8733_v40  ;;  %v1597_v25 = vmul.f32 -0.001358992, %v8733_v40  ;;  %v1595_v12 = vsel %vm8688_vm13, 0, %v1593_v47  ;;  %v8762_v49 = vadd.s32 %v3087_v4, %v3078_v43 }
 0x15a   : > { %v3109_v38 = vadd.s32 %v3108_v7, %v3098_v10  ;;  %v996_v54 = vxor.u32 2147483648, %v8739_v62  ;;  %v3111_v36 = vmul.u32 %v8663_v1, %v3057_v48  ;;  %v8766_v2 = vshrl.u32 %v3650_v58, 5 }
 0x15b   : > { %v1605_v63 = vadd.f32 0.008332121, %v1604_v19  ;;  %v1598_v16 = vadd.f32 0.041655596, %v1597_v25  ;;  %v3655_v31 = vshll.u32 %v10969_v24, %v3652_v56  ;;  %v3658_v42 = vshll.u32 %v10979_v26, %v3652_v56 }
 0x15c   : > { %v3110_v35 = vadd.s32 %v3109_v38, %v3100_v44  ;;  %vm3113_vm12 = vc.u32 %v8762_v49, %v8751_v23  ;;  %v3659_v47 = vshrl.u32 %v10977_v28, %v8757_v11  ;;  %v3661_v15 = vshll.u32 %v10977_v28, %v3652_v56 }
 0x15d   : > { %v1606_v21 = vmul.f32 %v1605_v63, %v8733_v40  ;;  %v3662_v1 = vshrl.u32 %v10975_v30, %v8757_v11  ;;  %v3656_v14 = vshrl.u32 %v10979_v26, %v8757_v11  ;;  %v3664_v6 = vshll.u32 %v10975_v30, %v3652_v56 }
 0x15e   : > { %v3114_v58 = vadd.s32 1, %v3110_v35  ;;  %v3665_v9 = vshrl.u32 %v10973_v32, %v8757_v11  ;;  %v1000_v19 = vsel %vm998_vm1, %v999_v27, %v8739_v62  ;;  %v1612_v33 = vadd.s32 3, %v1595_v12 }
 0x15f   : > { %v2383_v61 = vand.u32 3, %v8643_v29  ;;  %v3667_v43 = vshll.u32 %v10973_v32, %v3652_v56  ;;  %v1599_v55 = vmul.f32 %v1598_v16, %v8733_v40  ;;  %v3668_v48 = vshrl.u32 %v10971_v41, %v8757_v11 }
 0x160   : > { %v3115_v10 = vsel %vm3113_vm12, %v3114_v58, %v3110_v35  ;;  %v3666_v25 = vor.u32 %v3665_v9, %v3664_v6  ;;  %v8794_v63 = vor.u32 %v3659_v47, %v3658_v42  ;;  %v8796_v4 = vor.u32 %v3662_v1, %v3661_v15 }
 0x161   : > { %v3116_v13 = vadd.s32 %v3115_v10, %v3111_v36  ;;  %vm3673_vm3 = vcmp.lt.s32.totalorder %v8766_v2, 4  ;;  %v1607_v44 = vadd.f32 -0.16666654, %v1606_v21  ;;  %v3657_v7 = vor.u32 %v3656_v14, %v3655_v31 }
 0x162   : > { %v3669_v38 = vor.u32 %v3668_v48, %v3667_v43  ;;  %vm3670_vm13 = vcmp.lt.s32.totalorder %v8766_v2, 1  ;;  %v8800_v29 = vand.u32 3, %v1612_v33  ;;  %v3646_v16 = vor.u32 8388608, %v8755_v60 }
 0x163   : > { %v3117_v56 = vadd.s32 536870912, %v3116_v13  ;;  %vm3672_vm14 = vcmp.lt.s32.totalorder %v8766_v2, 3  ;;  %v997_v36 = vsel %vm995_vm8, %v8710_v5, %v996_v54  ;;  %v1600_v35 = vadd.f32 -0.4999988, %v1599_v55 }
 0x164   : > { %v3679_v42 = vsel %vm3673_vm3, %v3666_v25, 920167782  ;;  %v3683_v21 = vsel %vm3673_vm3, %v3669_v38, 1326507024  ;;  %vm2385_vm15 = vcmp.eq.s32.totalorder %v2383_v61, 0  ;;  %vm3671_vm0 = vcmp.lt.s32.totalorder %v8766_v2, 2 }
 0x165   : > { %v8811_v31 = vshrl.u32 %v3117_v56, 30  ;;  %v3682_v60 = vsel %vm3670_vm13, %v8794_v63, %v8796_v4  ;;  %v1608_v47 = vmul.f32 %v1607_v44, %v8733_v40  ;;  %v3678_v15 = vsel %vm3670_vm13, %v3657_v7, %v8794_v63 }
 0x166   : > { %v3680_v1 = vsel %vm3672_vm14, %v8796_v4, %v3679_v42  ;;  %v3684_v58 = vsel %vm3672_vm14, %v3666_v25, %v3683_v21  ;;  %v8829_v14 = vsel %vm994_vm11, %v997_v36, %v1000_v19  ;;  %vm2388_vm2 = vcmp.eq.s32.totalorder %v2383_v61, 2 }
 0x167   : > { %v8831_v6 = vand.u32 3, %v1595_v12  ;;  %v3119_v9 = vshll.u32 %v8811_v31, 30  ;;  %v1601_v33 = vmul.f32 %v1600_v35, %v8733_v40  ;;  %vm2384_vm5 = vcmp.lt.s32.totalorder %v2383_v61, 2 }
 0x168   : > { %v3685_v43 = vsel %vm3671_vm0, %v3682_v60, %v3684_v58  ;;  %v8837_v55 = vshll.u32 %v3646_v16, 8  ;;  %v2387_v10 = vsel %vm2385_vm15, %v8710_v5, %v996_v54  ;;  %v3681_v34 = vsel %vm3671_vm0, %v3678_v15, %v3680_v1 }
 0x169   : > { %v8841_v25 = vsub.s32 %v3116_v13, %v3119_v9  ;;  %v3689_v12 = vand.u32 65535, %v3685_v43  ;;  %v1609_v19 = vadd.f32 1.0, %v1608_v47  ;;  %v2390_v40 = vsel %vm2388_vm2, %v999_v27, %v8739_v62 }
 0x16a   : > { %v3687_v48 = vand.u32 65535, %v8837_v55  ;;  %v3688_v44 = vshrl.u32 %v8837_v55, 16  ;;  %v3690_v54 = vshrl.u32 %v3685_v43, 16  ;;  %v3711_v13 = vand.u32 65535, %v3681_v34 }
 0x16b   : > { %vm3121_vm6 = vcmp.lt.s32.totalorder %v8841_v25, 0  ;;  %v3122_v38 = vsub.s32 0, %v8841_v25  ;;  %v8852_v56 = vadd.f32 1.0, %v1601_v33  ;;  %v3654_v16 = vshrl.u32 %v10969_v24, %v8757_v11 }
 0x16c   : > { %v8856_v36 = vmul.u32 %v3689_v12, %v3688_v44  ;;  %v3712_v35 = vshrl.u32 %v3681_v34, 16  ;;  %v8859_v5 = vsel %vm2384_vm5, %v2387_v10, %v2390_v40  ;;  %v3691_v27 = vmul.u32 %v3689_v12, %v3687_v48 }
 0x16d   : > { %v3123_v62 = vsel %vm3121_vm6, %v3122_v38, %v8841_v25  ;;  %v3692_v42 = vmul.u32 %v3690_v54, %v3687_v48  ;;  %v8863_v21 = vmul.f32 %v1609_v19, %v8729_v45  ;;  %v3112_v60 = vadd.s32 %v8751_v23, %v8762_v49 }
 0x16e   : > { %v3124_v47 = vclz %v3123_v62  ;;  %v8867_v15 = vmul.u32 %v3712_v35, %v3687_v48  ;;  %v3694_v11 = vmul.u32 %v3690_v54, %v3688_v44  ;;  %v3697_v58 = vshll.u32 %v8856_v36, 16 }
 0x16f   : > { %v3695_v1 = vshll.u32 %v3692_v42, 16  ;;  %v8870_v61 = vmul.u32 %v3711_v13, %v3688_v44  ;;  %v1619_v9 = vxor.u32 2147483648, %v8852_v56  ;;  %v3674_v43 = vsel %vm3670_vm13, %v3654_v16, %v3657_v7 }
 0x170   : > { %v7174_v33 = vadd.s32 4294967294, %v3124_v47  ;;  %v3713_v45 = vmul.u32 %v3711_v13, %v3687_v48  ;;  %vm1618_vm1 = vcmp.eq.s32.totalorder %v8800_v29, 2  ;;  %v3696_v10 = vshrl.u32 %v3692_v42, 16  ;;  %v8892_v42 = vld [vmem:[%s7583_s7 + $0x20] sm:$0xff] }
 0x171   : > { %vm3699_vm7 = vc.u32 %v3691_v27, %v3695_v1  ;;  %v3701_v23 = vadd.s32 %v3695_v1, %v3691_v27  ;;  %v3716_v49 = vmul.u32 %v3712_v35, %v3688_v44  ;;  %vm1615_vm9 = vcmp.eq.s32.totalorder %v8800_v29, 0 }
 0x172   : > { %vm3001_vm8 = vcmp.eq.s32.totalorder %v8831_v6, 0  ;;  %vm3004_vm11 = vcmp.eq.s32.totalorder %v8831_v6, 2  ;;  %vm7175_vm12 = vcmp.lt.s32.totalorder %v7174_v33, 0  ;;  %v3700_v34 = vsel %vm3699_vm7, 1, %v10983_v0 }
 0x173   : > { %v3717_v12 = vshll.u32 %v8867_v15, 16  ;;  %v4261_v7 = vand.u32 2139095040, %v8749_v51  ;;  %v3127_v19 = vsel %vm7175_vm12, 0, %v7174_v33  ;;  %v3702_v40 = vadd.s32 %v3700_v34, %v3694_v11 }
 0x174   : > { %vm3703_vm13 = vc.u32 %v3701_v23, %v3697_v58  ;;  %v3719_v48 = vshll.u32 %v8870_v61, 16  ;;  %v3128_v44 = vsub.s32 32, %v3127_v19  ;;  %v3129_v38 = vshll.u32 %v8841_v25, %v3127_v19 }
 0x175   : > { %v3132_v54 = vsub.s32 4294967266, %v3127_v19  ;;  %v3704_v13 = vsel %vm3703_vm13, 1, %v10983_v0  ;;  %v1616_v16 = vxor.u32 2147483648, %v8863_v21  ;;  %vm3020_vm15 = vcmp.lt.s32.totalorder %v8568_v20, 0 }
 0x176   : > { %v3675_v35 = vsel %vm3673_vm3, %v8796_v4, 2102212464  ;;  %v3698_v62 = vshrl.u32 %v8856_v36, 16  ;;  %v3706_v27 = vadd.s32 %v3704_v13, %v3702_v40  ;;  %vm991_vm2 = vweird.f32 %v8892_v42 }
 0x177   : > { %vm1614_vm5 = vcmp.lt.s32.totalorder %v8800_v29, 2  ;;  %v3130_v25 = vshrl.u32 %v3112_v60, %v3128_v44  ;;  %v3133_v47 = vadd.s32 127, %v3132_v54  ;;  %vm3721_vm6 = vc.u32 %v3713_v45, %v3717_v12 }
 0x178   : > { %v3723_v11 = vadd.s32 %v3717_v12, %v3713_v45  ;;  %vm3000_vm7 = vcmp.lt.s32.totalorder %v8831_v6, 2  ;;  %v3707_v1 = vadd.s32 %v3706_v27, %v3696_v10  ;;  %v3718_v58 = vshrl.u32 %v8867_v15, 16 }
 0x179   : > { %v3722_v4 = vsel %vm3721_vm6, 1, %v10983_v0  ;;  %v4262_v33 = vshrl.u32 %v4261_v7, 23  ;;  %v3131_v36 = vor.u32 %v3130_v25, %v3129_v38  ;;  %v3134_v23 = vshll.u32 %v3133_v47, 23 }
 0x17a   : > { %v3724_v34 = vadd.s32 %v3722_v4, %v3716_v49  ;;  %vm3725_vm3 = vc.u32 %v3723_v11, %v3719_v48  ;;  %v3142_v19 = vsub.s32 4, %v8811_v31  ;;  %v3676_v60 = vsel %vm3672_vm14, %v8794_v63, %v3675_v35 }
 0x17b   : > { %v3726_v45 = vsel %vm3725_vm3, 1, %v10983_v0  ;;  %v7197_v12 = vadd.s32 4294967169, %v4262_v33  ;;  %v3135_v40 = vor.u32 4788187, %v3134_v23  ;;  %v3138_v10 = vcvt.s32.f32 %v3131_v36 }
 0x17c   : > { %v3720_v15 = vshrl.u32 %v8870_v61, 16  ;;  %v3728_v44 = vadd.s32 %v3726_v45, %v3724_v34  ;;  %v8905_v54 = vadd.s32 %v3707_v1, %v3698_v62  ;;  %v8907_v7 = vadd.s32 %v3723_v11, %v3719_v48  ;;  %v8937_v1 = vld [vmem:[%s7583_s7 + $0x40] sm:$0xff] }
 0x17d   : > { %v10968_v49 = vand.u32 2147483647, %v8749_v51  ;;  %v4268_v38 = vadd.s32 1, %v7197_v12  ;;  %v1620_v63 = vsel %vm1618_vm1, %v1619_v9, %v8863_v21  ;;  %v3136_v13 = vand.u32 2147483647, %v3135_v40  ;;  %11023 = vst [vmem:[#allocation16_spill] sm:$0xff] %v8937_v1 }
 0x17e   : > { %v3677_v35 = vsel %vm3671_vm0, %v3674_v43, %v3676_v60  ;;  %v3729_v61 = vadd.s32 %v3728_v44, %v3718_v58  ;;  %v1617_v48 = vsel %vm1615_vm9, %v8852_v56, %v1616_v16  ;;  %v3003_v62 = vsel %vm3001_vm8, %v8852_v56, %v1616_v16 }
 0x17f   : > { %v3006_v27 = vsel %vm3004_vm11, %v1619_v9, %v8863_v21  ;;  %vm4269_vm14 = vcmp.gt.s32.totalorder %v4268_v38, 0  ;;  %v3139_v25 = vmul.f32 %v3138_v10, %v3136_v13  ;;  %v3143_v2 = vsel %vm3020_vm15, %v3142_v19, %v8811_v31 }
 0x180   : > { %v3730_v43 = vadd.s32 %v3729_v61, %v3720_v15  ;;  %v4270_v47 = vsel %vm4269_vm14, %v4268_v38, 0  ;;  %v3731_v11 = vmul.u32 %v8837_v55, %v3677_v35  ;;  %vm3733_vm0 = vc.u32 %v8905_v54, %v8907_v7 }
 0x181   : > { %v4265_v16 = vand.u32 8388607, %v10968_v49  ;;  %v4272_v56 = vand.u32 31, %v4270_v47  ;;  %vm1611_vm1 = vweird.f32 %v8937_v1  ;;  %vm3019_vm9 = vcmp.le.f32.partialorder %v3018_v50, 0.7853982 }
 0x182   : > { %v3140_v21 = vxor.u32 2147483648, %v3139_v25  ;;  %v3734_v31 = vadd.s32 1, %v3730_v43  ;;  %v1002_v55 = vsel %vm991_vm2, nan, %v8829_v14  ;;  %v1621_v9 = vsel %vm1614_vm5, %v1617_v48, %v1620_v63 }
 0x183   : > { %v8950_v58 = vsel %vm991_vm2, nan, %v8859_v5  ;;  %v4273_v4 = vsub.s32 32, %v4272_v56  ;;  %v3007_v33 = vsel %vm3000_vm7, %v3003_v62, %v3006_v27  ;;  %v8956_v36 = vsel %vm3019_vm9, 0, %v3143_v2  ;;  %v8983_v27 = vld [vmem:[%s7583_s7 + $0x18] sm:$0xff] }
 0x184   : > { %v3141_v50 = vsel %vm3020_vm15, %v3140_v21, %v3139_v25  ;;  %v3735_v23 = vsel %vm3733_vm0, %v3734_v31, %v3730_v43  ;;  %v4266_v34 = vor.u32 8388608, %v4265_v16  ;;  %v8961_v19 = vshrl.u32 %v4270_v47, 5 }
 0x185   : > { %v8959_v14 = vsel %vm3019_vm9, %v8568_v20, %v3141_v50  ;;  %v3736_v29 = vadd.s32 %v3735_v23, %v3731_v11  ;;  %v4278_v6 = vshll.u32 %v10979_v26, %v4272_v56  ;;  %v4281_v60 = vshll.u32 %v10977_v28, %v4272_v56 }
 0x186   : > { %v8965_v5 = vmul.f32 %v8959_v14, %v8959_v14  ;;  %v4284_v45 = vshll.u32 %v10975_v30, %v4272_v56  ;;  %v4279_v40 = vshrl.u32 %v10977_v28, %v4273_v4  ;;  %v4282_v10 = vshrl.u32 %v10975_v30, %v4273_v4 }
 0x187   : > { %v3737_v12 = vadd.s32 536870912, %v3736_v29  ;;  %v4285_v15 = vshrl.u32 %v10973_v32, %v4273_v4  ;;  %v4287_v63 = vshll.u32 %v10973_v32, %v4272_v56  ;;  %v4288_v13 = vshrl.u32 %v10971_v41, %v4273_v4 }
 0x188   : > { %v3147_v44 = vmul.f32 -0.001358992, %v8965_v5  ;;  %v3154_v38 = vmul.f32 -0.00019511016, %v8965_v5  ;;  %v3162_v35 = vadd.s32 3, %v8956_v36  ;;  %v4275_v48 = vshll.u32 %v10969_v24, %v4272_v56 }
 0x189   : > { %v8978_v61 = vshrl.u32 %v3737_v12, 30  ;;  %v4276_v62 = vshrl.u32 %v10979_v26, %v4273_v4  ;;  %v8987_v25 = vsel %vm1611_vm1, nan, %v1621_v9  ;;  %v8991_v2 = vsel %vm1611_vm1, nan, %v3007_v33 }
 0x18a   : > { %v3148_v43 = vadd.f32 0.041655596, %v3147_v44  ;;  %v3155_v47 = vadd.f32 0.008332121, %v3154_v38  ;;  %v4280_v16 = vor.u32 %v4279_v40, %v4278_v6  ;;  %v4283_v21 = vor.u32 %v4282_v10, %v4281_v60 }
 0x18b   : > { %v3739_v11 = vshll.u32 %v8978_v61, 30  ;;  %v4286_v31 = vor.u32 %v4285_v15, %v4284_v45  ;;  %v4289_v56 = vor.u32 %v4288_v13, %v4287_v63  ;;  %vm4290_vm8 = vcmp.lt.s32.totalorder %v8961_v19, 1  ;;  %v9007_v60 = vld.sshfl [vmem:[#allocation1] sm:$0xff pattern:$0x75316420] }
 0x18c   : > { %vm4293_vm11 = vcmp.lt.s32.totalorder %v8961_v19, 4  ;;  %v8996_v50 = vshll.u32 %v4266_v34, 8  ;;  %v8998_v9 = vand.u32 3, %v3162_v35  ;;  %v4277_v33 = vor.u32 %v4276_v62, %v4275_v48  ;;  %v9019_v15 = vld.sshfl [vmem:[#allocation1 + $0x8] sm:$0xff pattern:$0x75316420] }
 0x18d   : > { %v9000_v23 = vsub.s32 %v3736_v29, %v3739_v11  ;;  %v696_v12 = vand.u32 2139095040, %v8983_v27  ;;  %v3149_v44 = vmul.f32 %v3148_v43, %v8965_v5  ;;  %v3156_v6 = vmul.f32 %v3155_v47, %v8965_v5  ;;  %5823 = vst [vmem:[#allocation1] ss:$2 sm:$0xff] %v1002_v55 }
 0x18e   : > { %vm4291_vm12 = vcmp.lt.s32.totalorder %v8961_v19, 2  ;;  %vm4292_vm13 = vcmp.lt.s32.totalorder %v8961_v19, 3  ;;  %v4299_v29 = vsel %vm4293_vm11, %v4286_v31, 920167782  ;;  %v4302_v45 = vsel %vm4290_vm8, %v4280_v16, %v4283_v21 }
 0x18f   : > { %vm3741_vm15 = vcmp.lt.s32.totalorder %v9000_v23, 0  ;;  %v3742_v34 = vsub.s32 0, %v9000_v23  ;;  %vm3640_vm2 = vcmp.lt.s32.totalorder %v8607_v3, 0  ;;  %v4303_v40 = vsel %vm4293_vm11, %v4289_v56, 1326507024 }
 0x190   : > { %v4307_v10 = vand.u32 65535, %v8996_v50  ;;  %v4274_v63 = vshrl.u32 %v10969_v24, %v4273_v4  ;;  %v4304_v13 = vsel %vm4292_vm13, %v4286_v31, %v4303_v40  ;;  %v4308_v35 = vshrl.u32 %v8996_v50, 16 }
 0x191   : > { %v3743_v38 = vsel %vm3741_vm15, %v3742_v34, %v9000_v23  ;;  %v3150_v48 = vadd.f32 -0.4999988, %v3149_v44  ;;  %v3157_v62 = vadd.f32 -0.16666654, %v3156_v6  ;;  %v4305_v47 = vsel %vm4291_vm12, %v4302_v45, %v4304_v13 }
 0x192   : > { %v3744_v43 = vclz %v3743_v38  ;;  %v4298_v11 = vsel %vm4290_vm8, %v4277_v33, %v4280_v16  ;;  %v4300_v56 = vsel %vm4292_vm13, %v4283_v21, %v4299_v29  ;;  %v4309_v34 = vand.u32 65535, %v4305_v47 }
 0x193   : > { %v4310_v4 = vshrl.u32 %v4305_v47, 16  ;;  %v3732_v31 = vadd.s32 %v8907_v7, %v8905_v54  ;;  %v10981_v55 = vand.u32 2147483647, %v8983_v27  ;;  %v697_v44 = vshrl.u32 %v696_v12, 23 }
 0x194   : > { %v7186_v40 = vadd.s32 4294967294, %v3744_v43  ;;  %v3762_v6 = vsub.s32 4, %v8978_v61  ;;  %v4294_v45 = vsel %vm4290_vm8, %v4274_v63, %v4277_v33  ;;  %v4295_v38 = vsel %vm4293_vm11, %v4283_v21, 2102212464 }
 0x195   : > { %v4312_v13 = vmul.u32 %v4310_v4, %v4307_v10  ;;  %v3151_v29 = vmul.f32 %v3150_v48, %v8965_v5  ;;  %v3158_v47 = vmul.f32 %v3157_v62, %v8965_v5  ;;  %v4301_v54 = vsel %vm4291_vm12, %v4298_v11, %v4300_v56  ;;  %v9053_v62 = vld.sshfl [vmem:[#allocation1] sm:$0xff pattern:$0x75316420]  ;;  %v9060_v24 = vld.sshfl [vmem:[#allocation1 + $0x8] sm:$0xff pattern:$0x75316420] }
 0x196   : > { %vm7187_vm5 = vcmp.lt.s32.totalorder %v7186_v40, 0  ;;  %vm9046_vm6 = vcmp.le.f32.partialorder %v3638_v37, 0.7853982  ;;  %v4311_v33 = vmul.u32 %v4309_v34, %v4307_v10  ;;  %v9050_v63 = vmul.u32 %v4309_v34, %v4308_v35  ;;  %11026 = vst [vmem:[#allocation17_spill] sm:$0xff] %v9053_v62 }
 0x197   : > { %v3747_v12 = vsel %vm7187_vm5, 0, %v7186_v40  ;;  %v4315_v21 = vshll.u32 %v4312_v13, 16  ;;  %v4331_v5 = vand.u32 65535, %v4301_v54  ;;  %v3763_v11 = vsel %vm3640_vm2, %v3762_v6, %v8978_v61  ;;  %11027 = vst [vmem:[#allocation18_spill] sm:$0xff] %v9060_v24 }
 0x198   : > { %v3748_v43 = vsub.s32 32, %v3747_v12  ;;  %v3749_v48 = vshll.u32 %v9000_v23, %v3747_v12  ;;  %v3752_v49 = vsub.s32 4294967266, %v3747_v12  ;;  %v4296_v37 = vsel %vm4292_vm13, %v4280_v16, %v4295_v38  ;;  %5835 = vst [vmem:[#allocation1] ss:$2 sm:$0xff] %v8987_v25 }
 0x199   : > { %v4314_v56 = vmul.u32 %v4310_v4, %v4308_v35  ;;  %v4332_v40 = vshrl.u32 %v4301_v54, 16  ;;  %v9062_v34 = vadd.f32 1.0, %v3151_v29  ;;  %v3159_v41 = vadd.f32 1.0, %v3158_v47 }
 0x19a   : > { %v3750_v32 = vshrl.u32 %v3732_v31, %v3748_v43  ;;  %v3753_v23 = vadd.s32 127, %v3752_v49  ;;  %v4316_v12 = vshrl.u32 %v4312_v13, 16  ;;  %v4317_v30 = vshll.u32 %v9050_v63, 16 }
 0x19b   : > { %vm4319_vm7 = vc.u32 %v4311_v33, %v4315_v21  ;;  %v4321_v28 = vadd.s32 %v4315_v21, %v4311_v33  ;;  %v4333_v4 = vmul.u32 %v4331_v5, %v4307_v10  ;;  %vm3168_vm3 = vcmp.eq.s32.totalorder %v8998_v9, 2 }
 0x19c   : > { %v3751_v61 = vor.u32 %v3750_v32, %v3749_v48  ;;  %v3754_v6 = vshll.u32 %v3753_v23, 23  ;;  %v4320_v16 = vsel %vm4319_vm7, 1, %v10983_v0  ;;  %v4334_v29 = vmul.u32 %v4332_v40, %v4307_v10 }
 0x19d   : > { %v4322_v38 = vadd.s32 %v4320_v16, %v4314_v56  ;;  %vm4323_vm14 = vc.u32 %v4321_v28, %v4317_v30  ;;  %v4335_v47 = vmul.u32 %v4331_v5, %v4308_v35  ;;  %v7128_v13 = vadd.s32 4294967169, %v697_v44 }
 0x19e   : > { %v3755_v31 = vor.u32 4788187, %v3754_v6  ;;  %v3758_v49 = vcvt.s32.f32 %v3751_v61  ;;  %v4324_v25 = vsel %vm4323_vm14, 1, %v10983_v0  ;;  %v4336_v43 = vmul.u32 %v4332_v40, %v4308_v35 }
 0x19f   : > { %v4326_v54 = vadd.s32 %v4324_v25, %v4322_v38  ;;  %v4337_v26 = vshll.u32 %v4334_v29, 16  ;;  %v4339_v33 = vshll.u32 %v4335_v47, 16  ;;  %v9071_v21 = vsel %vm9046_vm6, 0, %v3763_v11  ;;  %v9082_v44 = vld.sshfl [vmem:[#allocation1] sm:$0xff pattern:$0x75316420] }
 0x1a0   : > { %v3756_v32 = vand.u32 2147483647, %v3755_v31  ;;  %v4318_v48 = vshrl.u32 %v9050_v63, 16  ;;  %v9076_v28 = vand.u32 8388607, %v10981_v55  ;;  %v9080_v30 = vsel %vm4291_vm12, %v4294_v45, %v4296_v37  ;;  %11028 = vst [vmem:[#allocation19_spill] sm:$0xff] %v9082_v44 }
 0x1a1   : > { %v4327_v10 = vadd.s32 %v4326_v54, %v4316_v12  ;;  %vm4341_vm0 = vc.u32 %v4333_v4, %v4337_v26  ;;  %v4343_v35 = vadd.s32 %v4337_v26, %v4333_v4  ;;  %v9084_v5 = vld.sshfl [vmem:[#allocation1 + $0x8] sm:$0xff pattern:$0x75316420]  ;;  %v9087_v11 = vmul.f32 %v3159_v41, %v8959_v14 }
 0x1a2   : > { %11029 = vst [vmem:[#allocation20_spill] sm:$0xff] %v9084_v5  ;;  %vm3165_vm1 = vcmp.eq.s32.totalorder %v8998_v9, 0  ;;  %v3759_v63 = vmul.f32 %v3758_v49, %v3756_v32  ;;  %v4342_v56 = vsel %vm4341_vm0, 1, %v10983_v0  ;;  %v703_v19 = vadd.s32 1, %v7128_v13 }
 0x1a3   : > { %5866 = vst [vmem:[#allocation1 + $0x1] ss:$2 sm:$0xff] %v8714_v52  ;;  %v10982_v45 = vxor.u32 2147483648, %v9062_v34  ;;  %v4338_v37 = vshrl.u32 %v4334_v29, 16  ;;  %v4344_v40 = vadd.s32 %v4342_v56, %v4336_v43  ;;  %vm4345_vm9 = vc.u32 %v4343_v35, %v4339_v33 }
 0x1a4   : > { %v3760_v26 = vxor.u32 2147483648, %v3759_v63  ;;  %v4340_v23 = vshrl.u32 %v4335_v47, 16  ;;  %v4346_v12 = vsel %vm4345_vm9, 1, %v10983_v0  ;;  %vm704_vm8 = vcmp.gt.s32.totalorder %v703_v19, 0 }
 0x1a5   : > { %v9094_v41 = vadd.s32 %v4327_v10, %v4318_v48  ;;  %v9096_v14 = vadd.s32 %v4343_v35, %v4339_v33  ;;  %v4348_v61 = vadd.s32 %v4346_v12, %v4344_v40  ;;  %v705_v6 = vsel %vm704_vm8, %v703_v19, 0 }
 0x1a6   : > { %vm3164_vm11 = vcmp.lt.s32.totalorder %v8998_v9, 2  ;;  %v3761_v52 = vsel %vm3640_vm2, %v3760_v26, %v3759_v63  ;;  %v4351_v16 = vmul.u32 %v8996_v50, %v9080_v30  ;;  %v701_v4 = vor.u32 8388608, %v9076_v28 }
 0x1a7   : > { %v707_v38 = vand.u32 31, %v705_v6  ;;  %v10986_v29 = vxor.u32 2147483648, %v9087_v11  ;;  %v9108_v47 = vsel %vm9046_vm6, %v8607_v3, %v3761_v52  ;;  %v3782_v31 = vadd.s32 3, %v9071_v21 }
 0x1a8   : > { %v4349_v49 = vadd.s32 %v4348_v61, %v4338_v37  ;;  %v3170_v25 = vsel %vm3168_vm3, %v10982_v45, %v9087_v11  ;;  %v3766_v50 = vmul.f32 %v9108_v47, %v9108_v47  ;;  %v9118_v13 = vshrl.u32 %v705_v6, 5 }
 0x1a9   : > { %v9120_v54 = vsub.s32 32, %v707_v38  ;;  %vm4353_vm12 = vc.u32 %v9094_v41, %v9096_v14  ;;  %v11030_v32 = vmov 2475754826   ;;  %v11031_v28 = vmov 2131351028  }
 0x1aa   : > { %v4350_v43 = vadd.s32 %v4349_v49, %v4340_v23  ;;  %v9124_v7 = vld.sshfl [vmem:[#allocation1] sm:$0xff pattern:$0x75316420]  ;;  %v9126_v33 = vld.sshfl [vmem:[#allocation1 + $0x8] sm:$0xff pattern:$0x75316420]  ;;  %v713_v48 = vshll.u32 %v11030_v32, %v707_v38  ;;  %v716_v30 = vshll.u32 %v11031_v28, %v707_v38  ;;  %v3167_v55 = vsel %vm3165_vm1, %v9062_v34, %v10986_v29 }
 0x1ab   : > { %v3767_v10 = vmul.f32 -0.001358992, %v3766_v50  ;;  %v3774_v35 = vmul.f32 -0.00019511016, %v3766_v50  ;;  %5881 = vst [vmem:[#allocation1 + $0x1] ss:$2 sm:$0xff] %v8950_v58  ;;  %v714_v26 = vshrl.u32 %v11031_v28, %v9120_v54  ;;  %vm3161_vm5 = vweird.f32 %v8568_v20 }
 0x1ac   : > { %v11032_v63 = vmov 2102212464   ;;  %v11033_v19 = vmov 920167782   ;;  %v4354_v40 = vadd.s32 1, %v4350_v43  ;;  %v9139_v52 = vand.u32 3, %v3782_v31 }
 0x1ad   : > { %v719_v56 = vshll.u32 %v11032_v63, %v707_v38  ;;  %v722_v37 = vshll.u32 %v11033_v19, %v707_v38  ;;  %v717_v23 = vshrl.u32 %v11032_v63, %v9120_v54  ;;  %v720_v12 = vshrl.u32 %v11033_v19, %v9120_v54 }
 0x1ae   : > { %v3768_v61 = vadd.f32 0.041655596, %v3767_v10  ;;  %v3775_v6 = vadd.f32 0.008332121, %v3774_v35  ;;  %v11034_v58 = vmov 1326507024   ;;  %v4355_v45 = vsel %vm4353_vm12, %v4354_v40, %v4350_v43 }
 0x1af   : > { %v723_v49 = vshrl.u32 %v11034_v58, %v9120_v54  ;;  %v11035_v0 = vmov 683565275   ;;  %v711_v10 = vshrl.u32 %v11030_v32, %v9120_v54  ;;  %v4356_v44 = vadd.s32 %v4355_v45, %v4351_v16 }
 0x1b0   : > { %v710_v5 = vshll.u32 %v11035_v0, %v707_v38  ;;  %v3769_v31 = vmul.f32 %v3768_v61, %v3766_v50  ;;  %v3776_v35 = vmul.f32 %v3775_v6, %v3766_v50  ;;  %v9154_v24 = vor.u32 %v714_v26, %v713_v48 }
 0x1b1   : > { %v9156_v62 = vor.u32 %v717_v23, %v716_v30  ;;  %v721_v1 = vor.u32 %v720_v12, %v719_v56  ;;  %v724_v8 = vor.u32 %v723_v49, %v722_v37  ;;  %vm725_vm13 = vcmp.lt.s32.totalorder %v9118_v13, 1 }
 0x1b2   : > { %v3770_v29 = vadd.f32 -0.4999988, %v3769_v31  ;;  %v3777_v57 = vadd.f32 -0.16666654, %v3776_v35  ;;  %vm3784_vm15 = vcmp.lt.s32.totalorder %v9139_v52, 2  ;;  %v4357_v43 = vadd.s32 536870912, %v4356_v44 }
 0x1b3   : > { %vm728_vm2 = vcmp.lt.s32.totalorder %v9118_v13, 4  ;;  %v3171_v45 = vsel %vm3164_vm11, %v3167_v55, %v3170_v25  ;;  %v9164_v16 = vld.sshfl [vmem:[#allocation1] sm:$0xff pattern:$0x75316420]  ;;  %v9168_v48 = vor.u32 %v711_v10, %v710_v5  ;;  %vm727_vm6 = vcmp.lt.s32.totalorder %v9118_v13, 3 }
 0x1b4   : > { %11036 = vst [vmem:[#allocation21_spill] sm:$0xff] %v9164_v16  ;;  %v9166_v38 = vld.sshfl [vmem:[#allocation1 + $0x8] sm:$0xff pattern:$0x75316420]  ;;  %v3771_v30 = vmul.f32 %v3770_v29, %v3766_v50  ;;  %v3778_v56 = vmul.f32 %v3777_v57, %v3766_v50  ;;  %v9170_v37 = vshrl.u32 %v4357_v43, 30  ;;  %vm726_vm7 = vcmp.lt.s32.totalorder %v9118_v13, 2 }
 0x1b5   : > { %11037 = vst [vmem:[#allocation22_spill] sm:$0xff] %v9166_v38  ;;  %v734_v9 = vsel %vm728_vm2, %v721_v1, 920167782  ;;  %v738_v55 = vsel %vm728_vm2, %v724_v8, 1326507024  ;;  %v9179_v25 = vshll.u32 %v701_v4, 8  ;;  %v733_v8 = vsel %vm725_vm13, %v9168_v48, %v9154_v24 }
 0x1b6   : > { %5893 = vst [vmem:[#allocation1 + $0x1] ss:$2 sm:$0xff] %v8991_v2  ;;  %v9181_v5 = vadd.f32 1.0, %v3771_v30  ;;  %v3779_v29 = vadd.f32 1.0, %v3778_v56  ;;  %v4359_v57 = vshll.u32 %v9170_v37, 30  ;;  %v737_v2 = vsel %vm725_vm13, %v9154_v24, %v9156_v62 }
 0x1b7   : > { %vm3785_vm3 = vcmp.eq.s32.totalorder %v9139_v52, 0  ;;  %vm3788_vm14 = vcmp.eq.s32.totalorder %v9139_v52, 2  ;;  %v739_v4 = vsel %vm727_vm6, %v721_v1, %v738_v55  ;;  %v735_v23 = vsel %vm727_vm6, %v9156_v62, %v734_v9 }
 0x1b8   : > { %v9197_v50 = vmul.f32 %v3779_v29, %v9108_v47  ;;  %v10987_v40 = vxor.u32 2147483648, %v9181_v5  ;;  %v4360_v26 = vsub.s32 %v4356_v44, %v4359_v57  ;;  %v3172_v12 = vsel %vm3161_vm5, nan, %v3171_v45  ;;  %v9230_v29 = vld [vmem:[%s7583_s7 + $0x38] sm:$0xff] }
 0x1b9   : > { %v740_v61 = vsel %vm726_vm7, %v737_v2, %v739_v4  ;;  %v742_v6 = vand.u32 65535, %v9179_v25  ;;  %v9209_v1 = vshrl.u32 %v9179_v25, 16  ;;  %v736_v35 = vsel %vm726_vm7, %v733_v8, %v735_v23 }
 0x1ba   : > { %v10988_v47 = vxor.u32 2147483648, %v9197_v50  ;;  %v3790_v44 = vsel %vm3788_vm14, %v10987_v40, %v9197_v50  ;;  %vm4361_vm0 = vcmp.lt.s32.totalorder %v4360_v26, 0  ;;  %v4362_v49 = vsub.s32 0, %v4360_v26 }
 0x1bb   : > { %v744_v30 = vand.u32 65535, %v740_v61  ;;  %v745_v56 = vshrl.u32 %v740_v61, 16  ;;  %vm3781_vm1 = vweird.f32 %v8607_v3  ;;  %v767_v4 = vshrl.u32 %v736_v35, 16 }
 0x1bc   : > { %v3787_v43 = vsel %vm3785_vm3, %v9181_v5, %v10988_v47  ;;  %v4363_v45 = vsel %vm4361_vm0, %v4362_v49, %v4360_v26  ;;  %v766_v61 = vand.u32 65535, %v736_v35  ;;  %v1316_v40 = vand.u32 2139095040, %v9230_v29 }
 0x1bd   : > { %v9215_v10 = vld.sshfl [vmem:[#allocation1] sm:$0xff pattern:$0x75316420]  ;;  %v9217_v31 = vld.sshfl [vmem:[#allocation1 + $0x8] sm:$0xff pattern:$0x75316420]  ;;  %v3791_v9 = vsel %vm3784_vm15, %v3787_v43, %v3790_v44  ;;  %v4364_v55 = vclz %v4363_v45  ;;  %v746_v57 = vmul.u32 %v744_v30, %v742_v6  ;;  %v747_v2 = vmul.u32 %v745_v56, %v742_v6 }
 0x1be   : > { %11038 = vst [vmem:[#allocation23_spill] sm:$0xff] %v9215_v10  ;;  %v9233_v8 = vmul.u32 %v744_v30, %v9209_v1  ;;  %v3792_v52 = vsel %vm3781_vm1, nan, %v3791_v9  ;;  %v749_v44 = vmul.u32 %v745_v56, %v9209_v1  ;;  %v9242_v47 = vmul.u32 %v767_v4, %v742_v6 }
 0x1bf   : > { %11039 = vst [vmem:[#allocation24_spill] sm:$0xff] %v9217_v31  ;;  %v7198_v23 = vadd.s32 4294967294, %v4364_v55  ;;  %v750_v49 = vshll.u32 %v747_v2, 16  ;;  %v11040_v35 = vmov 0   ;;  %v709_v9 = vshrl.u32 %v11035_v0, %v9120_v54 }
 0x1c0   : > { %5923 = vst [vmem:[#allocation1] ss:$2 sm:$0xff] %v3172_v12  ;;  %v4352_v12 = vadd.s32 %v9096_v14, %v9094_v41  ;;  %v752_v43 = vshll.u32 %v9233_v8, 16  ;;  %v772_v39 = vshll.u32 %v9242_v47, 16  ;;  %vm4260_vm12 = vcmp.lt.s32.totalorder %v8749_v51, 0 }
 0x1c1   : > { %vm7199_vm9 = vcmp.lt.s32.totalorder %v7198_v23, 0  ;;  %vm754_vm8 = vc.u32 %v746_v57, %v750_v49  ;;  %v756_v30 = vadd.s32 %v750_v49, %v746_v57  ;;  %v768_v49 = vmul.u32 %v766_v61, %v742_v6 }
 0x1c2   : > { %v4367_v45 = vsel %vm7199_vm9, 0, %v7198_v23  ;;  %v755_v10 = vsel %vm754_vm8, 1, %v11040_v35  ;;  %v4382_v23 = vsub.s32 4, %v9170_v37  ;;  %v770_v54 = vmul.u32 %v766_v61, %v9209_v1 }
 0x1c3   : > { %v4368_v55 = vsub.s32 32, %v4367_v45  ;;  %v4369_v31 = vshll.u32 %v4360_v26, %v4367_v45  ;;  %v4372_v41 = vsub.s32 4294967266, %v4367_v45  ;;  %vm758_vm11 = vc.u32 %v756_v30, %v752_v43 }
 0x1c4   : > { %v730_v26 = vsel %vm728_vm2, %v9156_v62, 2102212464  ;;  %v757_v57 = vadd.s32 %v755_v10, %v749_v44  ;;  %v1317_v45 = vshrl.u32 %v1316_v40, 23  ;;  %v759_v46 = vsel %vm758_vm11, 1, %v11040_v35 }
 0x1c5   : > { %v4370_v56 = vshrl.u32 %v4352_v12, %v4368_v55  ;;  %v4373_v16 = vadd.s32 127, %v4372_v41  ;;  %v11041_v12 = vand.u32 2147483647, %v8749_v51  ;;  %v729_v40 = vsel %vm725_vm13, %v709_v9, %v9168_v48 }
 0x1c6   : > { %v731_v6 = vsel %vm727_vm6, %v9154_v24, %v730_v26  ;;  %v761_v61 = vadd.s32 %v759_v46, %v757_v57  ;;  %v771_v43 = vmul.u32 %v767_v4, %v9209_v1  ;;  %vm776_vm2 = vc.u32 %v768_v49, %v772_v39 }
 0x1c7   : > { %v9244_v14 = vld.sshfl [vmem:[#allocation1] sm:$0xff pattern:$0x75316420]  ;;  %v9247_v38 = vld.sshfl [vmem:[#allocation1 + $0x8] sm:$0xff pattern:$0x75316420]  ;;  %v4371_v22 = vor.u32 %v4370_v56, %v4369_v31  ;;  %v9282_v48 = vsel %vm726_vm7, %v729_v40, %v731_v6  ;;  %v778_v4 = vadd.s32 %v772_v39, %v768_v49 }
 0x1c8   : > { %5938 = vst [vmem:[#allocation1] ss:$2 sm:$0xff] %v3792_v52  ;;  %v4374_v17 = vshll.u32 %v4373_v16, 23  ;;  %vm9261_vm15 = vcmp.le.f32.partialorder %v11041_v12, 0.7853982  ;;  %v4383_v16 = vsel %vm4260_vm12, %v4382_v23, %v9170_v37  ;;  %v751_v31 = vshrl.u32 %v747_v2, 16 }
 0x1c9   : > { %v4378_v10 = vcvt.s32.f32 %v4371_v22  ;;  %v4385_v22 = vsel %vm9261_vm15, 0, %v4383_v16  ;;  %v9278_v37 = vand.u32 3, %v8956_v36  ;;  %v774_v30 = vshll.u32 %v770_v54, 16 }
 0x1ca   : > { %v4375_v62 = vor.u32 4788187, %v4374_v17  ;;  %v7140_v17 = vadd.s32 4294967169, %v1317_v45  ;;  %v1313_v24 = vand.u32 2147483647, %v9230_v29  ;;  %v753_v46 = vshrl.u32 %v9233_v8, 16 }
 0x1cb   : > { %v762_v2 = vadd.s32 %v761_v61, %v751_v31  ;;  %v777_v1 = vsel %vm776_vm2, 1, %v11040_v35  ;;  %v4402_v9 = vadd.s32 3, %v4385_v22  ;;  %vm4559_vm13 = vcmp.eq.s32.totalorder %v9278_v37, 0 }
 0x1cc   : > { %v4376_v44 = vand.u32 2147483647, %v4375_v62  ;;  %v779_v56 = vadd.s32 %v777_v1, %v771_v43  ;;  %v1323_v23 = vadd.s32 1, %v7140_v17  ;;  %v773_v36 = vshrl.u32 %v9242_v47, 16 }
 0x1cd   : > { %v775_v26 = vshrl.u32 %v770_v54, 16  ;;  %vm780_vm6 = vc.u32 %v778_v4, %v774_v30  ;;  %vm4562_vm7 = vcmp.eq.s32.totalorder %v9278_v37, 2  ;;  %v9298_v57 = vadd.s32 %v762_v2, %v753_v46 }
 0x1ce   : > { %v4379_v55 = vmul.f32 %v4378_v10, %v4376_v44  ;;  %v781_v8 = vsel %vm780_vm6, 1, %v11040_v35  ;;  %vm1324_vm3 = vcmp.gt.s32.totalorder %v1323_v23, 0  ;;  %v9300_v49 = vadd.s32 %v778_v4, %v774_v30 }
 0x1cf   : > { %v783_v47 = vadd.s32 %v781_v8, %v779_v56  ;;  %v9305_v54 = vand.u32 3, %v9071_v21  ;;  %v786_v12 = vmul.u32 %v9179_v25, %v9282_v48  ;;  %v1325_v62 = vsel %vm1324_vm3, %v1323_v23, 0 }
 0x1d0   : > { %v4380_v41 = vxor.u32 2147483648, %v4379_v55  ;;  %v9309_v10 = vand.u32 3, %v4402_v9  ;;  %v9311_v52 = vand.u32 3, %v4385_v22  ;;  %v1327_v40 = vand.u32 31, %v1325_v62 }
 0x1d1   : > { %v784_v16 = vadd.s32 %v783_v47, %v773_v36  ;;  %v11044_v61 = vxor.u32 2147483648, %v9087_v11  ;;  %v11045_v21 = vxor.u32 2147483648, %v9062_v34  ;;  %vm788_vm14 = vc.u32 %v9298_v57, %v9300_v49 }
 0x1d2   : > { %v4381_v13 = vsel %vm4260_vm12, %v4380_v41, %v4379_v55  ;;  %v1320_v17 = vand.u32 8388607, %v1313_v24  ;;  %v9331_v22 = vsub.s32 32, %v1327_v40  ;;  %vm5175_vm0 = vcmp.eq.s32.totalorder %v9305_v54, 0 }
 0x1d3   : > { %v9296_v39 = vsel %vm9261_vm15, %v8749_v51, %v4381_v13  ;;  %v9318_v44 = vsel %vm4559_vm13, %v9062_v34, %v11044_v61  ;;  %v9325_v25 = vsel %vm4562_vm7, %v11045_v21, %v9087_v11  ;;  %v785_v43 = vadd.s32 %v784_v16, %v775_v26 }
 0x1d4   : > { %v4386_v45 = vmul.f32 %v9296_v39, %v9296_v39  ;;  %v9334_v48 = vshrl.u32 %v1325_v62, 5  ;;  %v1333_v34 = vshll.u32 %v11030_v32, %v1327_v40  ;;  %vm4408_vm9 = vcmp.eq.s32.totalorder %v9309_v10, 2 }
 0x1d5   : > { %v789_v11 = vadd.s32 1, %v785_v43  ;;  %v1334_v46 = vshrl.u32 %v11031_v28, %v9331_v22  ;;  %v1336_v2 = vshll.u32 %v11031_v28, %v1327_v40  ;;  %v1339_v1 = vshll.u32 %v11032_v63, %v1327_v40 }
 0x1d6   : > { %v4387_v6 = vmul.f32 -0.001358992, %v4386_v45  ;;  %v4394_v31 = vmul.f32 -0.00019511016, %v4386_v45  ;;  %vm4558_vm8 = vcmp.lt.s32.totalorder %v9278_v37, 2  ;;  %v1337_v9 = vshrl.u32 %v11032_v63, %v9331_v22 }
 0x1d7   : > { %v1340_v56 = vshrl.u32 %v11033_v19, %v9331_v22  ;;  %vm4405_vm11 = vcmp.eq.s32.totalorder %v9309_v10, 0  ;;  %vm5174_vm12 = vcmp.lt.s32.totalorder %v9305_v54, 2  ;;  %v790_v23 = vsel %vm788_vm14, %v789_v11, %v785_v43  ;;  %v9431_v37 = vld.sshfl [vmem:[#allocation1 + $0x8] sm:$0xff pattern:$0x75316420] }
 0x1d8   : > { %v4388_v30 = vadd.f32 0.041655596, %v4387_v6  ;;  %v4395_v55 = vadd.f32 0.008332121, %v4394_v31  ;;  %v1330_v36 = vshll.u32 %v11035_v0, %v1327_v40  ;;  %v1331_v26 = vshrl.u32 %v11030_v32, %v9331_v22  ;;  %11049 = vst [vmem:[#allocation26_spill] sm:$0xff] %v9431_v37 }
 0x1d9   : > { %v1342_v13 = vshll.u32 %v11033_v19, %v1327_v40  ;;  %vm4404_vm15 = vcmp.lt.s32.totalorder %v9309_v10, 2  ;;  %vm5178_vm2 = vcmp.eq.s32.totalorder %v9305_v54, 2  ;;  %v791_v62 = vadd.s32 %v790_v23, %v786_v12 }
 0x1da   : > { %v4389_v4 = vmul.f32 %v4388_v30, %v4386_v45  ;;  %v4396_v41 = vmul.f32 %v4395_v55, %v4386_v45  ;;  %vm4401_vm13 = vweird.f32 %v8749_v51  ;;  %v1321_v16 = vor.u32 8388608, %v1320_v17 }
 0x1db   : > { %v9359_v6 = vor.u32 %v1334_v46, %v1333_v34  ;;  %v1341_v31 = vor.u32 %v1340_v56, %v1339_v1  ;;  %v1343_v61 = vshrl.u32 %v11034_v58, %v9331_v22  ;;  %v792_v30 = vadd.s32 536870912, %v791_v62 }
 0x1dc   : > { %v4390_v8 = vadd.f32 -0.4999988, %v4389_v4  ;;  %v4397_v47 = vadd.f32 -0.16666654, %v4396_v41  ;;  %v9363_v40 = vor.u32 %v1337_v9, %v1336_v2  ;;  %v1332_v55 = vor.u32 %v1331_v26, %v1330_v36 }
 0x1dd   : > { %v1344_v11 = vor.u32 %v1343_v61, %v1342_v13  ;;  %vm1345_vm6 = vcmp.lt.s32.totalorder %v9334_v48, 1  ;;  %vm1348_vm7 = vcmp.lt.s32.totalorder %v9334_v48, 4  ;;  %v9369_v34 = vshrl.u32 %v792_v30, 30 }
 0x1de   : > { %v4391_v21 = vmul.f32 %v4390_v8, %v4386_v45  ;;  %v4398_v43 = vmul.f32 %v4397_v47, %v4386_v45  ;;  %vm1347_vm3 = vcmp.lt.s32.totalorder %v9334_v48, 3  ;;  %vm1346_vm14 = vcmp.lt.s32.totalorder %v9334_v48, 2 }
 0x1df   : > { %v1354_v45 = vsel %vm1348_vm7, %v1341_v31, 920167782  ;;  %v1358_v46 = vsel %vm1348_vm7, %v1344_v11, 1326507024  ;;  %v9377_v2 = vshll.u32 %v1321_v16, 8  ;;  %v794_v41 = vshll.u32 %v9369_v34, 30 }
 0x1e0   : > { %v9367_v12 = vadd.f32 1.0, %v4391_v21  ;;  %v4399_v17 = vadd.f32 1.0, %v4398_v43  ;;  %v1357_v9 = vsel %vm1345_vm6, %v9359_v6, %v9363_v40  ;;  %v11046_v56 = vxor.u32 2147483648, %v9197_v50 }
 0x1e1   : > { %v11047_v36 = vxor.u32 2147483648, %v9181_v5  ;;  %v1353_v26 = vsel %vm1345_vm6, %v1332_v55, %v9359_v6  ;;  %v1359_v13 = vsel %vm1347_vm3, %v1341_v31, %v1358_v46  ;;  %v9409_v16 = vsub.s32 %v791_v62, %v794_v41  ;;  %v9418_v31 = vld.sshfl [vmem:[#allocation1] sm:$0xff pattern:$0x75316420] }
 0x1e2   : > { %v9380_v1 = vmul.f32 %v4399_v17, %v9296_v39  ;;  %v4409_v4 = vxor.u32 2147483648, %v9367_v12  ;;  %v5177_v23 = vsel %vm5175_vm0, %v9181_v5, %v11046_v56  ;;  %v1355_v5 = vsel %vm1347_vm3, %v9363_v40, %v1354_v45  ;;  %11048 = vst [vmem:[#allocation25_spill] sm:$0xff] %v9418_v31 }
 0x1e3   : > { %v5180_v39 = vsel %vm5178_vm2, %v11047_v36, %v9197_v50  ;;  %v4565_v50 = vsel %vm4558_vm8, %v9318_v44, %v9325_v25  ;;  %v1360_v61 = vsel %vm1346_vm14, %v1357_v9, %v1359_v13  ;;  %v1362_v21 = vand.u32 65535, %v9377_v2 }
 0x1e4   : > { %v4406_v8 = vxor.u32 2147483648, %v9380_v1  ;;  %v4410_v47 = vsel %vm4408_vm9, %v4409_v4, %v9380_v1  ;;  %v1363_v43 = vshrl.u32 %v9377_v2, 16  ;;  %v5181_v30 = vsel %vm5174_vm12, %v5177_v23, %v5180_v39 }
 0x1e5   : > { %vm796_vm0 = vcmp.lt.s32.totalorder %v9409_v16, 0  ;;  %v797_v44 = vsub.s32 0, %v9409_v16  ;;  %vm5791_vm9 = vcmp.eq.s32.totalorder %v9311_v52, 0  ;;  %v1356_v11 = vsel %vm1346_vm14, %v1353_v26, %v1355_v5 }
 0x1e6   : > { %v4407_v62 = vsel %vm4405_vm11, %v9367_v12, %v4406_v8  ;;  %v1364_v17 = vand.u32 65535, %v1360_v61  ;;  %v1365_v45 = vshrl.u32 %v1360_v61, 16  ;;  %v1329_v41 = vshrl.u32 %v11035_v0, %v9331_v22 }
 0x1e7   : > { %v4411_v25 = vsel %vm4404_vm15, %v4407_v62, %v4410_v47  ;;  %v798_v46 = vsel %vm796_vm0, %v797_v44, %v9409_v16  ;;  %v9446_v9 = vmul.f32 2.0, %v8983_v27  ;;  %v4566_v39 = vsel %vm3161_vm5, nan, %v4565_v50 }
 0x1e8   : > { %v4412_v54 = vsel %vm4401_vm13, nan, %v4411_v25  ;;  %v799_v10 = vclz %v798_v46  ;;  %v1366_v56 = vmul.u32 %v1364_v17, %v1362_v21  ;;  %v1367_v23 = vmul.u32 %v1365_v45, %v1362_v21 }
 0x1e9   : > { %5950 = vst [vmem:[#allocation1] ss:$2 sm:$0xff] %v4412_v54  ;;  %v9448_v36 = vmul.u32 %v1364_v17, %v1363_v43  ;;  %v9454_v26 = vsel %vm3781_vm1, nan, %v5181_v30  ;;  %vm5794_vm8 = vcmp.eq.s32.totalorder %v9311_v52, 2  ;;  %vm695_vm11 = vcmp.lt.s32.totalorder %v8983_v27, 0 }
 0x1ea   : > { %v1387_v22 = vshrl.u32 %v1356_v11, 16  ;;  %v787_v13 = vadd.s32 %v9300_v49, %v9298_v57  ;;  %v7129_v47 = vadd.s32 4294967294, %v799_v10  ;;  %v1369_v5 = vmul.u32 %v1365_v45, %v1363_v43 }
 0x1eb   : > { %v1370_v61 = vshll.u32 %v1367_v23, 16  ;;  %v1349_v62 = vsel %vm1345_vm6, %v1329_v41, %v1332_v55  ;;  %v1372_v20 = vshll.u32 %v9448_v36, 16  ;;  %v1386_v50 = vand.u32 65535, %v1356_v11 }
 0x1ec   : > { %v3486_v3 = vand.u32 2139095040, %v9446_v9  ;;  %v11050_v30 = vand.u32 2147483647, %v8983_v27  ;;  %vm7130_vm1 = vcmp.lt.s32.totalorder %v7129_v47, 0  ;;  %v1350_v57 = vsel %vm1348_vm7, %v9363_v40, 2102212464 }
 0x1ed   : > { %vm1374_vm12 = vc.u32 %v1366_v56, %v1370_v61  ;;  %v1376_v49 = vadd.s32 %v1370_v61, %v1366_v56  ;;  %v802_v25 = vsel %vm7130_vm1, 0, %v7129_v47  ;;  %v817_v55 = vsub.s32 4, %v9369_v34 }
 0x1ee   : > { %vm9466_vm5 = vcmp.le.f32.partialorder %v11050_v30, 0.7853982  ;;  %v1375_v11 = vsel %vm1374_vm12, 1, %v11040_v35  ;;  %v1389_v17 = vmul.u32 %v1387_v22, %v1362_v21  ;;  %vm5790_vm15 = vcmp.lt.s32.totalorder %v9311_v52, 2 }
 0x1ef   : > { %v803_v45 = vsub.s32 32, %v802_v25  ;;  %v804_v54 = vshll.u32 %v9409_v16, %v802_v25  ;;  %v807_v46 = vsub.s32 4294967266, %v802_v25  ;;  %v1377_v41 = vadd.s32 %v1375_v11, %v1369_v5 }
 0x1f0   : > { %v9477_v10 = vld.sshfl [vmem:[#allocation1] sm:$0xff pattern:$0x75316420]  ;;  %v9479_v30 = vld.sshfl [vmem:[#allocation1 + $0x8] sm:$0xff pattern:$0x75316420]  ;;  %v1351_v40 = vsel %vm1347_vm3, %v9359_v6, %v1350_v57  ;;  %vm1378_vm2 = vc.u32 %v1376_v49, %v1372_v20  ;;  %v1388_v56 = vmul.u32 %v1386_v50, %v1362_v21  ;;  %v1390_v47 = vmul.u32 %v1386_v50, %v1363_v43 }
 0x1f1   : > { %11053 = vst [vmem:[#allocation27_spill] sm:$0xff] %v9477_v10  ;;  %v5796_v61 = vsel %vm5794_vm8, %v4409_v4, %v9380_v1  ;;  %v805_v16 = vshrl.u32 %v787_v13, %v803_v45  ;;  %v808_v5 = vadd.s32 127, %v807_v46  ;;  %v1371_v25 = vshrl.u32 %v1367_v23, 16 }
 0x1f2   : > { %11054 = vst [vmem:[#allocation28_spill] sm:$0xff] %v9479_v30  ;;  %v5793_v11 = vsel %vm5791_vm9, %v9367_v12, %v4406_v8  ;;  %v1379_v6 = vsel %vm1378_vm2, 1, %v11040_v35  ;;  %v1391_v21 = vmul.u32 %v1387_v22, %v1363_v43  ;;  %v1392_v20 = vshll.u32 %v1389_v17, 16 }
 0x1f3   : > { %5981 = vst [vmem:[#allocation1 + $0x1] ss:$2 sm:$0xff] %v4566_v39  ;;  %v806_v50 = vor.u32 %v805_v16, %v804_v54  ;;  %v809_v57 = vshll.u32 %v808_v5, 23  ;;  %v818_v4 = vsel %vm695_vm11, %v817_v55, %v9369_v34  ;;  %v1381_v39 = vadd.s32 %v1379_v6, %v1377_v41 }
 0x1f4   : > { %v1373_v13 = vshrl.u32 %v9448_v36, 16  ;;  %v1394_v23 = vshll.u32 %v1390_v47, 16  ;;  %vm1396_vm6 = vc.u32 %v1388_v56, %v1392_v20  ;;  %v1398_v1 = vadd.s32 %v1392_v20, %v1388_v56 }
 0x1f5   : > { %v810_v49 = vor.u32 4788187, %v809_v57  ;;  %v813_v45 = vcvt.s32.f32 %v806_v50  ;;  %v1382_v46 = vadd.s32 %v1381_v39, %v1371_v25  ;;  %v1397_v12 = vsel %vm1396_vm6, 1, %v11040_v35 }
 0x1f6   : > { %v9502_v8 = vsel %vm9466_vm5, 0, %v818_v4  ;;  %v1393_v43 = vshrl.u32 %v1389_v17, 16  ;;  %v1399_v22 = vadd.s32 %v1397_v12, %v1391_v21  ;;  %vm1400_vm7 = vc.u32 %v1398_v1, %v1394_v23 }
 0x1f7   : > { %v811_v54 = vand.u32 2147483647, %v810_v49  ;;  %v1395_v34 = vshrl.u32 %v1390_v47, 16  ;;  %v1401_v55 = vsel %vm1400_vm7, 1, %v11040_v35  ;;  %v3487_v36 = vshrl.u32 %v3486_v3, 23 }
 0x1f8   : > { %v1352_v16 = vsel %vm1346_vm14, %v1349_v62, %v1351_v40  ;;  %v1403_v5 = vadd.s32 %v1401_v55, %v1399_v22  ;;  %v9512_v6 = vadd.s32 %v1382_v46, %v1373_v13  ;;  %v9514_v17 = vadd.s32 %v1398_v1, %v1394_v23 }
 0x1f9   : > { %v814_v25 = vmul.f32 %v813_v45, %v811_v54  ;;  %v7182_v21 = vadd.s32 4294967169, %v3487_v36  ;;  %v5797_v47 = vsel %vm5790_vm15, %v5793_v11, %v5796_v61  ;;  %v837_v50 = vadd.s32 3, %v9502_v8 }
 0x1fa   : > { %v9505_v41 = vld.sshfl [vmem:[#allocation1] sm:$0xff pattern:$0x75316420]  ;;  %v9507_v56 = vld.sshfl [vmem:[#allocation1 + $0x8] sm:$0xff pattern:$0x75316420]  ;;  %v1404_v3 = vadd.s32 %v1403_v5, %v1393_v43  ;;  %v1406_v48 = vmul.u32 %v9377_v2, %v1352_v16  ;;  %vm1408_vm3 = vc.u32 %v9512_v6, %v9514_v17 }
 0x1fb   : > { %5996 = vst [vmem:[#allocation1 + $0x1] ss:$2 sm:$0xff] %v9454_v26  ;;  %v815_v20 = vxor.u32 2147483648, %v814_v25  ;;  %v3493_v57 = vadd.s32 1, %v7182_v21  ;;  %v5798_v26 = vsel %vm4401_vm13, nan, %v5797_v47  ;;  %v9530_v2 = vand.u32 3, %v837_v50 }
 0x1fc   : > { %v1405_v4 = vadd.s32 %v1404_v3, %v1395_v34  ;;  %v10990_v61 = vand.u32 2147483647, %v9446_v9  ;;  %v9537_v44 = vmul.f32 2.0, %v9230_v29  ;;  %vm9629_vm6 = vcmp.le.f32.partialorder %v1313_v24, 0.7853982 }
 0x1fd   : > { %v816_v62 = vsel %vm695_vm11, %v815_v20, %v814_v25  ;;  %vm3494_vm14 = vcmp.gt.s32.totalorder %v3493_v57, 0  ;;  %vm843_vm13 = vcmp.eq.s32.totalorder %v9530_v2, 2  ;;  %vm840_vm0 = vcmp.eq.s32.totalorder %v9530_v2, 0 }
 0x1fe   : > { %v819_v52 = vsel %vm9466_vm5, %v8983_v27, %v816_v62  ;;  %v1409_v40 = vadd.s32 1, %v1405_v4  ;;  %v3495_v11 = vsel %vm3494_vm14, %v3493_v57, 0  ;;  %v3490_v27 = vand.u32 8388607, %v10990_v61 }
 0x1ff   : > { %v821_v39 = vmul.f32 %v819_v52, %v819_v52  ;;  %v3497_v51 = vand.u32 31, %v3495_v11  ;;  %v4106_v21 = vand.u32 2139095040, %v9537_v44  ;;  %vm839_vm9 = vcmp.lt.s32.totalorder %v9530_v2, 2 }
 0x200   : > { %v1410_v1 = vsel %vm1408_vm3, %v1409_v40, %v1405_v4  ;;  %v3491_v16 = vor.u32 8388608, %v3490_v27  ;;  %v9553_v50 = vshrl.u32 %v3495_v11, 5  ;;  %vm1315_vm7 = vcmp.lt.s32.totalorder %v9230_v29, 0 }
 0x201   : > { %v822_v49 = vmul.f32 -0.001358992, %v821_v39  ;;  %v829_v45 = vmul.f32 -0.00019511016, %v821_v39  ;;  %v1411_v46 = vadd.s32 %v1410_v1, %v1406_v48  ;;  %v9541_v12 = vsub.s32 32, %v3497_v51 }
 0x202   : > { %v9532_v13 = vld.sshfl [vmem:[#allocation1] sm:$0xff pattern:$0x75316420]  ;;  %v9534_v23 = vld.sshfl [vmem:[#allocation1 + $0x8] sm:$0xff pattern:$0x75316420]  ;;  %v3512_v5 = vshll.u32 %v11033_v19, %v3497_v51  ;;  %v3503_v48 = vshll.u32 %v11030_v32, %v3497_v51  ;;  %v3506_v62 = vshll.u32 %v11031_v28, %v3497_v51 }
 0x203   : > { %11055 = vst [vmem:[#allocation29_spill] sm:$0xff] %v9532_v13  ;;  %v823_v43 = vadd.f32 0.041655596, %v822_v49  ;;  %v830_v22 = vadd.f32 0.008332121, %v829_v45  ;;  %v1412_v54 = vadd.s32 536870912, %v1411_v46  ;;  %v3513_v25 = vshrl.u32 %v11034_v58, %v9541_v12 }
 0x204   : > { %11056 = vst [vmem:[#allocation30_spill] sm:$0xff] %v9534_v23  ;;  %v3507_v40 = vshrl.u32 %v11032_v63, %v9541_v12  ;;  %v3500_v45 = vshll.u32 %v11035_v0, %v3497_v51  ;;  %v3501_v27 = vshrl.u32 %v11030_v32, %v9541_v12  ;;  %vm3515_vm11 = vcmp.lt.s32.totalorder %v9553_v50, 1 }
 0x205   : > { %6008 = vst [vmem:[#allocation1 + $0x1] ss:$2 sm:$0xff] %v5798_v26  ;;  %v824_v34 = vmul.f32 %v823_v43, %v821_v39  ;;  %v831_v55 = vmul.f32 %v830_v22, %v821_v39  ;;  %v9544_v36 = vshrl.u32 %v1412_v54, 30  ;;  %v3504_v26 = vshrl.u32 %v11031_v28, %v9541_v12 }
 0x206   : > { %v3509_v43 = vshll.u32 %v11032_v63, %v3497_v51  ;;  %v3510_v22 = vshrl.u32 %v11033_v19, %v9541_v12  ;;  %v3514_v54 = vor.u32 %v3513_v25, %v3512_v5  ;;  %vm3518_vm5 = vcmp.lt.s32.totalorder %v9553_v50, 4 }
 0x207   : > { %v825_v47 = vadd.f32 -0.4999988, %v824_v34  ;;  %v832_v3 = vadd.f32 -0.16666654, %v831_v55  ;;  %v1414_v20 = vshll.u32 %v9544_v36, 30  ;;  %vm3517_vm1 = vcmp.lt.s32.totalorder %v9553_v50, 3 }
 0x208   : > { %vm3516_vm12 = vcmp.lt.s32.totalorder %v9553_v50, 2  ;;  %v3499_v24 = vshrl.u32 %v11035_v0, %v9541_v12  ;;  %v10989_v12 = vand.u32 2147483647, %v9537_v44 }
 0x209   : > { %v826_v1 = vmul.f32 %v825_v47, %v821_v39  ;;  %v833_v49 = vmul.f32 %v832_v3, %v821_v39  ;;  %v9566_v11 = vsub.s32 %v1411_v46, %v1414_v20  ;;  %v9578_v39 = vor.u32 %v3504_v26, %v3503_v48 }
 0x20a   : > { %v3508_v46 = vor.u32 %v3507_v40, %v3506_v62  ;;  %v3511_v3 = vor.u32 %v3510_v22, %v3509_v43  ;;  %v3528_v20 = vsel %vm3518_vm5, %v3514_v54, 1326507024  ;;  %v9589_v48 = vshll.u32 %v3491_v16, 8 }
 0x20b   : > { %v9574_v34 = vadd.f32 1.0, %v826_v1  ;;  %v834_v55 = vadd.f32 1.0, %v833_v49  ;;  %vm1416_vm8 = vcmp.lt.s32.totalorder %v9566_v11, 0  ;;  %v3502_v62 = vor.u32 %v3501_v27, %v3500_v45  ;;  %v9599_v49 = vld [vmem:[%s7583_s7 + $0x18] sm:$0xff] }
 0x20c   : > { %v9555_v57 = vld.sshfl [vmem:[#allocation1] sm:$0xff pattern:$0x75316420]  ;;  %v9557_v4 = vld.sshfl [vmem:[#allocation1 + $0x8] sm:$0xff pattern:$0x75316420]  ;;  %vm836_vm15 = vweird.f32 %v9599_v49  ;;  %v1407_v16 = vadd.s32 %v9514_v17, %v9512_v6  ;;  %v3527_v43 = vsel %vm3515_vm11, %v9578_v39, %v3508_v46  ;;  %v3529_v22 = vsel %vm3517_vm1, %v3511_v3, %v3528_v20 }
 0x20d   : > { %11057 = vst [vmem:[#allocation31_spill] sm:$0xff] %v9555_v57  ;;  %v9582_v51 = vmul.f32 %v834_v55, %v819_v52  ;;  %v844_v47 = vxor.u32 2147483648, %v9574_v34 }
 0x20e   : > { %11058 = vst [vmem:[#allocation32_spill] sm:$0xff] %v9557_v4 }
 0x20f   : > { %6038 = vst [vmem:[#allocation1] ss:$2 sm:$0xff] %v8434_v18  ;;  %v1417_v18 = vsub.s32 0, %v9566_v11  ;;  %v841_v26 = vxor.u32 2147483648, %v9582_v51  ;;  %v845_v52 = vsel %vm843_vm13, %v844_v47, %v9582_v51 }
 0x211   : > { %v1418_v5 = vsel %vm1416_vm8, %v1417_v18, %v9566_v11  ;;  %v842_v54 = vsel %vm840_vm0, %v9574_v34, %v841_v26 }
 0x212   : > { %v1419_v25 = vclz %v1418_v5  ;;  %v846_v17 = vsel %vm839_vm9, %v842_v54, %v845_v52  ;;  %v3524_v5 = vsel %vm3518_vm5, %v3511_v3, 920167782  ;;  %v3530_v52 = vsel %vm3516_vm12, %v3527_v43, %v3529_v22 }
 0x213   : > { %v847_v20 = vsel %vm836_vm15, nan, %v846_v17  ;;  %v4107_v43 = vshrl.u32 %v4106_v21, 23  ;;  %v3520_v17 = vsel %vm3518_vm5, %v3508_v46, 2102212464  ;;  %v2229_v21 = vand.u32 3, %v9502_v8 }
 0x214   : > { %v7141_v55 = vadd.s32 4294967294, %v1419_v25  ;;  %5814 = vst [vmem:[#allocation1 + $0x30] ss:$2 sm:$0xff] %v847_v20 }
 0x215   : > { %vm2230_vm3 = vcmp.lt.s32.totalorder %v2229_v21, 2  ;;  %vm2231_vm14 = vcmp.eq.s32.totalorder %v2229_v21, 0  ;;  %vm2234_vm13 = vcmp.eq.s32.totalorder %v2229_v21, 2 }
 0x216   : > { %v6045_v40 = vld.sshfl [vmem:[#allocation1] sm:$0xff pattern:$0x75316420]  ;;  %v6046_v1 = vld.sshfl [vmem:[#allocation1 + $0x8] sm:$0xff pattern:$0x75316420] }
 0x217   : > { %v6123_v45 = vsel %vm6086_vm4, %v6045_v40, 0.0  ;;  %v6124_v27 = vsel %vm6086_vm4, %v6046_v1, 0.0  ;;  %6053 = vst [vmem:[#allocation1] ss:$2 sm:$0xff] %v8892_v42  ;;  %vm7142_vm2 = vcmp.lt.s32.totalorder %v7141_v55, 0  ;;  %v1437_v40 = vsub.s32 4, %v9544_v36 }
 0x218   : > { %v6163_v18 = vpack.c.bf16 %v6123_v45, %v6123_v45  ;;  %v6164_v6 = vpack.c.bf16 %v6124_v27, %v6124_v27  ;;  %v3523_v42 = vsel %vm3515_vm11, %v3502_v62, %v9578_v39  ;;  %v1422_v3 = vsel %vm7142_vm2, 0, %v7141_v55 }
 0x219   : > { %v1423_v45 = vsub.s32 32, %v1422_v3  ;;  %v1424_v27 = vshll.u32 %v9566_v11, %v1422_v3  ;;  %v1427_v54 = vsub.s32 4294967266, %v1422_v3  ;;  %v3532_v55 = vand.u32 65535, %v9589_v48 }
 0x21a   : > { %v6223_v25 = vsel %vm6086_vm4, %v6163_v18, 0  ;;  %v6226_v1 = vsel %vm6086_vm4, %v6164_v6, 0  ;;  %v3525_v18 = vsel %vm3517_vm1, %v3508_v46, %v3524_v5  ;;  %v3535_v11 = vshrl.u32 %v3530_v52, 16 }
 0x21b   : > { %6282 = vmatpush.bf16.msra.mxu0 %v6223_v25  ;;  %6301 = vmatpush.bf16.msra.mxu1 %v6226_v1  ;;  %v1425_v22 = vshrl.u32 %v1407_v16, %v1423_v45  ;;  %v1428_v6 = vadd.s32 127, %v1427_v54  ;;  %v1438_v5 = vsel %vm1315_vm7, %v1437_v40, %v9544_v36  ;;  %v3526_v20 = vsel %vm3516_vm12, %v3523_v42, %v3525_v18 }
 0x21c   : > { %v3534_v25 = vand.u32 65535, %v3530_v52  ;;  %v3533_v16 = vshrl.u32 %v9589_v48, 16  ;;  %v3519_v46 = vsel %vm3515_vm11, %v3499_v24, %v3502_v62  ;;  %v3521_v45 = vsel %vm3517_vm1, %v9578_v39, %v3520_v17 }
 0x21d   : > { %v1426_v1 = vor.u32 %v1425_v22, %v1424_v27  ;;  %v1429_v3 = vshll.u32 %v1428_v6, 23  ;;  %v3537_v36 = vmul.u32 %v3535_v11, %v3532_v55  ;;  %v3556_v40 = vand.u32 65535, %v3526_v20 }
 0x21e   : > { %v2233_v52 = vsel %vm2231_vm14, %v9574_v34, %v841_v26  ;;  %v3536_v27 = vmul.u32 %v3534_v25, %v3532_v55  ;;  %v3557_v8 = vshrl.u32 %v3526_v20, 16  ;;  %v9662_v22 = vsel %vm9629_vm6, 0, %v1438_v5 }
 0x21f   : > { %v1430_v54 = vor.u32 4788187, %v1429_v3  ;;  %v1433_v42 = vcvt.s32.f32 %v1426_v1  ;;  %v2236_v39 = vsel %vm2234_vm13, %v844_v47, %v9582_v51  ;;  %v3538_v62 = vmul.u32 %v3534_v25, %v3533_v16 }
 0x220   : > { %v2237_v24 = vsel %vm2230_vm3, %v2233_v52, %v2236_v39  ;;  %v9669_v6 = vsel %vm3516_vm12, %v3519_v46, %v3521_v45  ;;  %v3539_v17 = vmul.u32 %v3535_v11, %v3533_v16  ;;  %v3540_v26 = vshll.u32 %v3537_v36, 16 }
 0x221   : > { %v1431_v18 = vand.u32 2147483647, %v1430_v54  ;;  %v9673_v20 = vsel %vm836_vm15, nan, %v2237_v24  ;;  %v3542_v3 = vshll.u32 %v3538_v62, 16  ;;  %v7194_v5 = vadd.s32 4294967169, %v4107_v43 }
 0x222   : > { %vm3544_vm0 = vc.u32 %v3536_v27, %v3540_v26  ;;  %v3546_v21 = vadd.s32 %v3540_v26, %v3536_v27  ;;  %v3558_v54 = vmul.u32 %v3556_v40, %v3532_v55  ;;  %v3559_v34 = vmul.u32 %v3557_v8, %v3532_v55 }
 0x223   : > { %v1434_v1 = vmul.f32 %v1433_v42, %v1431_v18  ;;  %v3541_v47 = vshrl.u32 %v3537_v36, 16  ;;  %v3545_v25 = vsel %vm3544_vm0, 1, %v11040_v35  ;;  %v3560_v50 = vmul.u32 %v3556_v40, %v3533_v16 }
 0x224   : > { %v3547_v46 = vadd.s32 %v3545_v25, %v3539_v17  ;;  %vm3548_vm9 = vc.u32 %v3546_v21, %v3542_v3  ;;  %v3561_v11 = vmul.u32 %v3557_v8, %v3533_v16  ;;  %v3562_v45 = vshll.u32 %v3559_v34, 16 }
 0x225   : > { %v1435_v51 = vxor.u32 2147483648, %v1434_v1  ;;  %v3543_v52 = vshrl.u32 %v3538_v62, 16  ;;  %v3549_v18 = vsel %vm3548_vm9, 1, %v11040_v35  ;;  %v3564_v43 = vshll.u32 %v3560_v50, 16 }
 0x226   : > { %v3551_v27 = vadd.s32 %v3549_v18, %v3547_v46  ;;  %vm3566_vm8 = vc.u32 %v3558_v54, %v3562_v45  ;;  %v3568_v36 = vadd.s32 %v3562_v45, %v3558_v54  ;;  %v3563_v40 = vshrl.u32 %v3559_v34, 16 }
 0x227   : > { %v1436_v42 = vsel %vm1315_vm7, %v1435_v51, %v1434_v1  ;;  %v3567_v24 = vsel %vm3566_vm8, 1, %v11040_v35  ;;  %v4113_v16 = vadd.s32 1, %v7194_v5  ;;  %v3565_v21 = vshrl.u32 %v3560_v50, 16 }
 0x228   : > { %v1439_v55 = vsel %vm9629_vm6, %v9230_v29, %v1436_v42  ;;  %v3552_v8 = vadd.s32 %v3551_v27, %v3541_v47  ;;  %v3569_v17 = vadd.s32 %v3567_v24, %v3561_v11  ;;  %vm3570_vm11 = vc.u32 %v3568_v36, %v3564_v43 }
 0x229   : > { %v1441_v39 = vmul.f32 %v1439_v55, %v1439_v55  ;;  %v9683_v26 = vadd.s32 %v3568_v36, %v3564_v43  ;;  %v3571_v3 = vsel %vm3570_vm11, 1, %v11040_v35  ;;  %vm4114_vm5 = vcmp.gt.s32.totalorder %v4113_v16, 0 }
 0x22a   : > { %v9686_v2 = vadd.s32 %v3552_v8, %v3543_v52  ;;  %v3573_v51 = vadd.s32 %v3571_v3, %v3569_v17  ;;  %v4115_v54 = vsel %vm4114_vm5, %v4113_v16, 0  ;;  %v3576_v5 = vmul.u32 %v9589_v48, %v9669_v6 }
 0x22b   : > { %v1442_v62 = vmul.f32 -0.001358992, %v1441_v39  ;;  %v1449_v1 = vmul.f32 -0.00019511016, %v1441_v39  ;;  %v4117_v47 = vand.u32 31, %v4115_v54  ;;  %v1457_v46 = vadd.s32 3, %v9662_v22 }
 0x22c   : > { %v3574_v11 = vadd.s32 %v3573_v51, %v3563_v40  ;;  %v4110_v45 = vand.u32 8388607, %v10989_v12  ;;  %v9693_v42 = vshrl.u32 %v4115_v54, 5  ;;  %vm3578_vm1 = vc.u32 %v9686_v2, %v9683_v26 }
 0x22d   : > { %v1443_v25 = vadd.f32 0.041655596, %v1442_v62  ;;  %v1450_v34 = vadd.f32 0.008332121, %v1449_v1  ;;  %v4118_v50 = vsub.s32 32, %v4117_v47  ;;  %v4120_v27 = vshll.u32 %v11035_v0, %v4117_v47 }
 0x22e   : > { %v3575_v43 = vadd.s32 %v3574_v11, %v3565_v21  ;;  %v4123_v48 = vshll.u32 %v11030_v32, %v4117_v47  ;;  %v4129_v6 = vshll.u32 %v11032_v63, %v4117_v47  ;;  %v4126_v16 = vshll.u32 %v11031_v28, %v4117_v47 }
 0x22f   : > { %v1444_v18 = vmul.f32 %v1443_v25, %v1441_v39  ;;  %v1451_v52 = vmul.f32 %v1450_v34, %v1441_v39  ;;  %v4121_v24 = vshrl.u32 %v11030_v32, %v4118_v50  ;;  %v4124_v17 = vshrl.u32 %v11031_v28, %v4118_v50 }
 0x230   : > { %v3579_v8 = vadd.s32 1, %v3575_v43  ;;  %v4127_v62 = vshrl.u32 %v11032_v63, %v4118_v50  ;;  %v4130_v1 = vshrl.u32 %v11033_v19, %v4118_v50  ;;  %v1458_v51 = vand.u32 3, %v1457_v46 }
 0x231   : > { %v1445_v36 = vadd.f32 -0.4999988, %v1444_v18  ;;  %v1452_v40 = vadd.f32 -0.16666654, %v1451_v52  ;;  %v4132_v54 = vshll.u32 %v11033_v19, %v4117_v47  ;;  %v4111_v34 = vor.u32 8388608, %v4110_v45 }
 0x232   : > { %v3580_v25 = vsel %vm3578_vm1, %v3579_v8, %v3575_v43  ;;  %v4122_v11 = vor.u32 %v4121_v24, %v4120_v27  ;;  %v4131_v18 = vor.u32 %v4130_v1, %v4129_v6  ;;  %v4125_v61 = vor.u32 %v4124_v17, %v4123_v48 }
 0x233   : > { %v1446_v3 = vmul.f32 %v1445_v36, %v1441_v39  ;;  %v1453_v21 = vmul.f32 %v1452_v40, %v1441_v39  ;;  %v3581_v12 = vadd.s32 %v3580_v25, %v3576_v5  ;;  %v4133_v30 = vshrl.u32 %v11034_v58, %v4118_v50 }
 0x234   : > { %v4128_v10 = vor.u32 %v4127_v62, %v4126_v16  ;;  %vm4135_vm12 = vcmp.lt.s32.totalorder %v9693_v42, 1  ;;  %vm4138_vm15 = vcmp.lt.s32.totalorder %v9693_v42, 4  ;;  %vm4137_vm2 = vcmp.lt.s32.totalorder %v9693_v42, 3 }
 0x235   : > { %v1454_v52 = vadd.f32 1.0, %v1453_v21  ;;  %v9710_v4 = vadd.f32 1.0, %v1446_v3  ;;  %v3582_v47 = vadd.s32 536870912, %v3581_v12  ;;  %v4134_v46 = vor.u32 %v4133_v30, %v4132_v54 }
 0x236   : > { %v4144_v45 = vsel %vm4138_vm15, %v4131_v18, 920167782  ;;  %vm4136_vm6 = vcmp.lt.s32.totalorder %v9693_v42, 2  ;;  %v9722_v43 = vshll.u32 %v4111_v34, 8  ;;  %vm1460_vm7 = vcmp.eq.s32.totalorder %v1458_v51, 0 }
 0x237   : > { %v9714_v39 = vmul.f32 %v1454_v52, %v1439_v55  ;;  %v9719_v5 = vshrl.u32 %v3582_v47, 30  ;;  %v10991_v48 = vxor.u32 2147483648, %v9710_v4  ;;  %v4143_v55 = vsel %vm4135_vm12, %v4122_v11, %v4125_v61 }
 0x238   : > { %v4145_v30 = vsel %vm4137_vm2, %v4128_v10, %v4144_v45  ;;  %vm1463_vm3 = vcmp.eq.s32.totalorder %v1458_v51, 2  ;;  %v4148_v36 = vsel %vm4138_vm15, %v4134_v46, 1326507024  ;;  %v4147_v40 = vsel %vm4135_vm12, %v4125_v61, %v4128_v10 }
 0x239   : > { %v10992_v27 = vxor.u32 2147483648, %v9714_v39  ;;  %v3584_v6 = vshll.u32 %v9719_v5, 30  ;;  %vm1459_vm14 = vcmp.lt.s32.totalorder %v1458_v51, 2  ;;  %v4146_v16 = vsel %vm4136_vm6, %v4143_v55, %v4145_v30 }
 0x23a   : > { %v4152_v8 = vand.u32 65535, %v9722_v43  ;;  %v1465_v62 = vsel %vm1463_vm3, %v10991_v48, %v9714_v39  ;;  %v4119_v1 = vshrl.u32 %v11035_v0, %v4118_v50  ;;  %v4149_v3 = vsel %vm4137_vm2, %v4131_v18, %v4148_v36  ;;  %v9755_v36 = vld [vmem:[%s7583_s7 + $0x10] sm:$0xff] }
 0x23b   : > { %v3585_v24 = vsub.s32 %v3581_v12, %v3584_v6  ;;  %v1462_v17 = vsel %vm1460_vm7, %v9710_v4, %v10992_v27  ;;  %v4150_v21 = vsel %vm4136_vm6, %v4147_v40, %v4149_v3  ;;  %v4153_v54 = vshrl.u32 %v9722_v43, 16 }
 0x23c   : > { %vm1456_vm0 = vweird.f32 %v9230_v29  ;;  %v4154_v25 = vand.u32 65535, %v4150_v21  ;;  %v4155_v34 = vshrl.u32 %v4150_v21, 16  ;;  %v4177_v52 = vshrl.u32 %v4146_v16, 16 }
 0x23d   : > { %vm3586_vm13 = vcmp.lt.s32.totalorder %v3585_v24, 0  ;;  %v3587_v12 = vsub.s32 0, %v3585_v24  ;;  %v1466_v47 = vsel %vm1459_vm14, %v1462_v17, %v1465_v62  ;;  %v4140_v50 = vsel %vm4138_vm15, %v4128_v10, 2102212464 }
 0x23e   : > { %v4176_v18 = vand.u32 65535, %v4146_v16  ;;  %v4156_v55 = vmul.u32 %v4154_v25, %v4152_v8  ;;  %v4157_v30 = vmul.u32 %v4155_v34, %v4152_v8  ;;  %v4158_v6 = vmul.u32 %v4154_v25, %v4153_v54 }
 0x23f   : > { %v3588_v46 = vsel %vm3586_vm13, %v3587_v12, %v3585_v24  ;;  %v9758_v40 = vand.u32 3, %v9662_v22  ;;  %v3577_v3 = vadd.s32 %v9683_v26, %v9686_v2  ;;  %v4139_v51 = vsel %vm4135_vm12, %v4119_v1, %v4122_v11 }
 0x240   : > { %v3589_v45 = vclz %v3588_v46  ;;  %v4179_v17 = vmul.u32 %v4177_v52, %v4152_v8  ;;  %v4141_v10 = vsel %vm4137_vm2, %v4125_v61, %v4140_v50  ;;  %v4159_v16 = vmul.u32 %v4155_v34, %v4153_v54 }
 0x241   : > { %v4160_v12 = vshll.u32 %v4157_v30, 16  ;;  %v1467_v21 = vsel %vm1456_vm0, nan, %v1466_v47  ;;  %v3607_v25 = vsub.s32 4, %v9719_v5  ;;  %v4162_v22 = vshll.u32 %v4158_v6, 16 }
 0x242   : > { %v7183_v62 = vadd.s32 4294967294, %v3589_v45  ;;  %v541_v46 = vand.u32 2139095040, %v9755_v36  ;;  %vm3485_vm9 = vcmp.lt.s32.totalorder %v9446_v9, 0  ;;  %v4180_v2 = vmul.u32 %v4176_v18, %v4153_v54 }
 0x243   : > { %vm4164_vm11 = vc.u32 %v4156_v55, %v4160_v12  ;;  %v4166_v26 = vadd.s32 %v4160_v12, %v4156_v55  ;;  %v4178_v61 = vmul.u32 %v4176_v18, %v4152_v8  ;;  %v4182_v34 = vshll.u32 %v4179_v17, 16 }
 0x244   : > { %vm7184_vm8 = vcmp.lt.s32.totalorder %v7183_v62, 0  ;;  %v4165_v1 = vsel %vm4164_vm11, 1, %v11040_v35  ;;  %v4161_v27 = vshrl.u32 %v4157_v30, 16  ;;  %v4163_v57 = vshrl.u32 %v4158_v6, 16 }
 0x245   : > { %v3592_v11 = vsel %vm7184_vm8, 0, %v7183_v62  ;;  %v4167_v47 = vadd.s32 %v4165_v1, %v4159_v16  ;;  %vm4168_vm5 = vc.u32 %v4166_v26, %v4162_v22  ;;  %v4181_v37 = vmul.u32 %v4177_v52, %v4153_v54 }
 0x246   : > { %v3593_v50 = vsub.s32 32, %v3592_v11  ;;  %v3594_v45 = vshll.u32 %v3585_v24, %v3592_v11  ;;  %v3597_v48 = vsub.s32 4294967266, %v3592_v11  ;;  %v4169_v13 = vsel %vm4168_vm5, 1, %v11040_v35 }
 0x247   : > { %v4184_v53 = vshll.u32 %v4180_v2, 16  ;;  %v4171_v55 = vadd.s32 %v4169_v13, %v4167_v47  ;;  %v4183_v12 = vshrl.u32 %v4179_v17, 16  ;;  %vm4186_vm1 = vc.u32 %v4178_v61, %v4182_v34  ;;  %v9778_v17 = vld.sshfl [vmem:[#allocation1 + $0x30] sm:$0xff pattern:$0x75316420] }
 0x248   : > { %v3595_v23 = vshrl.u32 %v3577_v3, %v3593_v50  ;;  %v3598_v31 = vadd.s32 127, %v3597_v48  ;;  %v4188_v62 = vadd.s32 %v4182_v34, %v4178_v61  ;;  %v4187_v18 = vsel %vm4186_vm1, 1, %v11040_v35 }
 0x249   : > { %v542_v24 = vshrl.u32 %v541_v46, 23  ;;  %v4172_v11 = vadd.s32 %v4171_v55, %v4161_v27  ;;  %v4185_v16 = vshrl.u32 %v4180_v2, 16  ;;  %v4189_v30 = vadd.s32 %v4187_v18, %v4181_v37 }
 0x24a   : > { %v3596_v59 = vor.u32 %v3595_v23, %v3594_v45  ;;  %v3599_v8 = vshll.u32 %v3598_v31, 23  ;;  %vm4190_vm12 = vc.u32 %v4188_v62, %v4184_v53  ;;  %v3608_v13 = vsel %vm3485_vm9, %v3607_v25, %v9719_v5  ;;  %v9780_v31 = vld.sshfl [vmem:[#allocation1 + $0x38] sm:$0xff pattern:$0x75316420] }
 0x24b   : > { %v4191_v48 = vsel %vm4190_vm12, 1, %v11040_v35  ;;  %v7125_v52 = vadd.s32 4294967169, %v542_v24  ;;  %v9782_v22 = vadd.s32 %v4172_v11, %v4163_v57  ;;  %v9784_v27 = vadd.s32 %v4188_v62, %v4184_v53  ;;  %5826 = vst [vmem:[#allocation1 + $0x30] ss:$2 sm:$0xff] %v1467_v21 }
 0x24c   : > { %v3600_v6 = vor.u32 4788187, %v3599_v8  ;;  %v3603_v54 = vcvt.s32.f32 %v3596_v59  ;;  %v4193_v3 = vadd.s32 %v4191_v48, %v4189_v30  ;;  %v11061_v59 = vand.u32 2147483647, %v9446_v9 }
 0x24d   : > { %v4142_v5 = vsel %vm4136_vm6, %v4139_v51, %v4141_v10  ;;  %v548_v46 = vadd.s32 1, %v7125_v52  ;;  %vm2847_vm2 = vcmp.eq.s32.totalorder %v9758_v40, 0  ;;  %vm2850_vm7 = vcmp.eq.s32.totalorder %v9758_v40, 2 }
 0x24e   : > { %v3601_v23 = vand.u32 2147483647, %v3600_v6  ;;  %vm9788_vm15 = vcmp.le.f32.partialorder %v11061_v59, 0.7853982  ;;  %v4194_v25 = vadd.s32 %v4193_v3, %v4183_v12  ;;  %v4196_v21 = vmul.u32 %v9722_v43, %v4142_v5 }
 0x24f   : > { %v9796_v2 = vsel %vm9788_vm15, 0, %v3608_v13  ;;  %vm549_vm3 = vcmp.gt.s32.totalorder %v548_v46, 0  ;;  %vm4198_vm14 = vc.u32 %v9782_v22, %v9784_v27  ;;  %v10993_v1 = vand.u32 2147483647, %v9755_v36 }
 0x250   : > { %v3604_v26 = vmul.f32 %v3603_v54, %v3601_v23  ;;  %v4195_v53 = vadd.s32 %v4194_v25, %v4185_v16  ;;  %v550_v42 = vsel %vm549_vm3, %v548_v46, 0  ;;  %v3627_v51 = vadd.s32 3, %v9796_v2 }
 0x251   : > { %v552_v61 = vand.u32 31, %v550_v42  ;;  %vm2846_vm6 = vcmp.lt.s32.totalorder %v9758_v40, 2  ;;  %v11064_v34 = vxor.u32 2147483648, %v9714_v39  ;;  %v11065_v45 = vxor.u32 2147483648, %v9710_v4 }
 0x252   : > { %v3605_v57 = vxor.u32 2147483648, %v3604_v26  ;;  %v4199_v10 = vadd.s32 1, %v4195_v53  ;;  %v9819_v62 = vld.sshfl [vmem:[#allocation1 + $0x30] sm:$0xff pattern:$0x75316420]  ;;  %v9828_v24 = vand.u32 3, %v3627_v51 }
 0x253   : > { %v2849_v50 = vsel %vm2847_vm2, %v9710_v4, %v11064_v34  ;;  %v2852_v43 = vsel %vm2850_vm7, %v11065_v45, %v9714_v39  ;;  %11066 = vst [vmem:[#allocation33_spill] sm:$0xff] %v9819_v62  ;;  %v9821_v40 = vld.sshfl [vmem:[#allocation1 + $0x38] sm:$0xff pattern:$0x75316420]  ;;  %v9826_v4 = vsub.s32 32, %v552_v61  ;;  %v9832_v16 = vshrl.u32 %v550_v42, 5 }
 0x254   : > { %v3606_v47 = vsel %vm3485_vm9, %v3605_v57, %v3604_v26  ;;  %v4200_v12 = vsel %vm4198_vm14, %v4199_v10, %v4195_v53  ;;  %11067 = vst [vmem:[#allocation34_spill] sm:$0xff] %v9821_v40  ;;  %v2853_v39 = vsel %vm2846_vm6, %v2849_v50, %v2852_v43  ;;  %v545_v11 = vand.u32 8388607, %v10993_v1 }
 0x255   : > { %v9817_v55 = vsel %vm9788_vm15, %v9446_v9, %v3606_v47  ;;  %v4201_v18 = vadd.s32 %v4200_v12, %v4196_v21  ;;  %5872 = vst [vmem:[#allocation1 + $0x31] ss:$2 sm:$0xff] %v9673_v20  ;;  %v558_v48 = vshll.u32 %v11030_v32, %v552_v61  ;;  %v559_v52 = vshrl.u32 %v11031_v28, %v9826_v4 }
 0x256   : > { %v3611_v8 = vmul.f32 %v9817_v55, %v9817_v55  ;;  %v561_v20 = vshll.u32 %v11031_v28, %v552_v61  ;;  %v562_v13 = vshrl.u32 %v11032_v63, %v9826_v4  ;;  %v564_v3 = vshll.u32 %v11032_v63, %v552_v61 }
 0x257   : > { %v4202_v54 = vadd.s32 536870912, %v4201_v18  ;;  %v565_v5 = vshrl.u32 %v11033_v19, %v9826_v4  ;;  %v2854_v25 = vsel %vm1456_vm0, nan, %v2853_v39  ;;  %v546_v46 = vor.u32 8388608, %v545_v11 }
 0x258   : > { %v3612_v30 = vmul.f32 -0.001358992, %v3611_v8  ;;  %v3619_v6 = vmul.f32 -0.00019511016, %v3611_v8  ;;  %v555_v26 = vshll.u32 %v11035_v0, %v552_v61  ;;  %v567_v53 = vshll.u32 %v11033_v19, %v552_v61 }
 0x259   : > { %v9841_v37 = vshrl.u32 %v4202_v54, 30  ;;  %vm570_vm13 = vcmp.lt.s32.totalorder %v9832_v16, 1  ;;  %vm3630_vm9 = vcmp.eq.s32.totalorder %v9828_v24, 0  ;;  %v556_v34 = vshrl.u32 %v11030_v32, %v9826_v4 }
 0x25a   : > { %v3613_v23 = vadd.f32 0.041655596, %v3612_v30  ;;  %v3620_v59 = vadd.f32 0.008332121, %v3619_v6  ;;  %v9858_v50 = vor.u32 %v559_v52, %v558_v48  ;;  %v9860_v45 = vor.u32 %v562_v13, %v561_v20 }
 0x25b   : > { %v4204_v42 = vshll.u32 %v9841_v37, 30  ;;  %v568_v61 = vshrl.u32 %v11034_v58, %v9826_v4  ;;  %vm3629_vm0 = vcmp.lt.s32.totalorder %v9828_v24, 2  ;;  %v566_v39 = vor.u32 %v565_v5, %v564_v3 }
 0x25c   : > { %v3614_v57 = vmul.f32 %v3613_v23, %v3611_v8  ;;  %v3621_v21 = vmul.f32 %v3620_v59, %v3611_v8  ;;  %v9852_v51 = vld.sshfl [vmem:[#allocation1 + $0x30] sm:$0xff pattern:$0x75316420]  ;;  %v9854_v10 = vld.sshfl [vmem:[#allocation1 + $0x38] sm:$0xff pattern:$0x75316420]  ;;  %v557_v52 = vor.u32 %v556_v34, %v555_v26  ;;  %vm3626_vm2 = vweird.f32 %v9446_v9 }
 0x25d   : > { %v9865_v12 = vsub.s32 %v4201_v18, %v4204_v42  ;;  %5884 = vst [vmem:[#allocation1 + $0x31] ss:$2 sm:$0xff] %v2854_v25  ;;  %vm4105_vm8 = vcmp.lt.s32.totalorder %v9537_v44, 0  ;;  %v569_v11 = vor.u32 %v568_v61, %v567_v53  ;;  %vm572_vm11 = vcmp.lt.s32.totalorder %v9832_v16, 3 }
 0x25e   : > { %v3615_v43 = vadd.f32 -0.4999988, %v3614_v57  ;;  %v3622_v47 = vadd.f32 -0.16666654, %v3621_v21  ;;  %vm573_vm5 = vcmp.lt.s32.totalorder %v9832_v16, 4  ;;  %v9870_v30 = vshll.u32 %v546_v46, 8 }
 0x25f   : > { %vm4206_vm1 = vcmp.lt.s32.totalorder %v9865_v12, 0  ;;  %v4207_v48 = vsub.s32 0, %v9865_v12  ;;  %vm571_vm12 = vcmp.lt.s32.totalorder %v9832_v16, 2  ;;  %v582_v18 = vsel %vm570_vm13, %v9858_v50, %v9860_v45 }
 0x260   : > { %v3616_v6 = vmul.f32 %v3615_v43, %v3611_v8  ;;  %v3623_v54 = vmul.f32 %v3622_v47, %v3611_v8  ;;  %v583_v20 = vsel %vm573_vm5, %v569_v11, 1326507024  ;;  %v579_v23 = vsel %vm573_vm5, %v566_v39, 920167782 }
 0x261   : > { %v4208_v8 = vsel %vm4206_vm1, %v4207_v48, %v9865_v12  ;;  %vm3633_vm15 = vcmp.eq.s32.totalorder %v9828_v24, 2  ;;  %v584_v5 = vsel %vm572_vm11, %v566_v39, %v583_v20  ;;  %v587_v25 = vand.u32 65535, %v9870_v30 }
 0x262   : > { %v9881_v13 = vadd.f32 1.0, %v3616_v6  ;;  %v3624_v3 = vadd.f32 1.0, %v3623_v54  ;;  %v4209_v59 = vclz %v4208_v8  ;;  %v4227_v53 = vsub.s32 4, %v9841_v37 }
 0x263   : > { %v585_v57 = vsel %vm571_vm12, %v582_v18, %v584_v5  ;;  %v578_v42 = vsel %vm570_vm13, %v557_v52, %v9858_v50  ;;  %v580_v34 = vsel %vm572_vm11, %v9860_v45, %v579_v23  ;;  %v588_v47 = vshrl.u32 %v9870_v30, 16  ;;  %v9929_v5 = vld [vmem:[%s7583_s7 + $0x30] sm:$0xff]  ;;  %s7414_s7 = sshra.s32 %s7041_s30, 4  ;;  %s7415_s7 = int_to_ptr.hbm [resolvable:$true] %s7414_s7 }
 0x264   : > { %v9891_v46 = vmul.f32 %v3624_v3, %v9817_v55  ;;  %v10994_v26 = vxor.u32 2147483648, %v9881_v13  ;;  %v7195_v21 = vadd.s32 4294967294, %v4209_v59  ;;  %v590_v61 = vshrl.u32 %v585_v57, 16  ;;  %v9911_v6 = vld.sshfl [vmem:[#allocation1 + $0x30] sm:$0xff pattern:$0x75316420]  ;;  %p7421_p3 = scmp.lt.s32.totalorder %s7415_s7, %s10967_s4 }
 0x265   : > { %v589_v39 = vand.u32 65535, %v585_v57  ;;  %v4197_v11 = vadd.s32 %v9784_v27, %v9782_v22  ;;  %11068 = vst [vmem:[#allocation35_spill] sm:$0xff] %v9911_v6  ;;  %v4228_v20 = vsel %vm4105_vm8, %v4227_v53, %v9841_v37  ;;  %v9921_v3 = vld.sshfl [vmem:[#allocation1 + $0x38] sm:$0xff pattern:$0x75316420]  ;;  %v581_v22 = vsel %vm571_vm12, %v578_v42, %v580_v34  ;;  %s7416_s19 = scalar_lea.hbm %s7415_s7, 288 }
 0x266   : > { %v10995_v55 = vxor.u32 2147483648, %v9891_v46  ;;  %v3635_v43 = vsel %vm3633_vm15, %v10994_v26, %v9891_v46  ;;  %vm7196_vm7 = vcmp.lt.s32.totalorder %v7195_v21, 0  ;;  %v592_v54 = vmul.u32 %v590_v61, %v587_v25  ;;  %11069 = vst [vmem:[#allocation36_spill] sm:$0xff] %v9921_v3  ;;  %p7417_p6 = scmp.ne.s32.totalorder %s7415_s7, %s7416_s19  ;;  %p7422_p4 = scmp.lt.s32.totalorder %s7420_s9, %s7416_s19 }
 0x267   : > { %v4212_v18 = vsel %vm7196_vm7, 0, %v7195_v21  ;;  %v591_v21 = vmul.u32 %v589_v39, %v587_v25  ;;  %v593_v1 = vmul.u32 %v589_v39, %v588_v47  ;;  %v11070_v37 = vand.u32 2147483647, %v9537_v44 }
 0x268   : > { %v3632_v48 = vsel %vm3630_vm9, %v9881_v13, %v10995_v55  ;;  %v4213_v8 = vsub.s32 32, %v4212_v18  ;;  %v4214_v23 = vshll.u32 %v9865_v12, %v4212_v18  ;;  %v4217_v59 = vsub.s32 4294967266, %v4212_v18  ;;  %p7418_p13 = pnand %p7417_p6, %p7549_p11  ;;  %p7423_p5 = por %p7422_p4, %p7421_p3 }
 0x269   : > { %v3636_v27 = vsel %vm3629_vm0, %v3632_v48, %v3635_v43  ;;  %vm9935_vm3 = vcmp.le.f32.partialorder %v11070_v37, 0.7853982  ;;  %v595_v34 = vshll.u32 %v592_v54, 16  ;;  %v554_v43 = vshrl.u32 %v11035_v0, %v9826_v4 }
 0x26a   : > { %v3637_v57 = vsel %vm3626_vm2, nan, %v3636_v27  ;;  %v4215_v42 = vshrl.u32 %v4197_v11, %v4213_v8  ;;  %v4218_v24 = vadd.s32 127, %v4217_v59  ;;  %v4230_v12 = vsel %vm9935_vm3, 0, %v4228_v20  ;;  %p7419_p2 = pneg %p7418_p13 }
 0x26b   : > { %5929 = vst [vmem:[#allocation1 + $0x30] ss:$2 sm:$0xff] %v3637_v57  ;;  %v612_v48 = vshrl.u32 %v581_v22, 16  ;;  %v1161_v18 = vand.u32 2139095040, %v9929_v5  ;;  %v575_v37 = vsel %vm573_vm5, %v9860_v45, 2102212464  ;;  %v594_v11 = vmul.u32 %v590_v61, %v588_v47 }
 0x26c   : > { %v4216_v39 = vor.u32 %v4215_v42, %v4214_v23  ;;  %v4219_v27 = vshll.u32 %v4218_v24, 23  ;;  %v611_v26 = vand.u32 65535, %v581_v22  ;;  %v597_v8 = vshll.u32 %v593_v1, 16  ;;  %p7424_p7 = pnand %p7423_p5, %p7419_p2 }
 0x26d   : > { %vm599_vm14 = vc.u32 %v591_v21, %v595_v34  ;;  %v601_v59 = vadd.s32 %v595_v34, %v591_v21  ;;  %v574_v20 = vsel %vm570_vm13, %v554_v43, %v557_v52  ;;  %v576_v4 = vsel %vm572_vm11, %v9858_v50, %v575_v37 }
 0x26e   : > { %v4220_v57 = vor.u32 4788187, %v4219_v27  ;;  %v4223_v55 = vcvt.s32.f32 %v4216_v39  ;;  %v614_v23 = vmul.u32 %v612_v48, %v587_v25  ;;  %v1162_v42 = vshrl.u32 %v1161_v18, 23 }
 0x26f   : > { %v4247_v40 = vadd.s32 3, %v4230_v12  ;;  %v596_v3 = vshrl.u32 %v592_v54, 16  ;;  %v600_v45 = vsel %vm599_vm14, 1, %v11040_v35  ;;  %vm603_vm6 = vc.u32 %v601_v59, %v597_v8 }
 0x270   : > { %v4221_v24 = vand.u32 2147483647, %v4220_v57  ;;  %v602_v61 = vadd.s32 %v600_v45, %v594_v11  ;;  %v613_v22 = vmul.u32 %v611_v26, %v587_v25  ;;  %v615_v21 = vmul.u32 %v611_v26, %v588_v47 }
 0x271   : > { %v9954_v39 = vand.u32 3, %v9796_v2  ;;  %v604_v52 = vsel %vm603_vm6, 1, %v11040_v35  ;;  %v10996_v43 = vand.u32 2147483647, %v9929_v5  ;;  %v616_v27 = vmul.u32 %v612_v48, %v588_v47 }
 0x272   : > { %v4224_v34 = vmul.f32 %v4223_v55, %v4221_v24  ;;  %v606_v50 = vadd.s32 %v604_v52, %v602_v61  ;;  %v617_v18 = vshll.u32 %v614_v23, 16  ;;  %v619_v37 = vshll.u32 %v615_v21, 16 }
 0x273   : > { %v9958_v54 = vand.u32 3, %v4247_v40  ;;  %v577_v11 = vsel %vm571_vm12, %v574_v20, %v576_v4  ;;  %v7137_v25 = vadd.s32 4294967169, %v1162_v42  ;;  %v598_v26 = vshrl.u32 %v593_v1, 16 }
 0x274   : > { %v4225_v57 = vxor.u32 2147483648, %v4224_v34  ;;  %v607_v55 = vadd.s32 %v606_v50, %v596_v3  ;;  %vm621_vm13 = vc.u32 %v613_v22, %v617_v18  ;;  %v623_v2 = vadd.s32 %v617_v18, %v613_v22 }
 0x275   : > { %vm5021_vm9 = vcmp.eq.s32.totalorder %v9954_v39, 0  ;;  %v622_v47 = vsel %vm621_vm13, 1, %v11040_v35  ;;  %v1168_v48 = vadd.s32 1, %v7137_v25  ;;  %v618_v59 = vshrl.u32 %v614_v23, 16 }
 0x276   : > { %v4226_v8 = vsel %vm4105_vm8, %v4225_v57, %v4224_v34  ;;  %v624_v16 = vadd.s32 %v622_v47, %v616_v27  ;;  %vm625_vm0 = vc.u32 %v623_v2, %v619_v37  ;;  %v620_v1 = vshrl.u32 %v615_v21, 16 }
 0x277   : > { %v4229_v40 = vsel %vm9935_vm3, %v9537_v44, %v4226_v8  ;;  %v626_v3 = vsel %vm625_vm0, 1, %v11040_v35  ;;  %vm1169_vm11 = vcmp.gt.s32.totalorder %v1168_v48, 0  ;;  %v9970_v4 = vadd.s32 %v607_v55, %v598_v26 }
 0x278   : > { %v4231_v20 = vmul.f32 %v4229_v40, %v4229_v40  ;;  %v9972_v42 = vadd.s32 %v623_v2, %v619_v37  ;;  %v628_v24 = vadd.s32 %v626_v3, %v624_v16  ;;  %v1170_v45 = vsel %vm1169_vm11, %v1168_v48, 0 }
 0x279   : > { %v9974_v34 = vand.u32 3, %v4230_v12  ;;  %v631_v23 = vmul.u32 %v9870_v30, %v577_v11  ;;  %v1172_v52 = vand.u32 31, %v1170_v45  ;;  %v11073_v21 = vxor.u32 2147483648, %v9891_v46 }
 0x27a   : > { %v4232_v61 = vmul.f32 -0.001358992, %v4231_v20  ;;  %v4239_v22 = vmul.f32 -0.00019511016, %v4231_v20  ;;  %v629_v53 = vadd.s32 %v628_v24, %v618_v59  ;;  %vm5024_vm8 = vcmp.eq.s32.totalorder %v9954_v39, 2 }
 0x27b   : > { %v9982_v18 = vsel %vm5021_vm9, %v9881_v13, %v11073_v21  ;;  %vm4253_vm5 = vcmp.eq.s32.totalorder %v9958_v54, 2  ;;  %vm633_vm1 = vc.u32 %v9970_v4, %v9972_v42  ;;  %v1165_v30 = vand.u32 8388607, %v10996_v43 }
 0x27c   : > { %v4233_v50 = vadd.f32 0.041655596, %v4232_v61  ;;  %v4240_v27 = vadd.f32 0.008332121, %v4239_v22  ;;  %v630_v37 = vadd.s32 %v629_v53, %v620_v1  ;;  %v9990_v12 = vsub.s32 32, %v1172_v52 }
 0x27d   : > { %v9992_v25 = vshrl.u32 %v1170_v45, 5  ;;  %v1178_v26 = vshll.u32 %v11030_v32, %v1172_v52  ;;  %vm4250_vm12 = vcmp.eq.s32.totalorder %v9958_v54, 0  ;;  %v1181_v8 = vshll.u32 %v11031_v28, %v1172_v52 }
 0x27e   : > { %v4234_v57 = vmul.f32 %v4233_v50, %v4231_v20  ;;  %v4241_v11 = vmul.f32 %v4240_v27, %v4231_v20  ;;  %v634_v55 = vadd.s32 1, %v630_v37  ;;  %v1179_v2 = vshrl.u32 %v11031_v28, %v9990_v12 }
 0x27f   : > { %v1184_v47 = vshll.u32 %v11032_v63, %v1172_v52  ;;  %vm4249_vm15 = vcmp.lt.s32.totalorder %v9958_v54, 2  ;;  %vm5020_vm7 = vcmp.lt.s32.totalorder %v9954_v39, 2  ;;  %v1182_v16 = vshrl.u32 %v11032_v63, %v9990_v12 }
 0x280   : > { %v4235_v48 = vadd.f32 -0.4999988, %v4234_v57  ;;  %v4242_v59 = vadd.f32 -0.16666654, %v4241_v11  ;;  %v1185_v1 = vshrl.u32 %v11033_v19, %v9990_v12  ;;  %v635_v3 = vsel %vm633_vm1, %v634_v55, %v630_v37 }
 0x281   : > { %v1175_v24 = vshll.u32 %v11035_v0, %v1172_v52  ;;  %v1176_v45 = vshrl.u32 %v11030_v32, %v9990_v12  ;;  %v1187_v61 = vshll.u32 %v11033_v19, %v1172_v52  ;;  %v11074_v50 = vxor.u32 2147483648, %v9881_v13 }
 0x282   : > { %v4236_v22 = vmul.f32 %v4235_v48, %v4231_v20  ;;  %v4243_v53 = vmul.f32 %v4242_v59, %v4231_v20  ;;  %v636_v21 = vadd.s32 %v635_v3, %v631_v23  ;;  %v1166_v57 = vor.u32 8388608, %v1165_v30 }
 0x283   : > { %v5026_v27 = vsel %vm5024_vm8, %v11074_v50, %v9891_v46  ;;  %v10018_v11 = vor.u32 %v1179_v2, %v1178_v26  ;;  %v1186_v37 = vor.u32 %v1185_v1, %v1184_v47  ;;  %v1188_v55 = vshrl.u32 %v11034_v58, %v9990_v12  ;;  %v10053_v1 = vld.sshfl [vmem:[#allocation1 + $0x38] sm:$0xff pattern:$0x75316420] }
 0x284   : > { %v4237_v43 = vadd.f32 1.0, %v4236_v22  ;;  %v4244_v62 = vadd.f32 1.0, %v4243_v53  ;;  %v637_v6 = vadd.s32 536870912, %v636_v21  ;;  %v10022_v52 = vor.u32 %v1182_v16, %v1181_v8  ;;  %v10051_v16 = vld.sshfl [vmem:[#allocation1 + $0x30] sm:$0xff pattern:$0x75316420] }
 0x285   : > { %v10024_v20 = vor.u32 %v1176_v45, %v1175_v24  ;;  %v1189_v48 = vor.u32 %v1188_v55, %v1187_v61  ;;  %vm1190_vm3 = vcmp.lt.s32.totalorder %v9992_v25, 1  ;;  %vm1193_vm14 = vcmp.lt.s32.totalorder %v9992_v25, 4 }
 0x286   : > { %v4245_v13 = vmul.f32 %v4244_v62, %v4229_v40  ;;  %v4254_v46 = vxor.u32 2147483648, %v4237_v43  ;;  %v10028_v23 = vshrl.u32 %v637_v6, 30  ;;  %vm1192_vm6 = vcmp.lt.s32.totalorder %v9992_v25, 3 }
 0x287   : > { %vm1191_vm13 = vcmp.lt.s32.totalorder %v9992_v25, 2  ;;  %v1199_v30 = vsel %vm1193_vm14, %v1186_v37, 920167782  ;;  %v1203_v26 = vsel %vm1193_vm14, %v1189_v48, 1326507024  ;;  %v10036_v2 = vshll.u32 %v1166_v57, 8 }
 0x288   : > { %v4251_v8 = vxor.u32 2147483648, %v4245_v13  ;;  %v4255_v47 = vsel %vm4253_vm5, %v4254_v46, %v4245_v13  ;;  %v639_v62 = vshll.u32 %v10028_v23, 30  ;;  %v1202_v6 = vsel %vm1190_vm3, %v10018_v11, %v10022_v52 }
 0x289   : > { %vm4246_vm9 = vweird.f32 %v9537_v44  ;;  %vm5640_vm0 = vcmp.eq.s32.totalorder %v9974_v34, 2  ;;  %v1204_v40 = vsel %vm1192_vm6, %v1186_v37, %v1203_v26  ;;  %v1198_v24 = vsel %vm1190_vm3, %v10024_v20, %v10018_v11 }
 0x28a   : > { %v4252_v59 = vsel %vm4250_vm12, %v4237_v43, %v4251_v8  ;;  %v10055_v3 = vsub.s32 %v636_v21, %v639_v62  ;;  %v1200_v45 = vsel %vm1192_vm6, %v10022_v52, %v1199_v30  ;;  %v5027_v22 = vsel %vm5020_vm7, %v9982_v18, %v5026_v27 }
 0x28b   : > { %v4256_v61 = vsel %vm4249_vm15, %v4252_v59, %v4255_v47  ;;  %v1205_v53 = vsel %vm1191_vm13, %v1202_v6, %v1204_v40  ;;  %v1207_v50 = vand.u32 65535, %v10036_v2  ;;  %v10077_v37 = vshrl.u32 %v10036_v2, 16 }
 0x28c   : > { %v4257_v21 = vsel %vm4246_vm9, nan, %v4256_v61  ;;  %vm641_vm11 = vcmp.lt.s32.totalorder %v10055_v3, 0  ;;  %v642_v57 = vsub.s32 0, %v10055_v3  ;;  %vm5637_vm8 = vcmp.eq.s32.totalorder %v9974_v34, 0 }
 0x28d   : > { %5941 = vst [vmem:[#allocation1 + $0x30] ss:$2 sm:$0xff] %v4257_v21  ;;  %v1201_v39 = vsel %vm1191_vm13, %v1198_v24, %v1200_v45  ;;  %v1209_v54 = vand.u32 65535, %v1205_v53  ;;  %v1210_v27 = vshrl.u32 %v1205_v53, 16  ;;  %v5028_v55 = vsel %vm3626_vm2, nan, %v5027_v22 }
 0x28e   : > { %v643_v18 = vsel %vm641_vm11, %v642_v57, %v10055_v3  ;;  %vm5636_vm5 = vcmp.lt.s32.totalorder %v9974_v34, 2  ;;  %v5642_v48 = vsel %vm5640_vm0, %v4254_v46, %v4245_v13  ;;  %v5639_v26 = vsel %vm5637_vm8, %v4237_v43, %v4251_v8 }
 0x28f   : > { %v644_v30 = vclz %v643_v18  ;;  %v10088_v47 = vmul.u32 %v1210_v27, %v1207_v50  ;;  %v10091_v62 = vmul.u32 %v1209_v54, %v10077_v37  ;;  %v1232_v6 = vshrl.u32 %v1201_v39, 16 }
 0x290   : > { %v6087_v40 = vsel %vm6086_vm4, %v9007_v60, %v9124_v7  ;;  %v6105_v9 = vsel %vm6086_vm4, %v9244_v14, %v9505_v41  ;;  %v6088_v13 = vsel %vm6086_vm4, %v9019_v15, %v9126_v33  ;;  %v6106_v43 = vsel %vm6086_vm4, %v9247_v38, %v9507_v56 }
 0x291   : > { %v6145_v46 = vpack.c.bf16 %v6105_v9, %v6087_v40  ;;  %v6146_v8 = vpack.c.bf16 %v6106_v43, %v6088_v13  ;;  %v1211_v59 = vmul.u32 %v1209_v54, %v1207_v50  ;;  %v1231_v24 = vand.u32 65535, %v1201_v39 }
 0x292   : > { %v7126_v45 = vadd.s32 4294967294, %v644_v30  ;;  %v1215_v61 = vshll.u32 %v10088_v47, 16  ;;  %v632_v15 = vadd.s32 %v9972_v42, %v9970_v4  ;;  %v1214_v33 = vmul.u32 %v1210_v27, %v10077_v37  ;;  %v10124_v4 = vld [vmem:[%s10964_s1] sm:$0xff] }
 0x293   : > { %6283 = vmatpush.bf16.msra.mxu0 %v6145_v46  ;;  %6302 = vmatpush.bf16.msra.mxu1 %v6146_v8  ;;  %v5643_v38 = vsel %vm5636_vm5, %v5639_v26, %v5642_v48  ;;  %v1217_v14 = vshll.u32 %v10091_v62, 16  ;;  %v10116_v41 = vmul.u32 %v1232_v6, %v1207_v50  ;;  %v10119_v53 = vmul.u32 %v1231_v24, %v10077_v37 }
 0x294   : > { %v10106_v60 = vld.sshfl [vmem:[#allocation1 + $0x30] sm:$0xff pattern:$0x75316420]  ;;  %v10108_v7 = vld.sshfl [vmem:[#allocation1 + $0x38] sm:$0xff pattern:$0x75316420]  ;;  %vm1219_vm1 = vc.u32 %v1211_v59, %v1215_v61  ;;  %v1221_v22 = vadd.s32 %v1215_v61, %v1211_v59  ;;  %v1233_v54 = vmul.u32 %v1231_v24, %v1207_v50  ;;  %v1236_v59 = vmul.u32 %v1232_v6, %v10077_v37 }
 0x295   : > { %5987 = vst [vmem:[#allocation1 + $0x31] ss:$2 sm:$0xff] %v5028_v55  ;;  %vm7127_vm2 = vcmp.lt.s32.totalorder %v7126_v45, 0  ;;  %v1220_v57 = vsel %vm1219_vm1, 1, %v11040_v35  ;;  %v1237_v48 = vshll.u32 %v10116_v41, 16  ;;  %v5644_v30 = vsel %vm4246_vm9, nan, %v5643_v38 }
 0x296   : > { %v647_v56 = vsel %vm7127_vm2, 0, %v7126_v45  ;;  %7235 = vmatmul.msk.bf16.vlgmr.msra.gmra.mxu0 %vm6215_vm10, %v10124_v4  ;;  %7237 = vmatmul.msk.bf16.vlgmr.msra.gmra.mxu1 %vm6215_vm10, %v10124_v4  ;;  %v1222_v39 = vadd.s32 %v1220_v57, %v1214_v33  ;;  %vm1223_vm12 = vc.u32 %v1221_v22, %v1217_v14  ;;  %v662_v26 = vsub.s32 4, %v10028_v23 }
 0x297   : > { %v648_v42 = vsub.s32 32, %v647_v56  ;;  %v649_v34 = vshll.u32 %v10055_v3, %v647_v56  ;;  %v652_v21 = vsub.s32 4294967266, %v647_v56  ;;  %v1224_v55 = vsel %vm1223_vm12, 1, %v11040_v35 }
 0x298   : > { %v1216_v40 = vshrl.u32 %v10088_v47, 16  ;;  %v10139_v3 = vmul.f32 2.0, %v9755_v36  ;;  %v1226_v43 = vadd.s32 %v1224_v55, %v1222_v39  ;;  %v1239_v50 = vshll.u32 %v10119_v53, 16 }
 0x299   : > { %v650_v18 = vshrl.u32 %v632_v15, %v648_v42  ;;  %v653_v27 = vadd.s32 127, %v652_v21  ;;  %vm1241_vm15 = vc.u32 %v1233_v54, %v1237_v48  ;;  %v1243_v44 = vadd.s32 %v1237_v48, %v1233_v54 }
 0x29a   : > { %vm540_vm7 = vcmp.lt.s32.totalorder %v9755_v36, 0  ;;  %v1174_v45 = vshrl.u32 %v11035_v0, %v9990_v12  ;;  %v1195_v15 = vsel %vm1193_vm14, %v10022_v52, 2102212464  ;;  %v1218_v37 = vshrl.u32 %v10091_v62, 16 }
 0x29b   : > { %v651_v9 = vor.u32 %v650_v18, %v649_v34  ;;  %v654_v13 = vshll.u32 %v653_v27, 23  ;;  %v663_v61 = vsel %vm540_vm7, %v662_v26, %v10028_v23  ;;  %v1227_v33 = vadd.s32 %v1226_v43, %v1216_v40  ;;  %v10198_v43 = vld [vmem:[%s10964_s1 + $0x8] sm:$0xff] }
 0x29c   : > { %v10142_v46 = vld.sshfl [vmem:[#allocation1 + $0x30] sm:$0xff pattern:$0x75316420]  ;;  %v10144_v8 = vld.sshfl [vmem:[#allocation1 + $0x38] sm:$0xff pattern:$0x75316420]  ;;  %vm1245_vm9 = vc.u32 %v1243_v44, %v1239_v50  ;;  %v1194_v23 = vsel %vm1190_vm3, %v1174_v45, %v10024_v20  ;;  %v1196_v52 = vsel %vm1192_vm6, %v10018_v11, %v1195_v15  ;;  %v10174_v18 = vadd.s32 %v1243_v44, %v1239_v50 }
 0x29d   : > { %5999 = vst [vmem:[#allocation1 + $0x31] ss:$2 sm:$0xff] %v5644_v30  ;;  %v655_v47 = vor.u32 4788187, %v654_v13  ;;  %v658_v24 = vcvt.s32.f32 %v651_v9  ;;  %v1242_v38 = vsel %vm1241_vm15, 1, %v11040_v35  ;;  %v1238_v14 = vshrl.u32 %v10116_v41, 16 }
 0x29e   : > { %v1244_v56 = vadd.s32 %v1242_v38, %v1236_v59  ;;  %v1246_v12 = vsel %vm1245_vm9, 1, %v11040_v35  ;;  %v3331_v22 = vand.u32 2139095040, %v10139_v3  ;;  %v11075_v62 = vand.u32 2147483647, %v9755_v36 }
 0x29f   : > { %v656_v6 = vand.u32 2147483647, %v655_v47  ;;  %v1240_v34 = vshrl.u32 %v10119_v53, 16  ;;  %v10172_v54 = vadd.s32 %v1227_v33, %v1218_v37  ;;  %v1197_v11 = vsel %vm1191_vm13, %v1194_v23, %v1196_v52 }
 0x2a0   : > { %vm539_vm14 = vcmp.le.f32.partialorder %v11075_v62, 0.7853982  ;;  %v1248_v41 = vadd.s32 %v1246_v12, %v1244_v56  ;;  %v3332_v21 = vshrl.u32 %v3331_v22, 23  ;;  %v3328_v9 = vand.u32 2147483647, %v10139_v3 }
 0x2a1   : > { %v659_v42 = vmul.f32 %v658_v24, %v656_v6  ;;  %v10170_v39 = vsel %vm539_vm14, 0, %v663_v61  ;;  %v1251_v25 = vmul.u32 %v10036_v2, %v1197_v11  ;;  %vm1253_vm3 = vc.u32 %v10172_v54, %v10174_v18 }
 0x2a2   : > { %v1249_v55 = vadd.s32 %v1248_v41, %v1238_v14  ;;  %v7179_v48 = vadd.s32 4294967169, %v3332_v21  ;;  %v682_v26 = vadd.s32 3, %v10170_v39  ;;  %v10207_v24 = vmul.f32 2.0, %v9929_v5 }
 0x2a3   : > { %v660_v57 = vxor.u32 2147483648, %v659_v42  ;;  %v10211_v45 = vand.u32 8388607, %v3328_v9  ;;  %v6093_v14 = vsel %vm6086_vm4, %v9778_v17, %v9852_v51  ;;  %v6111_v56 = vsel %vm6086_vm4, %v10051_v16, %v10142_v46 }
 0x2a4   : > { %v10176_v27 = vld.sshfl [vmem:[#allocation1 + $0x30] sm:$0xff pattern:$0x75316420]  ;;  %v10178_v20 = vld.sshfl [vmem:[#allocation1 + $0x38] sm:$0xff pattern:$0x75316420]  ;;  %v1250_v40 = vadd.s32 %v1249_v55, %v1240_v34  ;;  %v6094_v12 = vsel %vm6086_vm4, %v9780_v31, %v9854_v10  ;;  %v6112_v22 = vsel %vm6086_vm4, %v10053_v1, %v10144_v8  ;;  %v6151_v46 = vpack.c.bf16 %v6111_v56, %v6093_v14 }
 0x2a5   : > { %6044 = vst [vmem:[#allocation1 + $0x30] ss:$2 sm:$0xff] %v9599_v49  ;;  %v661_v53 = vsel %vm540_vm7, %v660_v57, %v659_v42  ;;  %v3338_v49 = vadd.s32 1, %v7179_v48  ;;  %v10204_v2 = vand.u32 3, %v682_v26  ;;  %vm681_vm0 = vweird.f32 %v9755_v36 }
 0x2a6   : > { %v10186_v30 = vsel %vm539_vm14, %v9755_v36, %v661_v53  ;;  %7236 = vmatmul.msk.bf16.gmra.mxu0 %vm6215_vm10, %v10198_v43  ;;  %7238 = vmatmul.msk.bf16.gmra.mxu1 %vm6215_vm10, %v10198_v43  ;;  %v1254_v50 = vadd.s32 1, %v1250_v40  ;;  %v6152_v8 = vpack.c.bf16 %v6112_v22, %v6094_v12  ;;  %v3336_v53 = vor.u32 8388608, %v10211_v45 }
 0x2a7   : > { %v666_v13 = vmul.f32 %v10186_v30, %v10186_v30  ;;  %vm3339_vm6 = vcmp.gt.s32.totalorder %v3338_v49, 0  ;;  %vm684_vm13 = vcmp.lt.s32.totalorder %v10204_v2, 2  ;;  %vm685_vm11 = vcmp.eq.s32.totalorder %v10204_v2, 0 }
 0x2a8   : > { %v1255_v47 = vsel %vm1253_vm3, %v1254_v50, %v1250_v40  ;;  %v3340_v6 = vsel %vm3339_vm6, %v3338_v49, 0  ;;  %vm688_vm8 = vcmp.eq.s32.totalorder %v10204_v2, 2  ;;  %v3951_v48 = vand.u32 2139095040, %v10207_v24 }
 0x2a9   : > { %v667_v59 = vmul.f32 -0.001358992, %v666_v13  ;;  %v674_v44 = vmul.f32 -0.00019511016, %v666_v13  ;;  %v1256_v37 = vadd.s32 %v1255_v47, %v1251_v25  ;;  %v3342_v16 = vand.u32 31, %v3340_v6 }
 0x2aa   : > { %v1252_v2 = vadd.s32 %v10174_v18, %v10172_v54  ;;  %vm1160_vm9 = vcmp.lt.s32.totalorder %v9929_v5, 0 }
 0x2ab   : > { %v668_v61 = vadd.f32 0.041655596, %v667_v59  ;;  %v675_v15 = vadd.f32 0.008332121, %v674_v44  ;;  %v1257_v34 = vadd.s32 536870912, %v1256_v37  ;;  %v3348_v25 = vshll.u32 %v11030_v32, %v3342_v16 }
 0x2ac   : > { %v6051_v33 = vld.sshfl [vmem:[#allocation1 + $0x30] sm:$0xff pattern:$0x75316420]  ;;  %v6052_v38 = vld.sshfl [vmem:[#allocation1 + $0x38] sm:$0xff pattern:$0x75316420]  ;;  %v3345_v59 = vshll.u32 %v11035_v0, %v3342_v16  ;;  %v3351_v44 = vshll.u32 %v11031_v28, %v3342_v16  ;;  %v3357_v56 = vshll.u32 %v11033_v19, %v3342_v16 }
 0x2ad   : > { %v6129_v42 = vsel %vm6086_vm4, %v6051_v33, 0.0  ;;  %v6130_v23 = vsel %vm6086_vm4, %v6052_v38, 0.0  ;;  %6056 = vst [vmem:[#allocation1 + $0x30] ss:$2 sm:$0xff] %v9230_v29  ;;  %v669_v52 = vmul.f32 %v668_v61, %v666_v13  ;;  %v676_v17 = vmul.f32 %v675_v15, %v666_v13 }
 0x2ae   : > { %v6169_v51 = vpack.c.bf16 %v6129_v42, %v6129_v42  ;;  %v6170_v62 = vpack.c.bf16 %v6130_v23, %v6130_v23  ;;  %v10232_v1 = vshrl.u32 %v1257_v34, 30  ;;  %v10234_v29 = vsub.s32 32, %v3342_v16 }
 0x2af   : > { %v670_v41 = vadd.f32 -0.4999988, %v669_v52  ;;  %v677_v21 = vadd.f32 -0.16666654, %v676_v17  ;;  %v3354_v33 = vshll.u32 %v11032_v63, %v3342_v16  ;;  %v3952_v23 = vshrl.u32 %v3951_v48, 23 }
 0x2b0   : > { %v6241_v31 = vsel %vm6086_vm4, %v6169_v51, 0  ;;  %v6244_v10 = vsel %vm6086_vm4, %v6170_v62, 0  ;;  %v1259_v55 = vshll.u32 %v10232_v1, 30  ;;  %v3349_v49 = vshrl.u32 %v11031_v28, %v10234_v29 }
 0x2b1   : > { %6396 = vmatpush.bf16.msrb.mxu2 %v6241_v31  ;;  %6415 = vmatpush.bf16.msrb.mxu3 %v6244_v10  ;;  %v671_v57 = vmul.f32 %v670_v41, %v666_v13  ;;  %v678_v11 = vmul.f32 %v677_v21, %v666_v13  ;;  %v10248_v13 = vshrl.u32 %v3340_v6, 5  ;;  %v3346_v61 = vshrl.u32 %v11030_v32, %v10234_v29 }
 0x2b2   : > { %v10246_v50 = vsub.s32 %v1256_v37, %v1259_v55  ;;  %v10258_v15 = vor.u32 %v3349_v49, %v3348_v25  ;;  %v3352_v6 = vshrl.u32 %v11032_v63, %v10234_v29  ;;  %v3355_v14 = vshrl.u32 %v11033_v19, %v10234_v29 }
 0x2b3   : > { %v10241_v26 = vadd.f32 1.0, %v671_v57  ;;  %v679_v40 = vadd.f32 1.0, %v678_v11  ;;  %v3358_v42 = vshrl.u32 %v11034_v58, %v10234_v29  ;;  %vm3360_vm2 = vcmp.lt.s32.totalorder %v10248_v13, 1 }
 0x2b4   : > { %vm1261_vm5 = vcmp.lt.s32.totalorder %v10246_v50, 0  ;;  %v1262_v37 = vsub.s32 0, %v10246_v50  ;;  %v3353_v22 = vor.u32 %v3352_v6, %v3351_v44  ;;  %v3356_v51 = vor.u32 %v3355_v14, %v3354_v33 }
 0x2b5   : > { %6397 = vmatpush.bf16.msrb.mxu2 %v6151_v46  ;;  %6416 = vmatpush.bf16.msrb.mxu3 %v6152_v8  ;;  %v10253_v47 = vmul.f32 %v679_v40, %v10186_v30  ;;  %v689_v45 = vxor.u32 2147483648, %v10241_v26  ;;  %v3359_v62 = vor.u32 %v3358_v42, %v3357_v56  ;;  %vm3363_vm1 = vcmp.lt.s32.totalorder %v10248_v13, 4 }
 0x2b6   : > { %v1263_v12 = vsel %vm1261_vm5, %v1262_v37, %v10246_v50  ;;  %v10290_v34 = vshll.u32 %v3336_v53, 8  ;;  %vm3362_vm12 = vcmp.lt.s32.totalorder %v10248_v13, 3  ;;  %v3347_v41 = vor.u32 %v3346_v61, %v3345_v59 }
 0x2b7   : > { %v686_v38 = vxor.u32 2147483648, %v10253_v47  ;;  %v690_v30 = vsel %vm688_vm8, %v689_v45, %v10253_v47  ;;  %v1264_v17 = vclz %v1263_v12  ;;  %vm3361_vm15 = vcmp.lt.s32.totalorder %v10248_v13, 2 }
 0x2b8   : > { %7247 = vmatmul.msk.bf16.vlgmr.msrb.gmra.mxu2 %vm6215_vm10, %v10124_v4  ;;  %7249 = vmatmul.msk.bf16.vlgmr.msrb.gmra.mxu3 %vm6215_vm10, %v10124_v4  ;;  %v3372_v21 = vsel %vm3360_vm2, %v10258_v15, %v3353_v22  ;;  %v3369_v31 = vsel %vm3363_vm1, %v3356_v51, 920167782  ;;  %v3373_v10 = vsel %vm3363_vm1, %v3359_v62, 1326507024  ;;  %v3377_v11 = vand.u32 65535, %v10290_v34 }
 0x2b9   : > { %v687_v52 = vsel %vm685_vm11, %v10241_v26, %v686_v38  ;;  %v7138_v46 = vadd.s32 4294967294, %v1264_v17  ;;  %v3374_v57 = vsel %vm3362_vm12, %v3356_v51, %v3373_v10  ;;  %v7191_v55 = vadd.s32 4294967169, %v3952_v23 }
 0x2ba   : > { %v691_v4 = vsel %vm684_vm13, %v687_v52, %v690_v30  ;;  %v3375_v54 = vsel %vm3361_vm15, %v3372_v21, %v3374_v57  ;;  %v3368_v18 = vsel %vm3360_vm2, %v3347_v41, %v10258_v15  ;;  %v3370_v25 = vsel %vm3362_vm12, %v3353_v22, %v3369_v31 }
 0x2bb   : > { %v692_v16 = vsel %vm681_vm0, nan, %v691_v4  ;;  %vm7139_vm7 = vcmp.lt.s32.totalorder %v7138_v46, 0  ;;  %v3378_v49 = vshrl.u32 %v10290_v34, 16  ;;  %v3379_v59 = vand.u32 65535, %v3375_v54 }
 0x2bc   : > { %5812 = vst [vmem:[#allocation1 + $0x20] ss:$2 sm:$0xff] %v692_v16  ;;  %v1267_v8 = vsel %vm7139_vm7, 0, %v7138_v46  ;;  %v3380_v37 = vshrl.u32 %v3375_v54, 16  ;;  %v3344_v6 = vshrl.u32 %v11035_v0, %v10234_v29  ;;  %v3948_v33 = vand.u32 2147483647, %v10207_v24 }
 0x2bd   : > { %v1268_v53 = vsub.s32 32, %v1267_v8  ;;  %v1269_v48 = vshll.u32 %v10246_v50, %v1267_v8  ;;  %v1272_v40 = vsub.s32 4294967266, %v1267_v8  ;;  %v1282_v50 = vsub.s32 4, %v10232_v1 }
 0x2be   : > { %v3958_v30 = vadd.s32 1, %v7191_v55  ;;  %v11076_v14 = vand.u32 2147483647, %v9929_v5  ;;  %v2075_v23 = vand.u32 3, %v10170_v39  ;;  %v3371_v52 = vsel %vm3361_vm15, %v3368_v18, %v3370_v25 }
 0x2bf   : > { %v1270_v44 = vshrl.u32 %v1252_v2, %v1268_v53  ;;  %v1273_v61 = vadd.s32 127, %v1272_v40  ;;  %v3381_v17 = vmul.u32 %v3379_v59, %v3377_v11  ;;  %v3382_v51 = vmul.u32 %v3380_v37, %v3377_v11 }
 0x2c0   : > { %vm10324_vm14 = vcmp.le.f32.partialorder %v11076_v14, 0.7853982  ;;  %v3383_v4 = vmul.u32 %v3379_v59, %v3378_v49  ;;  %v3401_v29 = vand.u32 65535, %v3371_v52  ;;  %vm2076_vm3 = vcmp.lt.s32.totalorder %v2075_v23, 2 }
 0x2c1   : > { %v1271_v12 = vor.u32 %v1270_v44, %v1269_v48  ;;  %v1274_v42 = vshll.u32 %v1273_v61, 23  ;;  %vm2077_vm6 = vcmp.eq.s32.totalorder %v2075_v23, 0  ;;  %vm2080_vm13 = vcmp.eq.s32.totalorder %v2075_v23, 2 }
 0x2c2   : > { %v2079_v46 = vsel %vm2077_vm6, %v10241_v26, %v686_v38  ;;  %v3365_v21 = vsel %vm3363_vm1, %v3353_v22, 2102212464  ;;  %v3402_v39 = vshrl.u32 %v3371_v52, 16  ;;  %v2082_v31 = vsel %vm2080_vm13, %v689_v45, %v10253_v47 }
 0x2c3   : > { %v1275_v62 = vor.u32 4788187, %v1274_v42  ;;  %v1278_v16 = vcvt.s32.f32 %v1271_v12  ;;  %v3384_v10 = vmul.u32 %v3380_v37, %v3378_v49  ;;  %v3385_v8 = vshll.u32 %v3382_v51, 16 }
 0x2c4   : > { %v2083_v57 = vsel %vm2076_vm3, %v2079_v46, %v2082_v31  ;;  %v3364_v55 = vsel %vm3360_vm2, %v3344_v6, %v3347_v41  ;;  %v3387_v53 = vshll.u32 %v3383_v4, 16  ;;  %v3405_v48 = vmul.u32 %v3401_v29, %v3378_v49 }
 0x2c5   : > { %v1276_v2 = vand.u32 2147483647, %v1275_v62  ;;  %v10347_v22 = vsel %vm681_vm0, nan, %v2083_v57  ;;  %vm3389_vm11 = vc.u32 %v3381_v17, %v3385_v8  ;;  %v3391_v26 = vadd.s32 %v3385_v8, %v3381_v17 }
 0x2c6   : > { %v3366_v47 = vsel %vm3362_vm12, %v10258_v15, %v3365_v21  ;;  %v3390_v45 = vsel %vm3389_vm11, 1, %v11040_v35  ;;  %v3403_v41 = vmul.u32 %v3401_v29, %v3377_v11  ;;  %v3404_v40 = vmul.u32 %v3402_v39, %v3377_v11 }
 0x2c7   : > { %v1279_v38 = vmul.f32 %v1278_v16, %v1276_v2  ;;  %v3386_v18 = vshrl.u32 %v3382_v51, 16  ;;  %v3392_v25 = vadd.s32 %v3390_v45, %v3384_v10  ;;  %vm3393_vm8 = vc.u32 %v3391_v26, %v3387_v53 }
 0x2c8   : > { %7248 = vmatmul.msk.bf16.gmra.mxu2 %vm6215_vm10, %v10198_v43  ;;  %7250 = vmatmul.msk.bf16.gmra.mxu3 %vm6215_vm10, %v10198_v43  ;;  %v3394_v59 = vsel %vm3393_vm8, 1, %v11040_v35  ;;  %v3406_v44 = vmul.u32 %v3402_v39, %v3378_v49  ;;  %v3407_v61 = vshll.u32 %v3404_v40, 16  ;;  %v3409_v37 = vshll.u32 %v3405_v48, 16 }
 0x2c9   : > { %v1280_v54 = vxor.u32 2147483648, %v1279_v38  ;;  %v3388_v14 = vshrl.u32 %v3383_v4, 16  ;;  %v3396_v12 = vadd.s32 %v3394_v59, %v3392_v25  ;;  %vm3959_vm0 = vcmp.gt.s32.totalorder %v3958_v30, 0 }
 0x2ca   : > { %vm3411_vm5 = vc.u32 %v3403_v41, %v3407_v61  ;;  %v3413_v11 = vadd.s32 %v3407_v61, %v3403_v41  ;;  %v3960_v42 = vsel %vm3959_vm0, %v3958_v30, 0  ;;  %v3367_v49 = vsel %vm3361_vm15, %v3364_v55, %v3366_v47 }
 0x2cb   : > { %v1281_v6 = vsel %vm1160_vm9, %v1280_v54, %v1279_v38  ;;  %v3397_v52 = vadd.s32 %v3396_v12, %v3386_v18  ;;  %v3412_v17 = vsel %vm3411_vm5, 1, %v11040_v35  ;;  %v3408_v51 = vshrl.u32 %v3404_v40, 16 }
 0x2cc   : > { %v10359_v15 = vsel %vm10324_vm14, %v9929_v5, %v1281_v6  ;;  %v3414_v4 = vadd.s32 %v3412_v17, %v3406_v44  ;;  %vm3415_vm2 = vc.u32 %v3413_v11, %v3409_v37  ;;  %v3962_v29 = vand.u32 31, %v3960_v42 }
 0x2cd   : > { %v1286_v23 = vmul.f32 %v10359_v15, %v10359_v15  ;;  %v3410_v46 = vshrl.u32 %v3405_v48, 16  ;;  %v3416_v21 = vsel %vm3415_vm2, 1, %v11040_v35  ;;  %v10367_v39 = vadd.s32 %v3397_v52, %v3388_v14 }
 0x2ce   : > { %v10369_v30 = vadd.s32 %v3413_v11, %v3409_v37  ;;  %v3418_v2 = vadd.s32 %v3416_v21, %v3414_v4  ;;  %v10371_v31 = vsub.s32 32, %v3962_v29  ;;  %v1283_v13 = vsel %vm1160_vm9, %v1282_v50, %v10232_v1 }
 0x2cf   : > { %v1287_v62 = vmul.f32 -0.001358992, %v1286_v23  ;;  %v1294_v16 = vmul.f32 -0.00019511016, %v1286_v23  ;;  %v3955_v57 = vand.u32 8388607, %v3948_v33  ;;  %v3421_v53 = vmul.u32 %v10290_v34, %v3367_v49 }
 0x2d0   : > { %v3419_v55 = vadd.s32 %v3418_v2, %v3408_v51  ;;  %v3965_v48 = vshll.u32 %v11035_v0, %v3962_v29  ;;  %v3968_v38 = vshll.u32 %v11030_v32, %v3962_v29  ;;  %v3966_v45 = vshrl.u32 %v11030_v32, %v10371_v31 }
 0x2d1   : > { %v1288_v10 = vadd.f32 0.041655596, %v1287_v62  ;;  %v1295_v8 = vadd.f32 0.008332121, %v1294_v16  ;;  %v3969_v1 = vshrl.u32 %v11031_v28, %v10371_v31  ;;  %vm3423_vm1 = vc.u32 %v10367_v39, %v10369_v30 }
 0x2d2   : > { %v3420_v50 = vadd.s32 %v3419_v55, %v3410_v46  ;;  %v10389_v41 = vshrl.u32 %v3960_v42, 5  ;;  %v3974_v34 = vshll.u32 %v11032_v63, %v3962_v29  ;;  %v3971_v54 = vshll.u32 %v11031_v28, %v3962_v29 }
 0x2d3   : > { %v1289_v26 = vmul.f32 %v1288_v10, %v1286_v23  ;;  %v1296_v47 = vmul.f32 %v1295_v8, %v1286_v23  ;;  %v3972_v18 = vshrl.u32 %v11032_v63, %v10371_v31  ;;  %v3975_v32 = vshrl.u32 %v11033_v19, %v10371_v31 }
 0x2d4   : > { %v10399_v25 = vsel %vm10324_vm14, 0, %v1283_v13  ;;  %v3424_v59 = vadd.s32 1, %v3420_v50  ;;  %v3977_v44 = vshll.u32 %v11033_v19, %v3962_v29  ;;  %v3978_v61 = vshrl.u32 %v11034_v58, %v10371_v31 }
 0x2d5   : > { %v1297_v40 = vadd.f32 -0.16666654, %v1296_v47  ;;  %v1290_v37 = vadd.f32 -0.4999988, %v1289_v26  ;;  %v10404_v6 = vor.u32 %v3966_v45, %v3965_v48  ;;  %v10406_v28 = vor.u32 %v3969_v1, %v3968_v38 }
 0x2d6   : > { %v3976_v14 = vor.u32 %v3975_v32, %v3974_v34  ;;  %v3425_v12 = vsel %vm3423_vm1, %v3424_v59, %v3420_v50  ;;  %v3979_v56 = vor.u32 %v3978_v61, %v3977_v44  ;;  %vm3983_vm12 = vcmp.lt.s32.totalorder %v10389_v41, 4 }
 0x2d7   : > { %v1298_v63 = vmul.f32 %v1297_v40, %v1286_v23  ;;  %v3426_v11 = vadd.s32 %v3425_v12, %v3421_v53  ;;  %v3956_v42 = vor.u32 8388608, %v3955_v57  ;;  %v10412_v19 = vor.u32 %v3972_v18, %v3971_v54 }
 0x2d8   : > { %vm3980_vm15 = vcmp.lt.s32.totalorder %v10389_v41, 1  ;;  %v1302_v58 = vadd.s32 3, %v10399_v25  ;;  %vm3982_vm7 = vcmp.lt.s32.totalorder %v10389_v41, 3  ;;  %v3989_v49 = vsel %vm3983_vm12, %v3976_v14, 920167782 }
 0x2d9   : > { %v1291_v52 = vmul.f32 %v1290_v37, %v1286_v23  ;;  %v3427_v17 = vadd.s32 536870912, %v3426_v11  ;;  %v1299_v51 = vadd.f32 1.0, %v1298_v63  ;;  %vm3981_vm9 = vcmp.lt.s32.totalorder %v10389_v41, 2 }
 0x2da   : > { %v3988_v4 = vsel %vm3980_vm15, %v10404_v6, %v10406_v28  ;;  %v3993_v29 = vsel %vm3983_vm12, %v3979_v56, 1326507024  ;;  %v3990_v16 = vsel %vm3982_vm7, %v10412_v19, %v3989_v49  ;;  %v3992_v23 = vsel %vm3980_vm15, %v10406_v28, %v10412_v19 }
 0x2db   : > { %v10426_v62 = vshrl.u32 %v3427_v17, 30  ;;  %v10435_v46 = vshll.u32 %v3956_v42, 8  ;;  %v1303_v21 = vand.u32 3, %v1302_v58  ;;  %v3994_v2 = vsel %vm3982_vm7, %v3976_v14, %v3993_v29 }
 0x2dc   : > { %v10439_v13 = vadd.f32 1.0, %v1291_v52  ;;  %v10443_v8 = vmul.f32 %v1299_v51, %v10359_v15  ;;  %v3991_v57 = vsel %vm3981_vm9, %v3988_v4, %v3990_v16  ;;  %v3995_v55 = vsel %vm3981_vm9, %v3992_v23, %v3994_v2 }
 0x2dd   : > { %v3429_v10 = vshll.u32 %v10426_v62, 30  ;;  %v3998_v53 = vshrl.u32 %v10435_v46, 16  ;;  %v3997_v38 = vand.u32 65535, %v10435_v46  ;;  %v4021_v26 = vand.u32 65535, %v3991_v57 }
 0x2de   : > { %vm1305_vm14 = vcmp.eq.s32.totalorder %v1303_v21, 0  ;;  %vm1308_vm3 = vcmp.eq.s32.totalorder %v1303_v21, 2  ;;  %v3999_v47 = vand.u32 65535, %v3995_v55  ;;  %v4000_v1 = vshrl.u32 %v3995_v55, 16 }
 0x2df   : > { %v3430_v48 = vsub.s32 %v3426_v11, %v3429_v10  ;;  %v4022_v15 = vshrl.u32 %v3991_v57, 16  ;;  %v1306_v50 = vxor.u32 2147483648, %v10443_v8  ;;  %v1309_v34 = vxor.u32 2147483648, %v10439_v13 }
 0x2e0   : > { %v4001_v40 = vmul.u32 %v3999_v47, %v3997_v38  ;;  %v4003_v54 = vmul.u32 %v3999_v47, %v3998_v53  ;;  %v4002_v32 = vmul.u32 %v4000_v1, %v3997_v38  ;;  %v4023_v59 = vmul.u32 %v4021_v26, %v3997_v38 }
 0x2e1   : > { %vm3431_vm6 = vcmp.lt.s32.totalorder %v3430_v48, 0  ;;  %v3432_v45 = vsub.s32 0, %v3430_v48  ;;  %v4024_v44 = vmul.u32 %v4022_v15, %v3997_v38  ;;  %vm1301_vm13 = vweird.f32 %v9929_v5 }
 0x2e2   : > { %vm1304_vm11 = vcmp.lt.s32.totalorder %v1303_v21, 2  ;;  %v4025_v37 = vmul.u32 %v4021_v26, %v3998_v53  ;;  %v4004_v14 = vmul.u32 %v4000_v1, %v3998_v53  ;;  %v4005_v63 = vshll.u32 %v4002_v32, 16 }
 0x2e3   : > { %v3433_v18 = vsel %vm3431_vm6, %v3432_v45, %v3430_v48  ;;  %v4007_v12 = vshll.u32 %v4003_v54, 16  ;;  %v4027_v56 = vshll.u32 %v4024_v44, 16  ;;  %v1307_v11 = vsel %vm1305_vm14, %v10439_v13, %v1306_v50 }
 0x2e4   : > { %v3434_v61 = vclz %v3433_v18  ;;  %v1310_v42 = vsel %vm1308_vm3, %v1309_v34, %v10443_v8  ;;  %v3422_v58 = vadd.s32 %v10369_v30, %v10367_v39  ;;  %vm4009_vm8 = vc.u32 %v4001_v40, %v4005_v63 }
 0x2e5   : > { %v4011_v52 = vadd.s32 %v4005_v63, %v4001_v40  ;;  %v4026_v17 = vmul.u32 %v4022_v15, %v3998_v53  ;;  %vm4031_vm0 = vc.u32 %v4023_v59, %v4027_v56  ;;  %v4006_v51 = vshrl.u32 %v4002_v32, 16 }
 0x2e6   : > { %v7180_v49 = vadd.s32 4294967294, %v3434_v61  ;;  %v4010_v4 = vsel %vm4009_vm8, 1, %v11040_v35  ;;  %v4029_v29 = vshll.u32 %v4025_v37, 16  ;;  %v4032_v2 = vsel %vm4031_vm0, 1, %v11040_v35 }
 0x2e7   : > { %v4012_v23 = vadd.s32 %v4010_v4, %v4004_v14  ;;  %vm4013_vm2 = vc.u32 %v4011_v52, %v4007_v12  ;;  %v1311_v30 = vsel %vm1304_vm11, %v1307_v11, %v1310_v42  ;;  %v3964_v53 = vshrl.u32 %v11035_v0, %v10371_v31  ;;  %v10482_v12 = vld.sshfl [vmem:[#allocation1 + $0x20] sm:$0xff pattern:$0x75316420]  ;;  %v10488_v11 = vld.sshfl [vmem:[#allocation1 + $0x28] sm:$0xff pattern:$0x75316420] }
 0x2e8   : > { %vm7181_vm5 = vcmp.lt.s32.totalorder %v7180_v49, 0  ;;  %v4014_v39 = vsel %vm4013_vm2, 1, %v11040_v35  ;;  %v3985_v38 = vsel %vm3983_vm12, %v10412_v19, 2102212464  ;;  %v4033_v1 = vadd.s32 %v4027_v56, %v4023_v59 }
 0x2e9   : > { %v3437_v16 = vsel %vm7181_vm5, 0, %v7180_v49  ;;  %v4016_v26 = vadd.s32 %v4014_v39, %v4012_v23  ;;  %v4034_v15 = vadd.s32 %v4032_v2, %v4026_v17  ;;  %v4008_v40 = vshrl.u32 %v4003_v54, 16 }
 0x2ea   : > { %v3438_v10 = vsub.s32 32, %v3437_v16  ;;  %v3439_v57 = vshll.u32 %v3430_v48, %v3437_v16  ;;  %v3442_v55 = vsub.s32 4294967266, %v3437_v16  ;;  %v4028_v61 = vshrl.u32 %v4024_v44, 16 }
 0x2eb   : > { %v4017_v18 = vadd.s32 %v4016_v26, %v4006_v51  ;;  %vm4035_vm1 = vc.u32 %v4033_v1, %v4029_v29  ;;  %v1312_v21 = vsel %vm1301_vm13, nan, %v1311_v30  ;;  %v3984_v0 = vsel %vm3980_vm15, %v3964_v53, %v10404_v6 }
 0x2ec   : > { %v3440_v47 = vshrl.u32 %v3422_v58, %v3438_v10  ;;  %v3443_v45 = vadd.s32 127, %v3442_v55  ;;  %v3986_v31 = vsel %vm3982_vm7, %v10406_v28, %v3985_v38  ;;  %v4036_v19 = vsel %vm4035_vm1, 1, %v11040_v35  ;;  %5825 = vst [vmem:[#allocation1 + $0x20] ss:$2 sm:$0xff] %v1312_v21 }
 0x2ed   : > { %v4030_v14 = vshrl.u32 %v4025_v37, 16  ;;  %v4038_v63 = vadd.s32 %v4036_v19, %v4034_v15  ;;  %v10484_v44 = vadd.s32 %v4017_v18, %v4008_v40  ;;  %v10486_v56 = vadd.s32 %v4033_v1, %v4029_v29 }
 0x2ee   : > { %v3441_v48 = vor.u32 %v3440_v47, %v3439_v57  ;;  %v3444_v32 = vshll.u32 %v3443_v45, 23  ;;  %v3987_v6 = vsel %vm3981_vm9, %v3984_v0, %v3986_v31  ;;  %v2691_v35 = vand.u32 3, %v10399_v25 }
 0x2ef   : > { %v4039_v58 = vadd.s32 %v4038_v63, %v4028_v61  ;;  %vm3330_vm12 = vcmp.lt.s32.totalorder %v10139_v3, 0  ;;  %v3452_v37 = vsub.s32 4, %v10426_v62  ;;  %v4041_v52 = vmul.u32 %v10435_v46, %v3987_v6 }
 0x2f0   : > { %v3445_v59 = vor.u32 4788187, %v3444_v32  ;;  %v3448_v54 = vcvt.s32.f32 %v3441_v48  ;;  %vm4043_vm15 = vc.u32 %v10484_v44, %v10486_v56  ;;  %vm10500_vm7 = vcmp.le.f32.partialorder %v3328_v9, 0.7853982 }
 0x2f1   : > { %v4040_v49 = vadd.s32 %v4039_v58, %v4030_v14  ;;  %vm2693_vm9 = vcmp.eq.s32.totalorder %v2691_v35, 0  ;;  %vm2696_vm14 = vcmp.eq.s32.totalorder %v2691_v35, 2  ;;  %v3453_v29 = vsel %vm3330_vm12, %v3452_v37, %v10426_v62 }
 0x2f2   : > { %v3446_v42 = vand.u32 2147483647, %v3445_v59  ;;  %vm2692_vm3 = vcmp.lt.s32.totalorder %v2691_v35, 2  ;;  %v2695_v9 = vsel %vm2693_vm9, %v10439_v13, %v1306_v50  ;;  %v2698_v10 = vsel %vm2696_vm14, %v1309_v34, %v10443_v8 }
 0x2f3   : > { %v4044_v51 = vadd.s32 1, %v4040_v49  ;;  %v10508_v23 = vld.sshfl [vmem:[#allocation1 + $0x20] sm:$0xff pattern:$0x75316420]  ;;  %v10521_v55 = vsel %vm10500_vm7, 0, %v3453_v29  ;;  %v2699_v53 = vsel %vm2692_vm3, %v2695_v9, %v2698_v10  ;;  %v4042_v58 = vadd.s32 %v10486_v56, %v10484_v44 }
 0x2f4   : > { %v3449_v28 = vmul.f32 %v3448_v54, %v3446_v42  ;;  %v10510_v2 = vld.sshfl [vmem:[#allocation1 + $0x28] sm:$0xff pattern:$0x75316420]  ;;  %v3472_v50 = vadd.s32 3, %v10521_v55  ;;  %v2700_v13 = vsel %vm1301_vm13, nan, %v2699_v53  ;;  %vm3471_vm5 = vweird.f32 %v10139_v3 }
 0x2f5   : > { %v4045_v4 = vsel %vm4043_vm15, %v4044_v51, %v4040_v49  ;;  %5870 = vst [vmem:[#allocation1 + $0x21] ss:$2 sm:$0xff] %v10347_v22  ;;  %vm3950_vm2 = vcmp.lt.s32.totalorder %v10207_v24, 0  ;;  %vm3949_vm1 = vcmp.le.f32.partialorder %v3948_v33, 0.7853982  ;;  %v6181_v33 = vld [vmem:[%s10965_s2] sm:$0xff]  ;;  %vm4091_vm9 = vweird.f32 %v10207_v24 }
 0x2f6   : > { %v3450_v17 = vxor.u32 2147483648, %v3449_v28  ;;  %v4046_v16 = vadd.s32 %v4045_v4, %v4041_v52  ;;  %v3473_v48 = vand.u32 3, %v3472_v50  ;;  %6187 = vperm.xlu1 %7361, %v6181_v33   ;;  %v6184_v33 = vld [vmem:[%s10965_s2 + $0x18] sm:$0xff] }
 0x2f8   : > { %v3451_v25 = vsel %vm3330_vm12, %v3450_v17, %v3449_v28  ;;  %v4047_v62 = vadd.s32 536870912, %v4046_v16  ;;  %vm3478_vm13 = vcmp.eq.s32.totalorder %v3473_v48, 2  ;;  %vm3474_vm11 = vcmp.lt.s32.totalorder %v3473_v48, 2 }
 0x2f9   : > { %v3454_v46 = vsel %vm10500_vm7, %v10139_v3, %v3451_v25  ;;  %vm3475_vm8 = vcmp.eq.s32.totalorder %v3473_v48, 0 }
 0x2fa   : > { %v3456_v57 = vmul.f32 %v3454_v46, %v3454_v46  ;;  %v4048_v38 = vshrl.u32 %v4047_v62, 30 }
 0x2fc   : > { %v3457_v39 = vmul.f32 -0.001358992, %v3456_v57  ;;  %v3464_v30 = vmul.f32 -0.00019511016, %v3456_v57  ;;  %v4049_v45 = vshll.u32 %v4048_v38, 30 }
 0x2fd   : > { %v10526_v1 = vld.sshfl [vmem:[#allocation1 + $0x20] sm:$0xff pattern:$0x75316420]  ;;  %v10528_v15 = vld.sshfl [vmem:[#allocation1 + $0x28] sm:$0xff pattern:$0x75316420] }
 0x2fe   : > { %v3458_v26 = vadd.f32 0.041655596, %v3457_v39  ;;  %v3465_v47 = vadd.f32 0.008332121, %v3464_v30  ;;  %v4050_v22 = vsub.s32 %v4046_v16, %v4049_v45  ;;  %5883 = vst [vmem:[#allocation1 + $0x21] ss:$2 sm:$0xff] %v2700_v13 }
 0x300   : > { %v3459_v8 = vmul.f32 %v3458_v26, %v3456_v57  ;;  %v3466_v34 = vmul.f32 %v3465_v47, %v3456_v57  ;;  %vm4051_vm6 = vcmp.lt.s32.totalorder %v4050_v22, 0  ;;  %v4052_v32 = vsub.s32 0, %v4050_v22 }
 0x302   : > { %v3460_v40 = vadd.f32 -0.4999988, %v3459_v8  ;;  %v3467_v18 = vadd.f32 -0.16666654, %v3466_v34  ;;  %v4053_v0 = vsel %vm4051_vm6, %v4052_v32, %v4050_v22 }
 0x303   : > { %v4054_v59 = vclz %v4053_v0 }
 0x304   : > { %v3461_v61 = vmul.f32 %v3460_v40, %v3456_v57  ;;  %v3468_v21 = vmul.f32 %v3467_v18, %v3456_v57  ;;  %v4072_v57 = vsub.s32 4, %v4048_v38 }
 0x305   : > { %v7192_v63 = vadd.s32 4294967294, %v4054_v59  ;;  %v10542_v28 = vld.sshfl [vmem:[#allocation1 + $0x20] sm:$0xff pattern:$0x75316420] }
 0x306   : > { %v10530_v31 = vadd.f32 1.0, %v3461_v61  ;;  %v3469_v19 = vadd.f32 1.0, %v3468_v21  ;;  %v10547_v17 = vld.sshfl [vmem:[#allocation1 + $0x28] sm:$0xff pattern:$0x75316420]  ;;  %v4073_v30 = vsel %vm3950_vm2, %v4072_v57, %v4048_v38 }
 0x307   : > { %vm7193_vm0 = vcmp.lt.s32.totalorder %v7192_v63, 0  ;;  %v4075_v47 = vsel %vm3949_vm1, 0, %v4073_v30  ;;  %v11083_v30 = vld [vmem:[#allocation14_spill] sm:$0xff] }
 0x308   : > { %v10532_v54 = vmul.f32 %v3469_v19, %v3454_v46  ;;  %v3479_v14 = vxor.u32 2147483648, %v10530_v31  ;;  %v4057_v35 = vsel %vm7193_vm0, 0, %v7192_v63  ;;  %v4092_v34 = vadd.s32 3, %v4075_v47 }
 0x309   : > { %v4058_v37 = vsub.s32 32, %v4057_v35  ;;  %v4059_v52 = vshll.u32 %v4050_v22, %v4057_v35  ;;  %v4062_v41 = vsub.s32 4294967266, %v4057_v35  ;;  %v4865_v19 = vand.u32 3, %v10521_v55 }
 0x30a   : > { %v3476_v42 = vxor.u32 2147483648, %v10532_v54  ;;  %v3480_v6 = vsel %vm3478_vm13, %v3479_v14, %v10532_v54  ;;  %v4093_v32 = vand.u32 3, %v4092_v34 }
 0x30b   : > { %v4060_v44 = vshrl.u32 %v4042_v58, %v4058_v37  ;;  %v4063_v56 = vadd.s32 127, %v4062_v41  ;;  %vm4867_vm14 = vcmp.eq.s32.totalorder %v4865_v19, 0  ;;  %vm4870_vm3 = vcmp.eq.s32.totalorder %v4865_v19, 2 }
 0x30c   : > { %v3477_v49 = vsel %vm3475_vm8, %v10530_v31, %v3476_v42  ;;  %vm4098_vm12 = vcmp.eq.s32.totalorder %v4093_v32, 2  ;;  %vm4095_vm15 = vcmp.eq.s32.totalorder %v4093_v32, 0  ;;  %vm4094_vm7 = vcmp.lt.s32.totalorder %v4093_v32, 2 }
 0x30d   : > { %v3481_v51 = vsel %vm3474_vm11, %v3477_v49, %v3480_v6  ;;  %v4061_v4 = vor.u32 %v4060_v44, %v4059_v52  ;;  %v4064_v29 = vshll.u32 %v4063_v56, 23  ;;  %v6182_v52 = vld [vmem:[%s10965_s2 + $0x8] sm:$0xff]  ;;  %v5481_v41 = vand.u32 3, %v4075_v47  ;;  %v6059_v56 = vld.sshfl [vmem:[#allocation1 + $0x10] sm:$0xff pattern:$0x75316420] }
 0x30e   : > { %v3482_v25 = vsel %vm3471_vm5, nan, %v3481_v51  ;;  %6192 = vperm.xlu1 %7361, %v6182_v52   ;;  %vm4866_vm6 = vcmp.lt.s32.totalorder %v4865_v19, 2  ;;  %v4872_v44 = vsel %vm4870_vm3, %v3479_v14, %v10532_v54  ;;  %v6183_v54 = vld [vmem:[%s10965_s2 + $0x10] sm:$0xff]  ;;  %v11081_v14 = vld [vmem:[#allocation10_spill] sm:$0xff] }
 0x30f   : > { %5927 = vst [vmem:[#allocation1 + $0x20] ss:$2 sm:$0xff] %v3482_v25  ;;  %v4065_v46 = vor.u32 4788187, %v4064_v29  ;;  %v4068_v16 = vcvt.s32.f32 %v4061_v4  ;;  %v4869_v25 = vsel %vm4867_vm14, %v10530_v31, %v3476_v42  ;;  %v6133_v4 = vsel %vm6086_vm4, %v6059_v56, 0.0  ;;  %v11085_v47 = vld [vmem:[#allocation11_spill] sm:$0xff]  ;;  %6197 = vperm.xlu0 %7360, %v6183_v54  }
 0x310   : > { %v6060_v29 = vld.sshfl [vmem:[#allocation1 + $0x18] sm:$0xff pattern:$0x75316420]  ;;  %vm5483_vm13 = vcmp.eq.s32.totalorder %v5481_v41, 0  ;;  %vm5486_vm11 = vcmp.eq.s32.totalorder %v5481_v41, 2  ;;  %vm5482_vm8 = vcmp.lt.s32.totalorder %v5481_v41, 2  ;;  %v6091_v41 = vsel %vm6086_vm4, %v10482_v12, %v10526_v1 }
 0x311   : > { %v4066_v9 = vand.u32 2147483647, %v4065_v46  ;;  %v6173_v46 = vpack.c.bf16 %v6133_v4, %v6133_v4  ;;  %v11090_v4 = vld [vmem:[#allocation35_spill] sm:$0xff]  ;;  %v6092_v12 = vsel %vm6086_vm4, %v10488_v11, %v10528_v15 }
 0x313   : > { %v4069_v10 = vmul.f32 %v4068_v16, %v4066_v9  ;;  %v6134_v16 = vsel %vm6086_vm4, %v6060_v29, 0.0  ;;  %v4873_v9 = vsel %vm4866_vm6, %v4869_v25, %v4872_v44  ;;  %v6253_v57 = vsel %vm6086_vm4, %v6173_v46, 0  ;;  %v11091_v29 = vld [vmem:[#allocation33_spill] sm:$0xff] }
 0x314   : > { %6472 = vmatpush.bf16.msra.mxu2 %v6253_v57  ;;  %v4874_v31 = vsel %vm3471_vm5, nan, %v4873_v9  ;;  %v6101_v46 = vsel %vm6086_vm4, %v11091_v29, %v11090_v4  ;;  %v11093_v9 = vld [vmem:[#allocation34_spill] sm:$0xff]  ;;  %v6120_v57 = vsel %vm6086_vm4, %v10108_v7, %v10178_v20 }
 0x315   : > { %v4070_v62 = vxor.u32 2147483648, %v4069_v10 }
 0x316   : > { %v10560_v35 = vld.sshfl [vmem:[#allocation1 + $0x20] sm:$0xff pattern:$0x75316420]  ;;  %v10562_v37 = vld.sshfl [vmem:[#allocation1 + $0x28] sm:$0xff pattern:$0x75316420] }
 0x317   : > { %v4071_v39 = vsel %vm3950_vm2, %v4070_v62, %v4069_v10  ;;  %v6174_v10 = vpack.c.bf16 %v6134_v16, %v6134_v16  ;;  %v11082_v62 = vld [vmem:[#allocation8_spill] sm:$0xff]  ;;  %6202 = vperm.xlu0 %7360, %v6184_v33   ;;  %v6119_v16 = vsel %vm6086_vm4, %v10106_v60, %v10176_v27  ;;  %v11101_v33 = vld [vmem:[#allocation26_spill] sm:$0xff] }
 0x318   : > { %v4074_v53 = vsel %vm3949_vm1, %v10207_v24, %v4071_v39  ;;  %v6097_v39 = vsel %vm6086_vm4, %v11082_v62, %v11081_v14  ;;  %v6064_v24 = vld.sshfl [vmem:[#allocation1 + $0x38] sm:$0xff pattern:$0x75316420]  ;;  %v6159_v14 = vpack.c.bf16 %v6119_v16, %v6101_v46 }
 0x319   : > { %v4076_v26 = vmul.f32 %v4074_v53, %v4074_v53  ;;  %v6256_v42 = vsel %vm6086_vm4, %v6174_v10, 0 }
 0x31a   : > { %6491 = vmatpush.bf16.msra.mxu3 %v6256_v42 }
 0x31b   : > { %v4077_v50 = vmul.f32 -0.001358992, %v4076_v26  ;;  %v4084_v45 = vmul.f32 -0.00019511016, %v4076_v26 }
 0x31d   : > { %v4078_v13 = vadd.f32 0.041655596, %v4077_v50  ;;  %v4085_v8 = vadd.f32 0.008332121, %v4084_v45  ;;  %v11086_v50 = vld [vmem:[#allocation9_spill] sm:$0xff] }
 0x31e   : > { %v6098_v45 = vsel %vm6086_vm4, %v11086_v50, %v11085_v47  ;;  %v11094_v50 = vld [vmem:[#allocation21_spill] sm:$0xff] }
 0x31f   : > { %v4079_v22 = vmul.f32 %v4078_v13, %v4076_v26  ;;  %v4086_v40 = vmul.f32 %v4085_v8, %v4076_v26  ;;  %v11087_v13 = vld [vmem:[#allocation15_spill] sm:$0xff]  ;;  %v11088_v8 = vld [vmem:[#allocation13_spill] sm:$0xff] }
 0x320   : > { %v6116_v34 = vsel %vm6086_vm4, %v11088_v8, %v11087_v13  ;;  %v11096_v13 = vld [vmem:[#allocation29_spill] sm:$0xff] }
 0x321   : > { %v4080_v18 = vadd.f32 -0.4999988, %v4079_v22  ;;  %v4087_v48 = vadd.f32 -0.16666654, %v4086_v40  ;;  %v6156_v32 = vpack.c.bf16 %v6116_v34, %v6098_v45  ;;  %v11095_v45 = vld [vmem:[#allocation17_spill] sm:$0xff] }
 0x322   : > { %v11097_v8 = vld [vmem:[#allocation25_spill] sm:$0xff] }
 0x323   : > { %v4081_v61 = vmul.f32 %v4080_v18, %v4076_v26  ;;  %v4088_v21 = vmul.f32 %v4087_v48, %v4076_v26  ;;  %6492 = vmatpush.bf16.msra.mxu3 %v6156_v32  ;;  %v6113_v34 = vsel %vm6086_vm4, %v11097_v8, %v11096_v13 }
 0x325   : > { %v4082_v38 = vadd.f32 1.0, %v4081_v61  ;;  %v4089_v0 = vadd.f32 1.0, %v4088_v21  ;;  %v10603_v21 = vld [vmem:[%s10964_s1] sm:$0xff] }
 0x326   : > { %7257 = vmatmul.msk.bf16.vlgmr.msra.gmra.mxu3 %vm6215_vm10, %v10603_v21 }
 0x327   : > { %v4090_v59 = vmul.f32 %v4089_v0, %v4074_v53  ;;  %v4099_v63 = vxor.u32 2147483648, %v4082_v38  ;;  %v11084_v53 = vld [vmem:[#allocation12_spill] sm:$0xff]  ;;  %v6058_v0 = vld.sshfl [vmem:[#allocation1 + $0x8] sm:$0xff pattern:$0x75316420] }
 0x328   : > { %v6115_v26 = vsel %vm6086_vm4, %v11084_v53, %v11083_v30 }
 0x329   : > { %v4096_v6 = vxor.u32 2147483648, %v4090_v59  ;;  %v4100_v58 = vsel %vm4098_vm12, %v4099_v63, %v4090_v59  ;;  %v6155_v3 = vpack.c.bf16 %v6115_v26, %v6097_v39  ;;  %v5488_v40 = vsel %vm5486_vm11, %v4099_v63, %v4090_v59  ;;  %v11089_v59 = vld [vmem:[#allocation16_spill] sm:$0xff] }
 0x32b   : > { %v4097_v49 = vsel %vm4095_vm15, %v4082_v38, %v4096_v6  ;;  %v5485_v22 = vsel %vm5483_vm13, %v4082_v38, %v4096_v6  ;;  %6473 = vmatpush.bf16.msra.mxu2 %v6155_v3  ;;  %v6057_v38 = vld.sshfl [vmem:[#allocation1] sm:$0xff pattern:$0x75316420]  ;;  %v6095_v3 = vsel %vm6086_vm4, %v11095_v45, %v11094_v50 }
 0x32c   : > { %v4101_v55 = vsel %vm4094_vm7, %v4097_v49, %v4100_v58  ;;  %v5489_v61 = vsel %vm5482_vm8, %v5485_v22, %v5488_v40  ;;  %6065 = vst [vmem:[#allocation1] ss:$2 sm:$0xff] %v11089_v59  ;;  %v6131_v52 = vsel %vm6086_vm4, %v6057_v38, 0.0  ;;  %v11098_v22 = vld [vmem:[#allocation22_spill] sm:$0xff] }
 0x32d   : > { %v4102_v51 = vsel %vm4091_vm9, nan, %v4101_v55  ;;  %v5490_v19 = vsel %vm4091_vm9, nan, %v5489_v61  ;;  %v6063_v55 = vld.sshfl [vmem:[#allocation1 + $0x30] sm:$0xff pattern:$0x75316420]  ;;  %v6171_v1 = vpack.c.bf16 %v6131_v52, %v6131_v52  ;;  %v11099_v40 = vld [vmem:[#allocation18_spill] sm:$0xff] }
 0x32e   : > { %5940 = vst [vmem:[#allocation1 + $0x20] ss:$2 sm:$0xff] %v4102_v51  ;;  %7255 = vmatmul.msk.bf16.vlgmr.msra.gmra.mxu2 %vm6215_vm10, %v10603_v21  ;;  %v6132_v51 = vsel %vm6086_vm4, %v6058_v0, 0.0  ;;  %v6137_v25 = vsel %vm6086_vm4, %v6063_v55, 0.0  ;;  %v6096_v32 = vsel %vm6086_vm4, %v11099_v40, %v11098_v22  ;;  %v11100_v61 = vld [vmem:[#allocation30_spill] sm:$0xff]  ;;  %v6153_v0 = vpack.c.bf16 %v6113_v34, %v6095_v3 }
 0x32f   : > { %v6177_v44 = vpack.c.bf16 %v6137_v25, %v6137_v25  ;;  %v6172_v27 = vpack.c.bf16 %v6132_v51, %v6132_v51  ;;  %v6247_v47 = vsel %vm6086_vm4, %v6171_v1, 0  ;;  %v6114_v38 = vsel %vm6086_vm4, %v11101_v33, %v11100_v61  ;;  %v10686_v25 = vld [vmem:[%s10964_s1 + $0x8] sm:$0xff] }
 0x331   : > { %v6265_v62 = vsel %vm6086_vm4, %v6177_v44, 0 }
 0x332   : > { %6548 = vmatpush.bf16.msrb.mxu2 %v6265_v62 }
 0x335   : > { %v10596_v18 = vld.sshfl [vmem:[#allocation1 + $0x20] sm:$0xff pattern:$0x75316420]  ;;  %v10598_v48 = vld.sshfl [vmem:[#allocation1 + $0x28] sm:$0xff pattern:$0x75316420] }
 0x336   : > { %5985 = vst [vmem:[#allocation1 + $0x21] ss:$2 sm:$0xff] %v4874_v31  ;;  %7258 = vmatmul.msk.bf16.gmra.mxu3 %vm6215_vm10, %v10198_v43  ;;  %6549 = vmatpush.bf16.msrb.mxu2 %v6159_v14  ;;  %v11106_v14 = vld [vmem:[#allocation24_spill] sm:$0xff] }
 0x33d   : > { %v5992_v63 = vld.sshfl [vmem:[#allocation1 + $0x20] sm:$0xff pattern:$0x75316420]  ;;  %v5993_v6 = vld.sshfl [vmem:[#allocation1 + $0x28] sm:$0xff pattern:$0x75316420] }
 0x33e   : > { %5998 = vst [vmem:[#allocation1 + $0x21] ss:$2 sm:$0xff] %v5490_v19  ;;  %7256 = vmatmul.msk.bf16.gmra.mxu2 %vm6215_vm10, %v10198_v43  ;;  %v11092_v43 = vld [vmem:[#allocation36_spill] sm:$0xff]  ;;  %v6109_v54 = vsel %vm6086_vm4, %v10560_v35, %v5992_v63  ;;  %v6110_v60 = vsel %vm6086_vm4, %v10562_v37, %v5993_v6  ;;  %v6154_v19 = vpack.c.bf16 %v6114_v38, %v6096_v32 }
 0x33f   : > { %v6102_v10 = vsel %vm6086_vm4, %v11093_v9, %v11092_v43  ;;  %v6149_v53 = vpack.c.bf16 %v6109_v54, %v6091_v41  ;;  %v6150_v26 = vpack.c.bf16 %v6110_v60, %v6092_v12  ;;  %v11104_v54 = vld [vmem:[#allocation31_spill] sm:$0xff] }
 0x340   : > { %v6160_v35 = vpack.c.bf16 %v6120_v57, %v6102_v10  ;;  %v11102_v57 = vld [vmem:[#allocation23_spill] sm:$0xff] }
 0x341   : > { %v11105_v60 = vld [vmem:[#allocation27_spill] sm:$0xff] }
 0x345   : > { %v10615_v58 = vld.sshfl [vmem:[#allocation1 + $0x20] sm:$0xff pattern:$0x75316420]  ;;  %v10617_v49 = vld.sshfl [vmem:[#allocation1 + $0x28] sm:$0xff pattern:$0x75316420] }
 0x346   : > { %6042 = vst [vmem:[#allocation1 + $0x20] ss:$2 sm:$0xff] %v9755_v36  ;;  %v6138_v36 = vsel %vm6086_vm4, %v6064_v24, 0.0  ;;  %v6117_v44 = vsel %vm6086_vm4, %v10596_v18, %v10615_v58  ;;  %v6118_v29 = vsel %vm6086_vm4, %v10598_v48, %v10617_v49  ;;  %v6067_v18 = vld.sshfl [vmem:[#allocation1 + $0x8] sm:$0xff pattern:$0x75316420] }
 0x347   : > { %v6178_v56 = vpack.c.bf16 %v6138_v36, %v6138_v36  ;;  %v6099_v36 = vsel %vm6086_vm4, %v10508_v23, %v10542_v28  ;;  %v10714_v28 = vpop.f32.mrf.mxu3  ;;  %v6140_v46 = vsel %vm6086_vm4, %v6067_v18, 0.0 }
 0x348   : > { %v6157_v4 = vpack.c.bf16 %v6117_v44, %v6099_v36  ;;  %v6180_v49 = vpack.c.bf16 %v6140_v46, %v6140_v46 }
 0x349   : > { %v6268_v7 = vsel %vm6086_vm4, %v6178_v56, 0  ;;  %v6100_v56 = vsel %vm6086_vm4, %v10510_v2, %v10547_v17  ;;  %v10712_v2 = vpop.f32.mrf.mxu2  ;;  %v6066_v17 = vld.sshfl [vmem:[#allocation1] sm:$0xff pattern:$0x75316420] }
 0x34a   : > { %6567 = vmatpush.bf16.msrb.mxu3 %v6268_v7  ;;  %v6158_v23 = vpack.c.bf16 %v6118_v29, %v6100_v56  ;;  %v6139_v58 = vsel %vm6086_vm4, %v6066_v17, 0.0  ;;  %v6274_v12 = vsel %vm6086_vm4, %v6180_v49, 0  ;;  %v11108_v7 = vld [vmem:[#allocation32_spill] sm:$0xff] }
 0x34b   : > { %v6179_v48 = vpack.c.bf16 %v6139_v58, %v6139_v58 }
 0x34d   : > { %v6049_v42 = vld.sshfl [vmem:[#allocation1 + $0x20] sm:$0xff pattern:$0x75316420]  ;;  %v6050_v31 = vld.sshfl [vmem:[#allocation1 + $0x28] sm:$0xff pattern:$0x75316420] }
 0x34e   : > { %v6127_v11 = vsel %vm6086_vm4, %v6049_v42, 0.0  ;;  %v6128_v15 = vsel %vm6086_vm4, %v6050_v31, 0.0  ;;  %6055 = vst [vmem:[#allocation1 + $0x20] ss:$2 sm:$0xff] %v9929_v5  ;;  %v6250_v5 = vsel %vm6086_vm4, %v6172_v27, 0  ;;  %6568 = vmatpush.bf16.msrb.mxu3 %v6160_v35  ;;  %7263 = vmatmul.msk.bf16.vlgmr.msrb.gmra.mxu2 %vm6215_vm10, %v10603_v21  ;;  %v6271_v16 = vsel %vm6086_vm4, %v6179_v48, 0 }
 0x34f   : > { %v6167_v20 = vpack.c.bf16 %v6127_v11, %v6127_v11  ;;  %v6168_v39 = vpack.c.bf16 %v6128_v15, %v6128_v15  ;;  %v10720_v43 = vpop.f32.mrf.mxu3  ;;  %v11103_v42 = vld [vmem:[#allocation19_spill] sm:$0xff]  ;;  %v6121_v27 = vsel %vm6086_vm4, %v11105_v60, %v11104_v54  ;;  %v11107_v11 = vld [vmem:[#allocation20_spill] sm:$0xff] }
 0x350   : > { %v6103_v31 = vsel %vm6086_vm4, %v11103_v42, %v11102_v57  ;;  %v6104_v15 = vsel %vm6086_vm4, %v11107_v11, %v11106_v14 }
 0x351   : > { %v6235_v30 = vsel %vm6086_vm4, %v6167_v20, 0  ;;  %v6238_v37 = vsel %vm6086_vm4, %v6168_v39, 0  ;;  %7265 = vmatmul.msk.bf16.vlgmr.msrb.gmra.mxu3 %vm6215_vm10, %v10603_v21  ;;  %v6325_v1 = vpop.f32.mrf.mxu2  ;;  %v6161_v62 = vpack.c.bf16 %v6121_v27, %v6103_v31  ;;  %v11109_v20 = vld [vmem:[#allocation28_spill] sm:$0xff] }
 0x352   : > { %6358 = vmatpush.bf16.msrb.mxu0 %v6235_v30  ;;  %6377 = vmatpush.bf16.msrb.mxu1 %v6238_v37  ;;  %v6122_v39 = vsel %vm6086_vm4, %v11109_v20, %v11108_v7  ;;  %v6285_v30 = vpop.f32.mrf.mxu0  ;;  %v6304_v37 = vpop.f32.mrf.mxu1 }
 0x353   : > { %v6162_v35 = vpack.c.bf16 %v6122_v39, %v6104_v15 }
 0x355   : > { %v6061_v59 = vld.sshfl [vmem:[#allocation1 + $0x20] sm:$0xff pattern:$0x75316420]  ;;  %v6062_v63 = vld.sshfl [vmem:[#allocation1 + $0x28] sm:$0xff pattern:$0x75316420] }
 0x356   : > { %6359 = vmatpush.bf16.msrb.mxu0 %v6149_v53  ;;  %6378 = vmatpush.bf16.msrb.mxu1 %v6150_v26  ;;  %v6135_v6 = vsel %vm6086_vm4, %v6061_v59, 0.0  ;;  %v6136_v52 = vsel %vm6086_vm4, %v6062_v63, 0.0 }
 0x357   : > { %v6175_v55 = vpack.c.bf16 %v6135_v6, %v6135_v6  ;;  %v6176_v24 = vpack.c.bf16 %v6136_v52, %v6136_v52  ;;  %v6347_v10 = vpop.f32.mrf.mxu3 }
 0x359   : > { %7243 = vmatmul.msk.bf16.vlgmr.msrb.gmra.mxu0 %vm6215_vm10, %v10603_v21  ;;  %7245 = vmatmul.msk.bf16.vlgmr.msrb.gmra.mxu1 %vm6215_vm10, %v10603_v21  ;;  %v6259_v41 = vsel %vm6086_vm4, %v6175_v55, 0  ;;  %v6262_v51 = vsel %vm6086_vm4, %v6176_v24, 0  ;;  %v6328_v9 = vpop.f32.mrf.mxu2  ;;  %vm6733_vm4 = vcmask 261120  }
 0x35a   : > { %6434 = vmatpush.bf16.msra.mxu0 %v6247_v47  ;;  %6453 = vmatpush.bf16.msra.mxu1 %v6250_v5  ;;  %v6287_v50 = vpop.f32.mrf.mxu0  ;;  %v6306_v45 = vpop.f32.mrf.mxu1 }
 0x35e   : > { %6435 = vmatpush.bf16.msra.mxu0 %v6153_v0  ;;  %6454 = vmatpush.bf16.msra.mxu1 %v6154_v19 }
 0x35f   : > { %7264 = vmatmul.msk.bf16.gmra.mxu2 %vm6215_vm10, %v10686_v25  ;;  %v6349_v26 = vpop.f32.mrf.mxu3 }
 0x361   : > { %7266 = vmatmul.msk.bf16.gmra.mxu3 %vm6215_vm10, %v10686_v25  ;;  %v6330_v53 = vpop.f32.mrf.mxu2 }
 0x362   : > { %6510 = vmatpush.bf16.msrb.mxu0 %v6259_v41  ;;  %6529 = vmatpush.bf16.msrb.mxu1 %v6262_v51  ;;  %v6290_v34 = vpop.f32.mrf.mxu0  ;;  %v6309_v22 = vpop.f32.mrf.mxu1 }
 0x366   : > { %6511 = vmatpush.bf16.msrb.mxu0 %v6157_v4  ;;  %6530 = vmatpush.bf16.msrb.mxu1 %v6158_v23 }
 0x367   : > { %v10744_v5 = vpop.f32.mrf.mxu3 }
 0x368   : > { %v10746_v3 = vpop.permute.xlu1 %6187 }
 0x369   : > { %7244 = vmatmul.msk.bf16.gmra.mxu0 %vm6215_vm10, %v10686_v25  ;;  %7246 = vmatmul.msk.bf16.gmra.mxu1 %vm6215_vm10, %v10686_v25  ;;  %v10742_v47 = vpop.f32.mrf.mxu2  ;;  %v6286_v56 = vadd.f32 %v6285_v30, %v10746_v3  ;;  %v6305_v4 = vadd.f32 %v6304_v37, %v10746_v3  ;;  %v6324_v48 = vadd.f32 %v10712_v2, %v10746_v3 }
 0x36a   : > { %v6292_v38 = vpop.f32.mrf.mxu0  ;;  %v6311_v0 = vpop.f32.mrf.mxu1  ;;  %v6343_v57 = vadd.f32 %v10714_v28, %v10746_v3 }
 0x36b   : > { %v6618_v60 = vmax.f32 %v6286_v56, 0.0  ;;  %v6619_v2 = vmax.f32 %v6305_v4, 0.0  ;;  %v6620_v7 = vmax.f32 %v6324_v48, 0.0 }
 0x36c   : > { %v6621_v20 = vmax.f32 %v6343_v57, 0.0 }
 0x36f   : > { %v10750_v8 = vpop.f32.mrf.mxu3 }
 0x371   : > { %v10748_v13 = vpop.f32.mrf.mxu2 }
 0x377   : > { %v6423_v61 = vpop.f32.mrf.mxu3 }
 0x379   : > { %7251 = vmatmul.msk.bf16.vlgmr.msra.gmra.mxu0 %vm6215_vm10, %v10603_v21  ;;  %7253 = vmatmul.msk.bf16.vlgmr.msra.gmra.mxu1 %vm6215_vm10, %v10603_v21  ;;  %v6404_v32 = vpop.f32.mrf.mxu2 }
 0x37a   : > { %6586 = vmatpush.bf16.msra.mxu0 %v6271_v16  ;;  %6605 = vmatpush.bf16.msra.mxu1 %v6274_v12 }
 0x37e   : > { %6587 = vmatpush.bf16.msra.mxu0 %v6161_v62  ;;  %6606 = vmatpush.bf16.msra.mxu1 %v6162_v35 }
 0x37f   : > { %v6425_v46 = vpop.f32.mrf.mxu3 }
 0x380   : > { %v10758_v33 = vpop.permute.xlu1 %6192 }
 0x381   : > { %v10752_v40 = vpop.permute.xlu0 %6197  ;;  %v6288_v63 = vadd.f32 %v6287_v50, %v10758_v33  ;;  %v6307_v52 = vadd.f32 %v6306_v45, %v10758_v33  ;;  %v6406_v23 = vpop.f32.mrf.mxu2  ;;  %v6326_v12 = vadd.f32 %v6325_v1, %v10758_v33  ;;  %v6345_v54 = vadd.f32 %v10720_v43, %v10758_v33 }
 0x382   : > { %v6291_v19 = vadd.f32 %v6290_v34, %v10752_v40  ;;  %v6310_v59 = vadd.f32 %v6309_v22, %v10752_v40  ;;  %v6329_v49 = vadd.f32 %v6328_v9, %v10752_v40  ;;  %v6348_v42 = vadd.f32 %v6347_v10, %v10752_v40 }
 0x383   : > { %v6636_v29 = vmax.f32 %v6288_v63, 0.0  ;;  %v6637_v17 = vmax.f32 %v6307_v52, 0.0  ;;  %v6638_v10 = vmax.f32 %v6326_v12, 0.0  ;;  %v6639_v43 = vmax.f32 %v6345_v54, 0.0 }
 0x384   : > { %v6654_v41 = vmax.f32 %v6291_v19, 0.0  ;;  %v6655_v51 = vmax.f32 %v6310_v59, 0.0  ;;  %v6656_v27 = vmax.f32 %v6329_v49, 0.0  ;;  %v6657_v14 = vmax.f32 %v6348_v42, 0.0 }
 0x385   : > { %v6692_v15 = vpack.c.bf16 %v6636_v29, %v6618_v60  ;;  %v6693_v1 = vpack.c.bf16 %v6637_v17, %v6619_v2  ;;  %v6694_v30 = vpack.c.bf16 %v6638_v10, %v6620_v7  ;;  %v6695_v37 = vpack.c.bf16 %v6639_v43, %v6621_v20 }
 0x386   : > { %v6400_v45 = vadd.f32 %v10742_v47, %v10746_v3  ;;  %v6419_v34 = vadd.f32 %v10744_v5, %v10746_v3  ;;  %v6402_v22 = vadd.f32 %v10748_v13, %v10758_v33  ;;  %v10804_v5 = vld [vmem:[%s10966_s3] sm:$0xff] }
 0x388   : > { %v6624_v52 = vmax.f32 %v6400_v45, 0.0 }
 0x389   : > { %7252 = vmatmul.msk.bf16.gmra.mxu0 %vm6215_vm10, %v10686_v25  ;;  %7254 = vmatmul.msk.bf16.gmra.mxu1 %vm6215_vm10, %v10686_v25  ;;  %v10763_v6 = vpop.permute.xlu0 %6202 }
 0x38a   : > { %v6293_v55 = vadd.f32 %v6292_v38, %v10763_v6  ;;  %v6312_v24 = vadd.f32 %v6311_v0, %v10763_v6  ;;  %v6331_v16 = vadd.f32 %v6330_v53, %v10763_v6  ;;  %v6350_v31 = vadd.f32 %v6349_v26, %v10763_v6 }
 0x38b   : > { %v6405_v53 = vadd.f32 %v6404_v32, %v10752_v40  ;;  %v6424_v26 = vadd.f32 %v6423_v61, %v10752_v40  ;;  %v6426_v50 = vadd.f32 %v6425_v46, %v10763_v6  ;;  %v6421_v38 = vadd.f32 %v10750_v8, %v10758_v33 }
 0x38c   : > { %v6672_v36 = vmax.f32 %v6293_v55, 0.0  ;;  %v6673_v44 = vmax.f32 %v6312_v24, 0.0  ;;  %v6674_v9 = vmax.f32 %v6331_v16, 0.0  ;;  %v6675_v11 = vmax.f32 %v6350_v31, 0.0 }
 0x38d   : > { %v6660_v0 = vmax.f32 %v6405_v53, 0.0  ;;  %v6661_v32 = vmax.f32 %v6424_v26, 0.0  ;;  %v6679_v61 = vmax.f32 %v6426_v50, 0.0  ;;  %v6625_v55 = vmax.f32 %v6419_v34, 0.0 }
 0x38e   : > { %v6710_v18 = vpack.c.bf16 %v6672_v36, %v6654_v41  ;;  %v6711_v58 = vpack.c.bf16 %v6673_v44, %v6655_v51  ;;  %v6712_v62 = vpack.c.bf16 %v6674_v9, %v6656_v27  ;;  %v6713_v28 = vpack.c.bf16 %v6675_v11, %v6657_v14 }
 0x38f   : > { %v6642_v24 = vmax.f32 %v6402_v22, 0.0  ;;  %v6643_v41 = vmax.f32 %v6421_v38, 0.0  ;;  %v6717_v51 = vpack.c.bf16 %v6679_v61, %v6661_v32 }
 0x390   : > { %6743 = vmatpush.bf16.msra.mxu2 %v6710_v18  ;;  %6757 = vmatpush.bf16.msra.mxu3 %v6711_v58 }
 0x391   : > { %v6698_v13 = vpack.c.bf16 %v6642_v24, %v6624_v52  ;;  %v6699_v8 = vpack.c.bf16 %v6643_v41, %v6625_v55 }
 0x394   : > { %6744 = vmatpush.bf16.msra.mxu2 %v6692_v15  ;;  %6758 = vmatpush.bf16.msra.mxu3 %v6693_v1 }
 0x397   : > { %7275 = vmatmul.msk.bf16.vlgmr.msra.gmra.mxu2 %vm6733_vm4, %v10804_v5  ;;  %7276 = vmatmul.msk.bf16.vlgmr.msra.gmra.mxu3 %vm6733_vm4, %v10804_v5 }
 0x398   : > { %6771 = vmatpush.bf16.msrb.mxu2 %v6712_v62  ;;  %6785 = vmatpush.bf16.msrb.mxu3 %v6713_v28 }
 0x399   : > { %7259 = vmatmul.msk.bf16.vlgmr.msrb.gmra.mxu0 %vm6215_vm10, %v10603_v21  ;;  %7261 = vmatmul.msk.bf16.vlgmr.msrb.gmra.mxu1 %vm6215_vm10, %v10603_v21 }
 0x39c   : > { %6772 = vmatpush.bf16.msrb.mxu2 %v6694_v30  ;;  %6786 = vmatpush.bf16.msrb.mxu3 %v6695_v37 }
 0x3a0   : > { %6841 = vmatpush.bf16.msra.mxu3 %v6717_v51 }
 0x3a4   : > { %6842 = vmatpush.bf16.msra.mxu3 %v6699_v8 }
 0x3a7   : > { %7277 = vmatmul.msk.bf16.vlgmr.msrb.gmra.mxu2 %vm6733_vm4, %v10804_v5  ;;  %7278 = vmatmul.msk.bf16.vlgmr.msrb.gmra.mxu3 %vm6733_vm4, %v10804_v5 }
 0x3a9   : > { %7260 = vmatmul.msk.bf16.gmra.mxu0 %vm6215_vm10, %v10686_v25  ;;  %7262 = vmatmul.msk.bf16.gmra.mxu1 %vm6215_vm10, %v10686_v25  ;;  %v6494_v35 = vpop.f32.mrf.mxu3 }
 0x3aa   : > { %v6495_v29 = vadd.f32 %v6494_v35, %v10746_v3 }
 0x3ac   : > { %v6629_v54 = vmax.f32 %v6495_v29, 0.0 }
 0x3b1   : > { %v6475_v39 = vpop.f32.mrf.mxu2  ;;  %v6496_v63 = vpop.f32.mrf.mxu3 }
 0x3b2   : > { %v6476_v4 = vadd.f32 %v6475_v39, %v10746_v3  ;;  %v6497_v17 = vadd.f32 %v6496_v63, %v10758_v33 }
 0x3b4   : > { %v6628_v42 = vmax.f32 %v6476_v4, 0.0  ;;  %v6647_v2 = vmax.f32 %v6497_v17, 0.0 }
 0x3b6   : > { %v6703_v15 = vpack.c.bf16 %v6647_v2, %v6629_v54 }
 0x3b7   : > { %7282 = vmatmul.msk.bf16.vlgmr.msra.gmra.mxu3 %vm6733_vm4, %v10804_v5 }
 0x3b9   : > { %7267 = vmatmul.msk.bf16.vlgmr.msra.gmra.mxu0 %vm6215_vm10, %v10603_v21  ;;  %7269 = vmatmul.msk.bf16.vlgmr.msra.gmra.mxu1 %vm6215_vm10, %v10603_v21  ;;  %v6407_v21 = vadd.f32 %v6406_v23, %v10763_v6  ;;  %v6477_v59 = vpop.f32.mrf.mxu2  ;;  %v6499_v44 = vpop.f32.mrf.mxu3 }
 0x3ba   : > { %v6500_v56 = vadd.f32 %v6499_v44, %v10752_v40  ;;  %v6478_v23 = vadd.f32 %v6477_v59, %v10758_v33 }
 0x3bb   : > { %v6678_v19 = vmax.f32 %v6407_v21, 0.0 }
 0x3bc   : > { %v6665_v12 = vmax.f32 %v6500_v56, 0.0  ;;  %v6646_v60 = vmax.f32 %v6478_v23, 0.0 }
 0x3bd   : > { %v6716_v47 = vpack.c.bf16 %v6678_v19, %v6660_v0 }
 0x3be   : > { %v6702_v11 = vpack.c.bf16 %v6646_v60, %v6628_v42 }
 0x3bf   : > { %6827 = vmatpush.bf16.msra.mxu2 %v6716_v47 }
 0x3c1   : > { %v6480_v36 = vpop.f32.mrf.mxu2  ;;  %v6501_v48 = vpop.f32.mrf.mxu3 }
 0x3c2   : > { %v6502_v57 = vadd.f32 %v6501_v48, %v10763_v6 }
 0x3c3   : > { %6828 = vmatpush.bf16.msra.mxu2 %v6698_v13 }
 0x3c4   : > { %v6683_v27 = vmax.f32 %v6502_v57, 0.0 }
 0x3c6   : > { %v6721_v14 = vpack.c.bf16 %v6683_v27, %v6665_v12  ;;  %7281 = vmatmul.msk.bf16.vlgmr.msra.gmra.mxu2 %vm6733_vm4, %v10804_v5 }
 0x3c8   : > { %6897 = vmatpush.bf16.msrb.mxu3 %v6721_v14 }
 0x3c9   : > { %7268 = vmatmul.msk.bf16.gmra.mxu0 %vm6215_vm10, %v10686_v25  ;;  %7270 = vmatmul.msk.bf16.gmra.mxu1 %vm6215_vm10, %v10686_v25  ;;  %v6481_v25 = vadd.f32 %v6480_v36, %v10752_v40  ;;  %v6482_v18 = vpop.f32.mrf.mxu2 }
 0x3ca   : > { %v6483_v46 = vadd.f32 %v6482_v18, %v10763_v6 }
 0x3cb   : > { %v6664_v58 = vmax.f32 %v6481_v25, 0.0 }
 0x3cc   : > { %v6682_v31 = vmax.f32 %v6483_v46, 0.0  ;;  %6898 = vmatpush.bf16.msrb.mxu3 %v6703_v15 }
 0x3ce   : > { %v6720_v9 = vpack.c.bf16 %v6682_v31, %v6664_v58 }
 0x3cf   : > { %7286 = vmatmul.msk.bf16.vlgmr.msrb.gmra.mxu3 %vm6733_vm4, %v10804_v5 }
 0x3d0   : > { %6883 = vmatpush.bf16.msrb.mxu2 %v6720_v9 }
 0x3d1   : > { %v6551_v1 = vpop.f32.mrf.mxu2 }
 0x3d2   : > { %v6552_v8 = vadd.f32 %v6551_v1, %v10746_v3 }
 0x3d4   : > { %v6570_v62 = vpop.f32.mrf.mxu3  ;;  %6884 = vmatpush.bf16.msrb.mxu2 %v6702_v11  ;;  %v6632_v57 = vmax.f32 %v6552_v8, 0.0 }
 0x3d5   : > { %v6571_v36 = vadd.f32 %v6570_v62, %v10746_v3 }
 0x3d6   : > { %v6361_v49 = vpop.f32.mrf.mxu0  ;;  %v6380_v16 = vpop.f32.mrf.mxu1 }
 0x3d7   : > { %v6362_v38 = vadd.f32 %v6361_v49, %v10746_v3  ;;  %v6381_v0 = vadd.f32 %v6380_v16, %v10746_v3  ;;  %v6633_v42 = vmax.f32 %v6571_v36, 0.0  ;;  %7285 = vmatmul.msk.bf16.vlgmr.msrb.gmra.mxu2 %vm6733_vm4, %v10804_v5 }
 0x3d9   : > { %v6553_v10 = vpop.f32.mrf.mxu2  ;;  %v6622_v51 = vmax.f32 %v6362_v38, 0.0  ;;  %v6623_v13 = vmax.f32 %v6381_v0, 0.0 }
 0x3da   : > { %v6554_v29 = vadd.f32 %v6553_v10, %v10758_v33 }
 0x3dc   : > { %v6572_v20 = vpop.f32.mrf.mxu3  ;;  %v6650_v31 = vmax.f32 %v6554_v29, 0.0 }
 0x3dd   : > { %v6573_v23 = vadd.f32 %v6572_v20, %v10758_v33 }
 0x3de   : > { %v6363_v7 = vpop.f32.mrf.mxu0  ;;  %v6382_v28 = vpop.f32.mrf.mxu1  ;;  %v6706_v14 = vpack.c.bf16 %v6650_v31, %v6632_v57 }
 0x3df   : > { %v6364_v50 = vadd.f32 %v6363_v7, %v10758_v33  ;;  %v6383_v45 = vadd.f32 %v6382_v28, %v10758_v33  ;;  %v6651_v54 = vmax.f32 %v6573_v23, 0.0 }
 0x3e1   : > { %v6640_v63 = vmax.f32 %v6364_v50, 0.0  ;;  %v6641_v52 = vmax.f32 %v6383_v45, 0.0  ;;  %v6707_v11 = vpack.c.bf16 %v6651_v54, %v6633_v42 }
 0x3e2   : > { %v6556_v37 = vpop.f32.mrf.mxu2 }
 0x3e3   : > { %v6557_v41 = vadd.f32 %v6556_v37, %v10752_v40  ;;  %v6696_v58 = vpack.c.bf16 %v6640_v63, %v6622_v51  ;;  %v6697_v46 = vpack.c.bf16 %v6641_v52, %v6623_v13 }
 0x3e4   : > { %v6575_v53 = vpop.f32.mrf.mxu3 }
 0x3e5   : > { %v6576_v47 = vadd.f32 %v6575_v53, %v10752_v40  ;;  %v6668_v48 = vmax.f32 %v6557_v41, 0.0 }
 0x3e6   : > { %v6366_v43 = vpop.f32.mrf.mxu0  ;;  %v6385_v39 = vpop.f32.mrf.mxu1 }
 0x3e7   : > { %v6367_v35 = vadd.f32 %v6366_v43, %v10752_v40  ;;  %v6386_v30 = vadd.f32 %v6385_v39, %v10752_v40  ;;  %v6669_v49 = vmax.f32 %v6576_v47, 0.0 }
 0x3e9   : > { %v6658_v32 = vmax.f32 %v6367_v35, 0.0  ;;  %v6659_v19 = vmax.f32 %v6386_v30, 0.0 }
 0x3ea   : > { %v6558_v44 = vpop.f32.mrf.mxu2 }
 0x3eb   : > { %v6559_v17 = vadd.f32 %v6558_v44, %v10763_v6 }
 0x3ec   : > { %v6577_v25 = vpop.f32.mrf.mxu3 }
 0x3ed   : > { %v6578_v18 = vadd.f32 %v6577_v25, %v10763_v6  ;;  %v6686_v16 = vmax.f32 %v6559_v17, 0.0 }
 0x3ee   : > { %v6368_v26 = vpop.f32.mrf.mxu0  ;;  %v6387_v21 = vpop.f32.mrf.mxu1 }
 0x3ef   : > { %v6369_v34 = vadd.f32 %v6368_v26, %v10763_v6  ;;  %v6388_v22 = vadd.f32 %v6387_v21, %v10763_v6  ;;  %v6687_v12 = vmax.f32 %v6578_v18, 0.0  ;;  %v6724_v60 = vpack.c.bf16 %v6686_v16, %v6668_v48 }
 0x3f1   : > { %v6676_v61 = vmax.f32 %v6369_v34, 0.0  ;;  %v6677_v59 = vmax.f32 %v6388_v22, 0.0  ;;  %v6725_v2 = vpack.c.bf16 %v6687_v12, %v6669_v49  ;;  %6939 = vmatpush.bf16.msra.mxu2 %v6724_v60 }
 0x3f3   : > { %v6714_v55 = vpack.c.bf16 %v6676_v61, %v6658_v32  ;;  %v6715_v24 = vpack.c.bf16 %v6677_v59, %v6659_v19  ;;  %6953 = vmatpush.bf16.msra.mxu3 %v6725_v2 }
 0x3f5   : > { %6799 = vmatpush.bf16.msrb.mxu0 %v6714_v55  ;;  %6813 = vmatpush.bf16.msrb.mxu1 %v6715_v24 }
 0x3f6   : > { %v6437_v56 = vpop.f32.mrf.mxu0  ;;  %v6456_v4 = vpop.f32.mrf.mxu1  ;;  %6940 = vmatpush.bf16.msra.mxu2 %v6706_v14 }
 0x3f7   : > { %6954 = vmatpush.bf16.msra.mxu3 %v6707_v11  ;;  %v6438_v30 = vadd.f32 %v6437_v56, %v10746_v3  ;;  %v6457_v37 = vadd.f32 %v6456_v4, %v10746_v3 }
 0x3f9   : > { %6800 = vmatpush.bf16.msrb.mxu0 %v6696_v58  ;;  %6814 = vmatpush.bf16.msrb.mxu1 %v6697_v46  ;;  %v6626_v0 = vmax.f32 %v6438_v30, 0.0  ;;  %v6627_v32 = vmax.f32 %v6457_v37, 0.0 }
 0x3fa   : > { %7289 = vmatmul.msk.bf16.vlgmr.msra.gmra.mxu2 %vm6733_vm4, %v10804_v5  ;;  %7290 = vmatmul.msk.bf16.vlgmr.msra.gmra.mxu3 %vm6733_vm4, %v10804_v5 }
 0x3fc   : > { %7279 = vmatmul.msk.bf16.vlgmr.msrb.gmra.mxu0 %vm6733_vm4, %v10804_v5  ;;  %7280 = vmatmul.msk.bf16.vlgmr.msrb.gmra.mxu1 %vm6733_vm4, %v10804_v5 }
 0x3fe   : > { %v6439_v27 = vpop.f32.mrf.mxu0  ;;  %v6458_v9 = vpop.f32.mrf.mxu1 }
 0x3ff   : > { %v6440_v20 = vadd.f32 %v6439_v27, %v10758_v33  ;;  %v6459_v43 = vadd.f32 %v6458_v9, %v10758_v33 }
 0x401   : > { %v6644_v45 = vmax.f32 %v6440_v20, 0.0  ;;  %v6645_v34 = vmax.f32 %v6459_v43, 0.0 }
 0x403   : > { %v6700_v59 = vpack.c.bf16 %v6644_v45, %v6626_v0  ;;  %v6701_v63 = vpack.c.bf16 %v6645_v34, %v6627_v32 }
 0x406   : > { %v6442_v15 = vpop.f32.mrf.mxu0  ;;  %v6461_v1 = vpop.f32.mrf.mxu1 }
 0x407   : > { %v6443_v62 = vadd.f32 %v6442_v15, %v10752_v40  ;;  %v6462_v7 = vadd.f32 %v6461_v1, %v10752_v40 }
 0x409   : > { %v6662_v53 = vmax.f32 %v6443_v62, 0.0  ;;  %v6663_v26 = vmax.f32 %v6462_v7, 0.0 }
 0x40e   : > { %v6444_v28 = vpop.f32.mrf.mxu0  ;;  %v6463_v10 = vpop.f32.mrf.mxu1 }
 0x40f   : > { %v6445_v39 = vadd.f32 %v6444_v28, %v10763_v6  ;;  %v6464_v35 = vadd.f32 %v6463_v10, %v10763_v6 }
 0x411   : > { %v6680_v21 = vmax.f32 %v6445_v39, 0.0  ;;  %v6681_v50 = vmax.f32 %v6464_v35, 0.0 }
 0x413   : > { %v6718_v22 = vpack.c.bf16 %v6680_v21, %v6662_v53  ;;  %v6719_v38 = vpack.c.bf16 %v6681_v50, %v6663_v26 }
 0x415   : > { %6855 = vmatpush.bf16.msra.mxu0 %v6718_v22  ;;  %6869 = vmatpush.bf16.msra.mxu1 %v6719_v38 }
 0x416   : > { %v6513_v19 = vpop.f32.mrf.mxu0  ;;  %v6532_v61 = vpop.f32.mrf.mxu1 }
 0x417   : > { %v6514_v4 = vadd.f32 %v6513_v19, %v10746_v3  ;;  %v6533_v29 = vadd.f32 %v6532_v61, %v10746_v3 }
 0x419   : > { %6856 = vmatpush.bf16.msra.mxu0 %v6700_v59  ;;  %6870 = vmatpush.bf16.msra.mxu1 %v6701_v63  ;;  %v6630_v12 = vmax.f32 %v6514_v4, 0.0  ;;  %v6631_v57 = vmax.f32 %v6533_v29, 0.0 }
 0x41a   : > { %v6746_v43 = vpop.f32.mrf.mxu2  ;;  %v6760_v39 = vpop.f32.mrf.mxu3 }
 0x41b   : > { %6989 = vst [vmem:[%s10887_s14] sm:$0xff] %v6746_v43 }
 0x41c   : > { %7283 = vmatmul.msk.bf16.vlgmr.msra.gmra.mxu0 %vm6733_vm4, %v10804_v5  ;;  %7284 = vmatmul.msk.bf16.vlgmr.msra.gmra.mxu1 %vm6733_vm4, %v10804_v5  ;;  %6990 = vst [vmem:[%s10887_s14 + $0x8] sm:$0xff] %v6760_v39 }
 0x41e   : > { %v6515_v52 = vpop.f32.mrf.mxu0  ;;  %v6534_v55 = vpop.f32.mrf.mxu1 }
 0x41f   : > { %v6516_v36 = vadd.f32 %v6515_v52, %v10758_v33  ;;  %v6535_v44 = vadd.f32 %v6534_v55, %v10758_v33 }
 0x421   : > { %v6648_v46 = vmax.f32 %v6516_v36, 0.0  ;;  %v6649_v48 = vmax.f32 %v6535_v44, 0.0 }
 0x422   : > { %v6748_v38 = vpop.f32.mrf.mxu2  ;;  %v6762_v0 = vpop.f32.mrf.mxu3 }
 0x423   : > { %v6704_v54 = vpack.c.bf16 %v6648_v46, %v6630_v12  ;;  %v6705_v60 = vpack.c.bf16 %v6649_v48, %v6631_v57  ;;  %7007 = vst [vmem:[%s10887_s14 + $0x90] sm:$0xff] %v6748_v38 }
 0x424   : > { %7008 = vst [vmem:[%s10887_s14 + $0x98] sm:$0xff] %v6762_v0 }
 0x426   : > { %v6518_v24 = vpop.f32.mrf.mxu0  ;;  %v6537_v41 = vpop.f32.mrf.mxu1 }
 0x427   : > { %v6519_v47 = vadd.f32 %v6518_v24, %v10752_v40  ;;  %v6538_v51 = vadd.f32 %v6537_v41, %v10752_v40 }
 0x429   : > { %v6666_v23 = vmax.f32 %v6519_v47, 0.0  ;;  %v6667_v17 = vmax.f32 %v6538_v51, 0.0 }
 0x42a   : > { %v6774_v32 = vpop.f32.mrf.mxu2  ;;  %v6788_v19 = vpop.f32.mrf.mxu3 }
 0x42b   : > { %6991 = vst [vmem:[%s10887_s14 + $0x10] sm:$0xff] %v6774_v32 }
 0x42c   : > { %6992 = vst [vmem:[%s10887_s14 + $0x18] sm:$0xff] %v6788_v19 }
 0x42e   : > { %v6520_v13 = vpop.f32.mrf.mxu0  ;;  %v6539_v8 = vpop.f32.mrf.mxu1 }
 0x42f   : > { %v6521_v25 = vadd.f32 %v6520_v13, %v10763_v6  ;;  %v6540_v56 = vadd.f32 %v6539_v8, %v10763_v6 }
 0x431   : > { %v6684_v18 = vmax.f32 %v6521_v25, 0.0  ;;  %v6685_v58 = vmax.f32 %v6540_v56, 0.0 }
 0x432   : > { %v6776_v61 = vpop.f32.mrf.mxu2  ;;  %v6790_v59 = vpop.f32.mrf.mxu3 }
 0x433   : > { %v6722_v49 = vpack.c.bf16 %v6684_v18, %v6666_v23  ;;  %v6723_v16 = vpack.c.bf16 %v6685_v58, %v6667_v17  ;;  %7009 = vst [vmem:[%s10887_s14 + $0xa0] sm:$0xff] %v6776_v61 }
 0x434   : > { %7010 = vst [vmem:[%s10887_s14 + $0xa8] sm:$0xff] %v6790_v59 }
 0x435   : > { %6911 = vmatpush.bf16.msrb.mxu0 %v6722_v49  ;;  %6925 = vmatpush.bf16.msrb.mxu1 %v6723_v16 }
 0x436   : > { %v6589_v42 = vpop.f32.mrf.mxu0  ;;  %v6608_v31 = vpop.f32.mrf.mxu1 }
 0x437   : > { %v6590_v35 = vadd.f32 %v6589_v42, %v10746_v3  ;;  %v6609_v30 = vadd.f32 %v6608_v31, %v10746_v3 }
 0x439   : > { %6912 = vmatpush.bf16.msrb.mxu0 %v6704_v54  ;;  %6926 = vmatpush.bf16.msrb.mxu1 %v6705_v60  ;;  %v6634_v45 = vmax.f32 %v6590_v35, 0.0  ;;  %v6635_v34 = vmax.f32 %v6609_v30, 0.0 }
 0x43a   : > { %v6844_v52 = vpop.f32.mrf.mxu3 }
 0x43b   : > { %6996 = vst [vmem:[%s10887_s14 + $0x38] sm:$0xff] %v6844_v52 }
 0x43c   : > { %7287 = vmatmul.msk.bf16.vlgmr.msrb.gmra.mxu0 %vm6733_vm4, %v10804_v5  ;;  %7288 = vmatmul.msk.bf16.vlgmr.msrb.gmra.mxu1 %vm6733_vm4, %v10804_v5 }
 0x43e   : > { %v6591_v2 = vpop.f32.mrf.mxu0  ;;  %v6610_v27 = vpop.f32.mrf.mxu1 }
 0x43f   : > { %v6592_v7 = vadd.f32 %v6591_v2, %v10758_v33  ;;  %v6611_v28 = vadd.f32 %v6610_v27, %v10758_v33 }
 0x441   : > { %v6652_v26 = vmax.f32 %v6592_v7, 0.0 }
 0x442   : > { %v6846_v41 = vpop.f32.mrf.mxu3 }
 0x443   : > { %v6708_v3 = vpack.c.bf16 %v6652_v26, %v6634_v45  ;;  %7014 = vst [vmem:[%s10887_s14 + $0xc8] sm:$0xff] %v6846_v41 }
 0x446   : > { %v6594_v9 = vpop.f32.mrf.mxu0  ;;  %v6613_v14 = vpop.f32.mrf.mxu1 }
 0x447   : > { %v6595_v11 = vadd.f32 %v6594_v9, %v10752_v40  ;;  %v6614_v15 = vadd.f32 %v6613_v14, %v10752_v40 }
 0x449   : > { %v6670_v40 = vmax.f32 %v6595_v11, 0.0  ;;  %v6671_v37 = vmax.f32 %v6614_v15, 0.0  ;;  %v6830_v63 = vpop.f32.mrf.mxu2 }
 0x44a   : > { %6995 = vst [vmem:[%s10887_s14 + $0x30] sm:$0xff] %v6830_v63 }
 0x44e   : > { %v6596_v1 = vpop.f32.mrf.mxu0  ;;  %v6615_v62 = vpop.f32.mrf.mxu1 }
 0x44f   : > { %v6597_v10 = vadd.f32 %v6596_v1, %v10763_v6  ;;  %v6616_v20 = vadd.f32 %v6615_v62, %v10763_v6  ;;  %v6653_v6 = vmax.f32 %v6611_v28, 0.0 }
 0x451   : > { %v6688_v53 = vmax.f32 %v6597_v10, 0.0  ;;  %v6689_v33 = vmax.f32 %v6616_v20, 0.0  ;;  %v6709_v22 = vpack.c.bf16 %v6653_v6, %v6635_v34  ;;  %v6832_v24 = vpop.f32.mrf.mxu2 }
 0x452   : > { %7013 = vst [vmem:[%s10887_s14 + $0xc0] sm:$0xff] %v6832_v24  ;;  %v6900_v8 = vpop.f32.mrf.mxu3 }
 0x453   : > { %v6726_v21 = vpack.c.bf16 %v6688_v53, %v6670_v40  ;;  %v6727_v50 = vpack.c.bf16 %v6689_v33, %v6671_v37  ;;  %7000 = vst [vmem:[%s10887_s14 + $0x58] sm:$0xff] %v6900_v8 }
 0x455   : > { %6967 = vmatpush.bf16.msra.mxu0 %v6726_v21  ;;  %6981 = vmatpush.bf16.msra.mxu1 %v6727_v50 }
 0x459   : > { %6968 = vmatpush.bf16.msra.mxu0 %v6708_v3  ;;  %6982 = vmatpush.bf16.msra.mxu1 %v6709_v22 }
 0x45a   : > { %v6886_v13 = vpop.f32.mrf.mxu2  ;;  %v6902_v56 = vpop.f32.mrf.mxu3 }
 0x45b   : > { %6999 = vst [vmem:[%s10887_s14 + $0x50] sm:$0xff] %v6886_v13 }
 0x45c   : > { %7291 = vmatmul.msk.bf16.vlgmr.msra.gmra.mxu0 %vm6733_vm4, %v10804_v5  ;;  %7292 = vmatmul.msk.bf16.vlgmr.msra.gmra.mxu1 %vm6733_vm4, %v10804_v5  ;;  %7018 = vst [vmem:[%s10887_s14 + $0xe8] sm:$0xff] %v6902_v56 }
 0x462   : > { %v6888_v25 = vpop.f32.mrf.mxu2 }
 0x463   : > { %7017 = vst [vmem:[%s10887_s14 + $0xe0] sm:$0xff] %v6888_v25 }
 0x479   : > { %v6802_v5 = vpop.f32.mrf.mxu0  ;;  %v6816_v55 = vpop.f32.mrf.mxu1 }
 0x47a   : > { %6993 = vst [vmem:[%s10887_s14 + $0x20] sm:$0xff] %v6802_v5 }
 0x47b   : > { %6994 = vst [vmem:[%s10887_s14 + $0x28] sm:$0xff] %v6816_v55 }
 0x47d   : > { %v6942_v23 = vpop.f32.mrf.mxu2  ;;  %v6956_v17 = vpop.f32.mrf.mxu3 }
 0x47e   : > { %7003 = vst [vmem:[%s10887_s14 + $0x70] sm:$0xff] %v6942_v23 }
 0x47f   : > { %7004 = vst [vmem:[%s10887_s14 + $0x78] sm:$0xff] %v6956_v17 }
 0x481   : > { %v6804_v47 = vpop.f32.mrf.mxu0  ;;  %v6818_v51 = vpop.f32.mrf.mxu1 }
 0x482   : > { %7011 = vst [vmem:[%s10887_s14 + $0xb0] sm:$0xff] %v6804_v47 }
 0x483   : > { %7012 = vst [vmem:[%s10887_s14 + $0xb8] sm:$0xff] %v6818_v51 }
 0x485   : > { %v6944_v46 = vpop.f32.mrf.mxu2  ;;  %v6958_v48 = vpop.f32.mrf.mxu3 }
 0x486   : > { %7021 = vst [vmem:[%s10887_s14 + $0x100] sm:$0xff] %v6944_v46 }
 0x487   : > { %7022 = vst [vmem:[%s10887_s14 + $0x108] sm:$0xff] %v6958_v48 }
 0x499   : > { %v6858_v36 = vpop.f32.mrf.mxu0  ;;  %v6872_v44 = vpop.f32.mrf.mxu1 }
 0x49a   : > { %6997 = vst [vmem:[%s10887_s14 + $0x40] sm:$0xff] %v6858_v36 }
 0x49b   : > { %6998 = vst [vmem:[%s10887_s14 + $0x48] sm:$0xff] %v6872_v44 }
 0x4a1   : > { %v6860_v4 = vpop.f32.mrf.mxu0  ;;  %v6874_v29 = vpop.f32.mrf.mxu1 }
 0x4a2   : > { %7015 = vst [vmem:[%s10887_s14 + $0xd0] sm:$0xff] %v6860_v4 }
 0x4a3   : > { %7016 = vst [vmem:[%s10887_s14 + $0xd8] sm:$0xff] %v6874_v29 }
 0x4b9   : > { %v6914_v18 = vpop.f32.mrf.mxu0  ;;  %v6928_v58 = vpop.f32.mrf.mxu1 }
 0x4ba   : > { %7001 = vst [vmem:[%s10887_s14 + $0x60] sm:$0xff] %v6914_v18 }
 0x4bb   : > { %7002 = vst [vmem:[%s10887_s14 + $0x68] sm:$0xff] %v6928_v58 }
 0x4c1   : > { %v6916_v49 = vpop.f32.mrf.mxu0  ;;  %v6930_v16 = vpop.f32.mrf.mxu1 }
 0x4c2   : > { %7019 = vst [vmem:[%s10887_s14 + $0xf0] sm:$0xff] %v6916_v49 }
 0x4c3   : > { %7020 = vst [vmem:[%s10887_s14 + $0xf8] sm:$0xff] %v6930_v16 }
 0x4d9   : > { %v6970_v12 = vpop.f32.mrf.mxu0  ;;  %v6984_v57 = vpop.f32.mrf.mxu1 }
 0x4da   : > { %7005 = vst [vmem:[%s10887_s14 + $0x80] sm:$0xff] %v6970_v12 }
 0x4db   : > { %7006 = vst [vmem:[%s10887_s14 + $0x88] sm:$0xff] %v6984_v57 }
 0x4e1   : > { %v6972_v42 = vpop.f32.mrf.mxu0  ;;  %v6986_v31 = vpop.f32.mrf.mxu1 }
 0x4e2   : > { %7023 = vst [vmem:[%s10887_s14 + $0x110] sm:$0xff] %v6972_v42 }
 0x4e3   : > { %7024 = vst [vmem:[%s10887_s14 + $0x118] sm:$0xff] %v6986_v31 }
 0x4e4   : > { %7427 = shalt.err (!%p7424_p7)
}
 0x4e5   : > { %s7475_s28 = smov 2304   ;;  %s7476_s12 = smov 4608  }
 0x4e6   : > { %s7477_s13 = smov 144  }
 0x4e7   : > { %7306 = dma.vmem_to_hbm [thread:$0]  (%p7549_p11), %s7039_s5, 4608, %s7041_s30, %s7026_s6, %s7475_s28, %s7476_s12, %s7477_s13  }
 0x4e8 PF: > { %s7055_s14 = sand.u32 1, %s7454_s15   ;;  %p7313_p8 = pnand %p7116_p9, %p7553_p12 }
 0x4e9   : > { %s7056_s20 = scalar_lea.sflag [#allocation4], %s7055_s14 }
 0x4ea   : > { %p7314_p10 = pneg %p7313_p8 }
 0x4ec   : > { %7449 = dma.done.wait (%p7314_p10), %s7056_s20, 4608  }
 0x4ed   : > { %7451 = vsyncadd (%p7314_p10), %s7056_s20, 4294962688  ;;  %p17_p0 = scmp.ge.s32.totalorder %s7528_s21, 4   ;;  %s11110_s15 = smov %s7458_s16 }
 0x4ee   : > { %s11111_s16 = smov %s7462_s17  ;;  %s11112_s17 = smov %s7540_s24 }
 0x4ef   : > { %s11113_s18 = smov %s7528_s21  ;;  %19 = sbr.rel (!%p17_p0) target bundleno = 5 (0x5), region = 98 }
 0x4f4   :  { %7062 = vsyncpa [#allocation3], 1 }
 0x4f5   :  { %7064 = vsyncpa [#allocation3 + $0x1], 1 }
 0x4f6   :  { %7065 = vsyncpa [#allocation4], 1 }
 0x4f7   :  { %7067 = vsyncpa [#allocation4 + $0x1], 1 }

</bundles_post_ra>
